<compile_context>
chip_gen: v7x
topology: tpu7x:2x2x1
jax: 0.10.0
libtpu: 0.0.40
codegen_flags: <defaults>
</compile_context>

<pallas_src>
import functools

import jax
import jax.numpy as jnp
from jax import lax
from jax.experimental import pallas as pl
from jax.experimental.pallas import tpu as pltpu

PAD = 3              # 7 // 2 : one halo width serves the folded 7x7 kernel
K = 2 * PAD + 1      # 7


def _ppeg_kernel(x_hbm, w_ref, b_ref, out_hbm,
                 in_buf, out_buf, cls_buf, in_sem, out_sem, cls_sem,
                 *, th, wc):
    """One (batch, row-strip) grid step, reading/writing the token layout.

    x_hbm   : (B, 1+H*W, C) input tokens in HBM (pl.ANY)
    w_ref   : (7, 7, C)     folded depthwise weights (w7 + w5 + w3 + identity)
    b_ref   : (1, C)        summed biases
    out_hbm : (B, 1+H*W, C) output tokens in HBM (pl.ANY)
    in_buf  : (2, (th+6)*wc, C) double-buffered haloed input strips (flat tokens)
    out_buf : (2, th*wc, C)     double-buffered output strips
    cls_buf : (1, C)            cls-token staging buffer
    """
    C = w_ref.shape[2]
    b = pl.program_id(0)
    s = pl.program_id(1)
    n_strips = pl.num_programs(1)
    last = n_strips - 1

    halo = PAD * wc          # tokens in a 3-row halo
    core = th * wc           # tokens in one strip body
    slot = s & 1

    # ---- input DMA plumbing (manual double buffer over row strips) --------
    def core_copy(strip, sl):
        return pltpu.make_async_copy(
            x_hbm.at[b, pl.ds(1 + strip * core, core)],
            in_buf.at[sl, pl.ds(halo, core)],
            in_sem.at[sl, 0])

    def top_copy(strip, sl):
        return pltpu.make_async_copy(
            x_hbm.at[b, pl.ds(1 + strip * core - halo, halo)],
            in_buf.at[sl, pl.ds(0, halo)],
            in_sem.at[sl, 1])

    def bot_copy(strip, sl):
        return pltpu.make_async_copy(
            x_hbm.at[b, pl.ds(1 + (strip + 1) * core, halo)],
            in_buf.at[sl, pl.ds(halo + core, halo)],
            in_sem.at[sl, 2])

    def start_strip(strip, sl):
        core_copy(strip, sl).start()

        @pl.when(strip > 0)
        def _():
            top_copy(strip, sl).start()

        @pl.when(strip < last)
        def _():
            bot_copy(strip, sl).start()

    def wait_strip(strip, sl):
        core_copy(strip, sl).wait()

        @pl.when(strip > 0)
        def _():
            top_copy(strip, sl).wait()

        @pl.when(strip < last)
        def _():
            bot_copy(strip, sl).wait()

    def out_copy(strip, sl):
        return pltpu.make_async_copy(
            out_buf.at[sl],
            out_hbm.at[b, pl.ds(1 + strip * core, core)],
            out_sem.at[sl])

    # Prime the input pipeline on this batch element's first strip and kick
    # off the cls-token passthrough fetch.
    @pl.when(s == 0)
    def _():
        start_strip(s, slot)
        pltpu.make_async_copy(x_hbm.at[b, pl.ds(0, 1)], cls_buf,
                              cls_sem.at[0]).start()

    wait_strip(s, slot)

    # Prefetch the next strip of this batch element into the other slot so
    # its DMA overlaps this strip's compute.
    @pl.when(s + 1 < n_strips)
    def _():
        start_strip(s + 1, 1 - slot)

    # Halo rows with no source data are the conv's zero padding.
    @pl.when(s == 0)
    def _():
        in_buf[slot, pl.ds(0, halo), :] = jnp.zeros((halo, C), in_buf.dtype)

    @pl.when(s == last)
    def _():
        in_buf[slot, pl.ds(halo + core, halo), :] = jnp.zeros(
            (halo, C), in_buf.dtype)

    # ---- folded 49-tap depthwise conv on the VPU --------------------------
    w = w_ref[...].astype(jnp.float32)             # (7, 7, C)
    bias = b_ref[0].astype(jnp.float32)            # (C,)

    cur = in_buf[slot].astype(jnp.float32).reshape(th + 2 * PAD, wc, C)

    def zcol(n):
        return jnp.zeros((th + 2 * PAD, n, C), jnp.float32)

    acc = jnp.broadcast_to(bias, (th, wc, C)).astype(jnp.float32)
    for v in range(K):
        d = v - PAD
        if d == 0:
            sh = cur
        elif d < 0:
            sh = zcol(wc) if -d >= wc else jnp.concatenate(
                [zcol(-d), cur[:, : wc + d, :]], axis=1)
        else:
            sh = zcol(wc) if d >= wc else jnp.concatenate(
                [cur[:, d:, :], zcol(d)], axis=1)
        for u in range(K):
            acc = acc + sh[u:u + th] * w[u, v, :]

    # ---- output staging + DMA (double-buffered, drained per batch) --------
    @pl.when(s >= 2)
    def _():
        out_copy(s - 2, slot).wait()          # free this slot's previous DMA

    out_buf[slot] = acc.reshape(core, C).astype(out_buf.dtype)
    out_copy(s, slot).start()

    # cls-token passthrough: out[:, 0] = x[:, 0] (once per batch element).
    @pl.when(s == 0)
    def _():
        pltpu.make_async_copy(x_hbm.at[b, pl.ds(0, 1)], cls_buf,
                              cls_sem.at[0]).wait()
        pltpu.make_async_copy(cls_buf, out_hbm.at[b, pl.ds(0, 1)],
                              cls_sem.at[1]).start()
        pltpu.make_async_copy(cls_buf, out_hbm.at[b, pl.ds(0, 1)],
                              cls_sem.at[1]).wait()

    # Drain this batch element's outstanding output DMAs before moving on.
    # Every wait pairs with a start issued for the same batch element on the
    # same core, which keeps this safe under megacore batch sharding.
    @pl.when(s == last)
    def _():
        @pl.when(s >= 1)
        def _():
            out_copy(s - 1, 1 - slot).wait()

        out_copy(s, slot).wait()


def _strip_vmem_bytes(th, W, C, itemsize):
    """Rough per-step VMEM working-set estimate for strip height `th`."""
    rows = (th + 2 * PAD) * W
    in_buf = 2 * rows * C * itemsize            # manual input double buffer
    out_buf = 2 * th * W * C * itemsize         # manual output double buffer
    live = (2 * rows + th * W) * C * 4          # cur + one shifted slab + acc
    params = 2 * (8 * 8 * C + 8 * C) * 4        # (padded) weights + bias
    return in_buf + out_buf + live + params


def _choose_strip_rows(H, W, C, itemsize, budget=20 * 1024 * 1024):
    """Largest divisor of H (>= PAD rows unless single strip) that gives at
    least 2 strips when possible and fits the VMEM budget."""
    divisors = [t for t in range(1, H + 1)
                if H % t == 0 and (t >= PAD or t == H)]
    multi = [t for t in divisors
             if t < H and _strip_vmem_bytes(t, W, C, itemsize) <= budget]
    if multi:                                    # >= 2 strips -> DMA overlap
        return max(multi)
    fitting = [t for t in divisors
               if _strip_vmem_bytes(t, W, C, itemsize) <= budget]
    if fitting:
        return max(fitting)
    return min(divisors)


@functools.partial(jax.jit, static_argnames=("H", "W", "strip_rows"))
def ppeg_forward(x, w7, w5, w3, b7, b5, b3, *, H, W, strip_rows=None):
    """x: (B, 1 + H*W, C) -> (B, 1 + H*W, C).

    Depthwise weights are (k, k, C) with w[u, v, c] == torch_weight[c, 0, u, v];
    biases are (C,)."""
    B, N, C = x.shape
    assert N == 1 + H * W

    # Fold the three depthwise kernels + identity path into one 7x7 kernel:
    #   w_eff = w7 + pad(w5, 1) + pad(w3, 2);  w_eff[3, 3, :] += 1.0
    w_eff = w7.astype(jnp.float32)
    w_eff = w_eff.at[1:6, 1:6, :].add(w5.astype(jnp.float32))
    w_eff = w_eff.at[2:5, 2:5, :].add(w3.astype(jnp.float32))
    w_eff = w_eff.at[3, 3, :].add(1.0)
    bsum = (b7 + b5 + b3).astype(jnp.float32).reshape(1, C)

    itemsize = jnp.dtype(x.dtype).itemsize
    if strip_rows is None:
        TH = _choose_strip_rows(H, W, C, itemsize)
    else:
        TH = int(strip_rows)
    assert H % TH == 0 and (TH >= PAD or TH == H)
    n_strips = H // TH

    est = _strip_vmem_bytes(TH, W, C, itemsize)
    vmem_limit = int(min(max(2 * est, 24 * 1024 * 1024), 40 * 1024 * 1024))
    cost = pl.CostEstimate(
        flops=2 * K * K * B * H * W * C,
        transcendentals=0,
        bytes_accessed=int(2 * B * N * C * itemsize
                           + w_eff.size * 4 + bsum.size * 4))

    kernel = functools.partial(_ppeg_kernel, th=TH, wc=W)

    return pl.pallas_call(
        kernel,
        out_shape=jax.ShapeDtypeStruct((B, N, C), x.dtype),
        grid_spec=pltpu.PrefetchScalarGridSpec(
            num_scalar_prefetch=0,
            grid=(B, n_strips),
            in_specs=[
                pl.BlockSpec(memory_space=pl.ANY),                  # x tokens (HBM)
                pl.BlockSpec((K, K, C), lambda b, s: (0, 0, 0)),    # folded weights
                pl.BlockSpec((1, C), lambda b, s: (0, 0)),          # summed bias
            ],
            out_specs=pl.BlockSpec(memory_space=pl.ANY),            # out tokens (HBM)
            scratch_shapes=[
                pltpu.VMEM((2, (TH + 2 * PAD) * W, C), x.dtype),    # in_buf
                pltpu.VMEM((2, TH * W, C), x.dtype),                # out_buf
                pltpu.VMEM((1, C), x.dtype),                        # cls_buf
                pltpu.SemaphoreType.DMA((2, 3)),                    # in_sem
                pltpu.SemaphoreType.DMA((2,)),                      # out_sem
                pltpu.SemaphoreType.DMA((2,)),                      # cls_sem
            ]),
        compiler_params=pltpu.CompilerParams(
            dimension_semantics=("parallel", "arbitrary"),
            vmem_limit_bytes=vmem_limit),
        cost_estimate=cost,
    )(x, w_eff, bsum)


def ppeg_reference(x, w7, w5, w3, b7, b5, b3, *, H, W):
    """Pure-JAX reference using XLA depthwise convs (NHWC)."""
    B, N, C = x.shape
    cls_token = x[:, 0:1, :]
    feat = x[:, 1:, :].reshape(B, H, W, C)

    def dwconv(inp, w, b):
        k = w.shape[0]
        y = lax.conv_general_dilated(
            inp, w.reshape(k, k, 1, C),
            window_strides=(1, 1), padding="SAME",
            dimension_numbers=("NHWC", "HWIO", "NHWC"),
            feature_group_count=C,
            precision=lax.Precision.HIGHEST)
        return y + b

    y = feat + dwconv(feat, w7, b7) + dwconv(feat, w5, b5) + dwconv(feat, w3, b3)
    return jnp.concatenate([cls_token, y.reshape(B, H * W, C)], axis=1)


if __name__ == "__main__":
    # Small shapes consistent with the module; C is a multiple of 128 so the
    # lane axis is dense.  H=16 exercises the multi-strip path (2 strips by
    # default; a second run with strip_rows=4 also exercises the steady-state
    # double-buffer drain logic).
    B, C, H, W = 2, 128, 16, 16
    N = 1 + H * W

    key = jax.random.PRNGKey(0)
    kx, k7, k5, k3, kb7, kb5, kb3 = jax.random.split(key, 7)

    x = jax.random.normal(kx, (B, N, C), dtype=jnp.float32)
    # PyTorch depthwise weights (C,1,k,k) stored as (k,k,C): w[u,v,c]==wt[c,0,u,v].
    w7 = 0.05 * jax.random.normal(k7, (7, 7, C), dtype=jnp.float32)
    w5 = 0.05 * jax.random.normal(k5, (5, 5, C), dtype=jnp.float32)
    w3 = 0.05 * jax.random.normal(k3, (3, 3, C), dtype=jnp.float32)
    b7 = 0.01 * jax.random.normal(kb7, (C,), dtype=jnp.float32)
    b5 = 0.01 * jax.random.normal(kb5, (C,), dtype=jnp.float32)
    b3 = 0.01 * jax.random.normal(kb3, (C,), dtype=jnp.float32)

    ref = ppeg_reference(x, w7, w5, w3, b7, b5, b3, H=H, W=W)

    # Default strip size (2 strips of 8 rows at this shape).
    out = ppeg_forward(x, w7, w5, w3, b7, b5, b3, H=H, W=W)
    out = jax.block_until_ready(out)
    assert out.shape == (B, N, C)
    assert jnp.allclose(out, ref, atol=1e-4, rtol=1e-4), (
        float(jnp.max(jnp.abs(out - ref))))

    # Smaller strips: exercises the steady-state prefetch / output-drain path.
    out4 = ppeg_forward(x, w7, w5, w3, b7, b5, b3, H=H, W=W, strip_rows=4)
    out4 = jax.block_until_ready(out4)
    assert jnp.allclose(out4, ref, atol=1e-4, rtol=1e-4), (
        float(jnp.max(jnp.abs(out4 - ref))))

    print("KERNEL_OK")
</pallas_src>

<mosaic_0001>
module attributes {stable_mosaic.version = 11 : i64} {
  func.func @_ppeg_kernel(%arg0: i32, %arg1: i32, %arg2: memref<2x257x128xf32, #tpu.memory_space<any>>, %arg3: memref<7x7x128xf32, #tpu.memory_space<vmem>>, %arg4: memref<1x128xf32, #tpu.memory_space<vmem>>, %arg5: memref<2x257x128xf32, #tpu.memory_space<any>>, %arg6: memref<2x224x128xf32, #tpu.memory_space<vmem>>, %arg7: memref<2x128x128xf32, #tpu.memory_space<vmem>>, %arg8: memref<1x128xf32, #tpu.memory_space<vmem>>, %arg9: memref<2x3x!tpu.dma_semaphore, #tpu.memory_space<semaphore_mem>>, %arg10: memref<2x!tpu.dma_semaphore, #tpu.memory_space<semaphore_mem>>, %arg11: memref<2x!tpu.dma_semaphore, #tpu.memory_space<semaphore_mem>>) attributes {dimension_semantics = [#tpu.dimension_semantics<parallel>, #tpu.dimension_semantics<arbitrary>], iteration_bounds = array<i64: 2, 2>, scalar_prefetch = 0 : i64, scratch_operands = 6 : i64, tpu.core_type = #tpu.core_type<tc>, window_params = [{}, {pipeline_mode = #tpu.pipeline_mode<synchronous>, transform_indices = @transform_1, window_bounds = array<i64: 7, 7, 128>}, {pipeline_mode = #tpu.pipeline_mode<synchronous>, transform_indices = @transform_2, window_bounds = array<i64: 1, 128>}, {}]} {
    %c1_i32 = arith.constant 1 : i32
    %0 = arith.andi %arg1, %c1_i32 : i32
    %c0_i32 = arith.constant 0 : i32
    %1 = arith.cmpi eq, %arg1, %c0_i32 : i32
    %2 = arith.extui %1 : i1 to i32
    %c0_i32_0 = arith.constant 0 : i32
    %3 = arith.cmpi ne, %2, %c0_i32_0 : i32
    scf.if %3 {
      %c128_i32_39 = arith.constant 128 : i32
      %420 = arith.muli %arg1, %c128_i32_39 : i32
      %c1_i32_40 = arith.constant 1 : i32
      %421 = arith.addi %c1_i32_40, %420 : i32
      %c0_i32_41 = arith.constant 0 : i32
      %c0_i32_42 = arith.constant 0 : i32
      %422 = tpu.memref_slice %arg2[%arg0, %421, %c0_i32_42] : memref<2x257x128xf32, #tpu.memory_space<any>> -> memref<1x128x128xf32, #tpu.memory_space<any>>
      %423 = tpu.memref_squeeze %422 : memref<1x128x128xf32, #tpu.memory_space<any>> -> memref<128x128xf32, #tpu.memory_space<any>>
      %c48_i32_43 = arith.constant 48 : i32
      %c0_i32_44 = arith.constant 0 : i32
      %424 = tpu.memref_slice %arg6[%0, %c48_i32_43, %c0_i32_44] : memref<2x224x128xf32, #tpu.memory_space<vmem>> -> memref<1x128x128xf32, #tpu.memory_space<vmem>>
      %425 = tpu.memref_squeeze %424 : memref<1x128x128xf32, #tpu.memory_space<vmem>> -> memref<128x128xf32, #tpu.memory_space<vmem>>
      %426 = tpu.memref_slice %arg9[%0, %c0_i32_41] : memref<2x3x!tpu.dma_semaphore, #tpu.memory_space<semaphore_mem>> -> memref<1x1x!tpu.dma_semaphore, #tpu.memory_space<semaphore_mem>>
      %427 = tpu.memref_squeeze %426 : memref<1x1x!tpu.dma_semaphore, #tpu.memory_space<semaphore_mem>> -> memref<!tpu.dma_semaphore, #tpu.memory_space<semaphore_mem>>
      tpu.enqueue_dma source(%423 : memref<128x128xf32, #tpu.memory_space<any>>) target(%425 : memref<128x128xf32, #tpu.memory_space<vmem>>) target_semaphore(%427 : memref<!tpu.dma_semaphore, #tpu.memory_space<semaphore_mem>>)
      %c0_i32_45 = arith.constant 0 : i32
      %428 = arith.cmpi sgt, %arg1, %c0_i32_45 : i32
      %429 = arith.extui %428 : i1 to i32
      %c0_i32_46 = arith.constant 0 : i32
      %430 = arith.cmpi ne, %429, %c0_i32_46 : i32
      scf.if %430 {
        %c128_i32_52 = arith.constant 128 : i32
        %438 = arith.muli %arg1, %c128_i32_52 : i32
        %c1_i32_53 = arith.constant 1 : i32
        %439 = arith.addi %c1_i32_53, %438 : i32
        %c48_i32_54 = arith.constant 48 : i32
        %440 = arith.subi %439, %c48_i32_54 : i32
        %c1_i32_55 = arith.constant 1 : i32
        %c0_i32_56 = arith.constant 0 : i32
        %441 = tpu.memref_slice %arg2[%arg0, %440, %c0_i32_56] : memref<2x257x128xf32, #tpu.memory_space<any>> -> memref<1x48x128xf32, #tpu.memory_space<any>>
        %442 = tpu.memref_squeeze %441 : memref<1x48x128xf32, #tpu.memory_space<any>> -> memref<48x128xf32, #tpu.memory_space<any>>
        %c0_i32_57 = arith.constant 0 : i32
        %c0_i32_58 = arith.constant 0 : i32
        %443 = tpu.memref_slice %arg6[%0, %c0_i32_57, %c0_i32_58] : memref<2x224x128xf32, #tpu.memory_space<vmem>> -> memref<1x48x128xf32, #tpu.memory_space<vmem>>
        %444 = tpu.memref_squeeze %443 : memref<1x48x128xf32, #tpu.memory_space<vmem>> -> memref<48x128xf32, #tpu.memory_space<vmem>>
        %445 = tpu.memref_slice %arg9[%0, %c1_i32_55] : memref<2x3x!tpu.dma_semaphore, #tpu.memory_space<semaphore_mem>> -> memref<1x1x!tpu.dma_semaphore, #tpu.memory_space<semaphore_mem>>
        %446 = tpu.memref_squeeze %445 : memref<1x1x!tpu.dma_semaphore, #tpu.memory_space<semaphore_mem>> -> memref<!tpu.dma_semaphore, #tpu.memory_space<semaphore_mem>>
        tpu.enqueue_dma source(%442 : memref<48x128xf32, #tpu.memory_space<any>>) target(%444 : memref<48x128xf32, #tpu.memory_space<vmem>>) target_semaphore(%446 : memref<!tpu.dma_semaphore, #tpu.memory_space<semaphore_mem>>)
      } else {
      }
      %c1_i32_47 = arith.constant 1 : i32
      %431 = arith.cmpi slt, %arg1, %c1_i32_47 : i32
      %432 = arith.extui %431 : i1 to i32
      %c0_i32_48 = arith.constant 0 : i32
      %433 = arith.cmpi ne, %432, %c0_i32_48 : i32
      scf.if %433 {
        %c1_i32_52 = arith.constant 1 : i32
        %438 = arith.addi %arg1, %c1_i32_52 : i32
        %c128_i32_53 = arith.constant 128 : i32
        %439 = arith.muli %438, %c128_i32_53 : i32
        %c1_i32_54 = arith.constant 1 : i32
        %440 = arith.addi %c1_i32_54, %439 : i32
        %c2_i32_55 = arith.constant 2 : i32
        %c0_i32_56 = arith.constant 0 : i32
        %441 = tpu.memref_slice %arg2[%arg0, %440, %c0_i32_56] : memref<2x257x128xf32, #tpu.memory_space<any>> -> memref<1x48x128xf32, #tpu.memory_space<any>>
        %442 = tpu.memref_squeeze %441 : memref<1x48x128xf32, #tpu.memory_space<any>> -> memref<48x128xf32, #tpu.memory_space<any>>
        %c176_i32 = arith.constant 176 : i32
        %c0_i32_57 = arith.constant 0 : i32
        %443 = tpu.memref_slice %arg6[%0, %c176_i32, %c0_i32_57] : memref<2x224x128xf32, #tpu.memory_space<vmem>> -> memref<1x48x128xf32, #tpu.memory_space<vmem>>
        %444 = tpu.memref_squeeze %443 : memref<1x48x128xf32, #tpu.memory_space<vmem>> -> memref<48x128xf32, #tpu.memory_space<vmem>>
        %445 = tpu.memref_slice %arg9[%0, %c2_i32_55] : memref<2x3x!tpu.dma_semaphore, #tpu.memory_space<semaphore_mem>> -> memref<1x1x!tpu.dma_semaphore, #tpu.memory_space<semaphore_mem>>
        %446 = tpu.memref_squeeze %445 : memref<1x1x!tpu.dma_semaphore, #tpu.memory_space<semaphore_mem>> -> memref<!tpu.dma_semaphore, #tpu.memory_space<semaphore_mem>>
        tpu.enqueue_dma source(%442 : memref<48x128xf32, #tpu.memory_space<any>>) target(%444 : memref<48x128xf32, #tpu.memory_space<vmem>>) target_semaphore(%446 : memref<!tpu.dma_semaphore, #tpu.memory_space<semaphore_mem>>)
      } else {
      }
      %c0_i32_49 = arith.constant 0 : i32
      %c0_i32_50 = arith.constant 0 : i32
      %c0_i32_51 = arith.constant 0 : i32
      %434 = tpu.memref_slice %arg2[%arg0, %c0_i32_50, %c0_i32_51] : memref<2x257x128xf32, #tpu.memory_space<any>> -> memref<1x1x128xf32, #tpu.memory_space<any>>
      %435 = tpu.memref_squeeze %434 : memref<1x1x128xf32, #tpu.memory_space<any>> -> memref<1x128xf32, #tpu.memory_space<any>>
      %436 = tpu.memref_slice %arg11[%c0_i32_49] : memref<2x!tpu.dma_semaphore, #tpu.memory_space<semaphore_mem>> -> memref<1x!tpu.dma_semaphore, #tpu.memory_space<semaphore_mem>>
      %437 = tpu.memref_squeeze %436 : memref<1x!tpu.dma_semaphore, #tpu.memory_space<semaphore_mem>> -> memref<!tpu.dma_semaphore, #tpu.memory_space<semaphore_mem>>
      tpu.enqueue_dma source(%435 : memref<1x128xf32, #tpu.memory_space<any>>) target(%arg8 : memref<1x128xf32, #tpu.memory_space<vmem>>) target_semaphore(%437 : memref<!tpu.dma_semaphore, #tpu.memory_space<semaphore_mem>>)
    } else {
    }
    %c128_i32 = arith.constant 128 : i32
    %4 = arith.muli %arg1, %c128_i32 : i32
    %c1_i32_1 = arith.constant 1 : i32
    %5 = arith.addi %c1_i32_1, %4 : i32
    %c0_i32_2 = arith.constant 0 : i32
    %c0_i32_3 = arith.constant 0 : i32
    %6 = tpu.memref_slice %arg2[%arg0, %5, %c0_i32_3] : memref<2x257x128xf32, #tpu.memory_space<any>> -> memref<1x128x128xf32, #tpu.memory_space<any>>
    %7 = tpu.memref_squeeze %6 : memref<1x128x128xf32, #tpu.memory_space<any>> -> memref<128x128xf32, #tpu.memory_space<any>>
    %c48_i32 = arith.constant 48 : i32
    %c0_i32_4 = arith.constant 0 : i32
    %8 = tpu.memref_slice %arg6[%0, %c48_i32, %c0_i32_4] : memref<2x224x128xf32, #tpu.memory_space<vmem>> -> memref<1x128x128xf32, #tpu.memory_space<vmem>>
    %9 = tpu.memref_squeeze %8 : memref<1x128x128xf32, #tpu.memory_space<vmem>> -> memref<128x128xf32, #tpu.memory_space<vmem>>
    %10 = tpu.memref_slice %arg9[%0, %c0_i32_2] : memref<2x3x!tpu.dma_semaphore, #tpu.memory_space<semaphore_mem>> -> memref<1x1x!tpu.dma_semaphore, #tpu.memory_space<semaphore_mem>>
    %11 = tpu.memref_squeeze %10 : memref<1x1x!tpu.dma_semaphore, #tpu.memory_space<semaphore_mem>> -> memref<!tpu.dma_semaphore, #tpu.memory_space<semaphore_mem>>
    tpu.wait_dma2 semaphore(%11 : memref<!tpu.dma_semaphore, #tpu.memory_space<semaphore_mem>>) src(%7 : memref<128x128xf32, #tpu.memory_space<any>>) dst(%9 : memref<128x128xf32, #tpu.memory_space<vmem>>)
    %c0_i32_5 = arith.constant 0 : i32
    %12 = arith.cmpi sgt, %arg1, %c0_i32_5 : i32
    %13 = arith.extui %12 : i1 to i32
    %c0_i32_6 = arith.constant 0 : i32
    %14 = arith.cmpi ne, %13, %c0_i32_6 : i32
    scf.if %14 {
      %c128_i32_39 = arith.constant 128 : i32
      %420 = arith.muli %arg1, %c128_i32_39 : i32
      %c1_i32_40 = arith.constant 1 : i32
      %421 = arith.addi %c1_i32_40, %420 : i32
      %c48_i32_41 = arith.constant 48 : i32
      %422 = arith.subi %421, %c48_i32_41 : i32
      %c1_i32_42 = arith.constant 1 : i32
      %c0_i32_43 = arith.constant 0 : i32
      %423 = tpu.memref_slice %arg2[%arg0, %422, %c0_i32_43] : memref<2x257x128xf32, #tpu.memory_space<any>> -> memref<1x48x128xf32, #tpu.memory_space<any>>
      %424 = tpu.memref_squeeze %423 : memref<1x48x128xf32, #tpu.memory_space<any>> -> memref<48x128xf32, #tpu.memory_space<any>>
      %c0_i32_44 = arith.constant 0 : i32
      %c0_i32_45 = arith.constant 0 : i32
      %425 = tpu.memref_slice %arg6[%0, %c0_i32_44, %c0_i32_45] : memref<2x224x128xf32, #tpu.memory_space<vmem>> -> memref<1x48x128xf32, #tpu.memory_space<vmem>>
      %426 = tpu.memref_squeeze %425 : memref<1x48x128xf32, #tpu.memory_space<vmem>> -> memref<48x128xf32, #tpu.memory_space<vmem>>
      %427 = tpu.memref_slice %arg9[%0, %c1_i32_42] : memref<2x3x!tpu.dma_semaphore, #tpu.memory_space<semaphore_mem>> -> memref<1x1x!tpu.dma_semaphore, #tpu.memory_space<semaphore_mem>>
      %428 = tpu.memref_squeeze %427 : memref<1x1x!tpu.dma_semaphore, #tpu.memory_space<semaphore_mem>> -> memref<!tpu.dma_semaphore, #tpu.memory_space<semaphore_mem>>
      tpu.wait_dma2 semaphore(%428 : memref<!tpu.dma_semaphore, #tpu.memory_space<semaphore_mem>>) src(%424 : memref<48x128xf32, #tpu.memory_space<any>>) dst(%426 : memref<48x128xf32, #tpu.memory_space<vmem>>)
    } else {
    }
    %c1_i32_7 = arith.constant 1 : i32
    %15 = arith.cmpi slt, %arg1, %c1_i32_7 : i32
    %16 = arith.extui %15 : i1 to i32
    %c0_i32_8 = arith.constant 0 : i32
    %17 = arith.cmpi ne, %16, %c0_i32_8 : i32
    scf.if %17 {
      %c1_i32_39 = arith.constant 1 : i32
      %420 = arith.addi %arg1, %c1_i32_39 : i32
      %c128_i32_40 = arith.constant 128 : i32
      %421 = arith.muli %420, %c128_i32_40 : i32
      %c1_i32_41 = arith.constant 1 : i32
      %422 = arith.addi %c1_i32_41, %421 : i32
      %c2_i32_42 = arith.constant 2 : i32
      %c0_i32_43 = arith.constant 0 : i32
      %423 = tpu.memref_slice %arg2[%arg0, %422, %c0_i32_43] : memref<2x257x128xf32, #tpu.memory_space<any>> -> memref<1x48x128xf32, #tpu.memory_space<any>>
      %424 = tpu.memref_squeeze %423 : memref<1x48x128xf32, #tpu.memory_space<any>> -> memref<48x128xf32, #tpu.memory_space<any>>
      %c176_i32 = arith.constant 176 : i32
      %c0_i32_44 = arith.constant 0 : i32
      %425 = tpu.memref_slice %arg6[%0, %c176_i32, %c0_i32_44] : memref<2x224x128xf32, #tpu.memory_space<vmem>> -> memref<1x48x128xf32, #tpu.memory_space<vmem>>
      %426 = tpu.memref_squeeze %425 : memref<1x48x128xf32, #tpu.memory_space<vmem>> -> memref<48x128xf32, #tpu.memory_space<vmem>>
      %427 = tpu.memref_slice %arg9[%0, %c2_i32_42] : memref<2x3x!tpu.dma_semaphore, #tpu.memory_space<semaphore_mem>> -> memref<1x1x!tpu.dma_semaphore, #tpu.memory_space<semaphore_mem>>
      %428 = tpu.memref_squeeze %427 : memref<1x1x!tpu.dma_semaphore, #tpu.memory_space<semaphore_mem>> -> memref<!tpu.dma_semaphore, #tpu.memory_space<semaphore_mem>>
      tpu.wait_dma2 semaphore(%428 : memref<!tpu.dma_semaphore, #tpu.memory_space<semaphore_mem>>) src(%424 : memref<48x128xf32, #tpu.memory_space<any>>) dst(%426 : memref<48x128xf32, #tpu.memory_space<vmem>>)
    } else {
    }
    %c1_i32_9 = arith.constant 1 : i32
    %18 = arith.addi %arg1, %c1_i32_9 : i32
    %c2_i32 = arith.constant 2 : i32
    %19 = arith.cmpi slt, %18, %c2_i32 : i32
    %20 = arith.extui %19 : i1 to i32
    %c0_i32_10 = arith.constant 0 : i32
    %21 = arith.cmpi ne, %20, %c0_i32_10 : i32
    scf.if %21 {
      %c1_i32_39 = arith.constant 1 : i32
      %420 = arith.addi %arg1, %c1_i32_39 : i32
      %c1_i32_40 = arith.constant 1 : i32
      %421 = arith.subi %c1_i32_40, %0 : i32
      %c128_i32_41 = arith.constant 128 : i32
      %422 = arith.muli %420, %c128_i32_41 : i32
      %c1_i32_42 = arith.constant 1 : i32
      %423 = arith.addi %c1_i32_42, %422 : i32
      %c0_i32_43 = arith.constant 0 : i32
      %c0_i32_44 = arith.constant 0 : i32
      %424 = tpu.memref_slice %arg2[%arg0, %423, %c0_i32_44] : memref<2x257x128xf32, #tpu.memory_space<any>> -> memref<1x128x128xf32, #tpu.memory_space<any>>
      %425 = tpu.memref_squeeze %424 : memref<1x128x128xf32, #tpu.memory_space<any>> -> memref<128x128xf32, #tpu.memory_space<any>>
      %c48_i32_45 = arith.constant 48 : i32
      %c0_i32_46 = arith.constant 0 : i32
      %426 = tpu.memref_slice %arg6[%421, %c48_i32_45, %c0_i32_46] : memref<2x224x128xf32, #tpu.memory_space<vmem>> -> memref<1x128x128xf32, #tpu.memory_space<vmem>>
      %427 = tpu.memref_squeeze %426 : memref<1x128x128xf32, #tpu.memory_space<vmem>> -> memref<128x128xf32, #tpu.memory_space<vmem>>
      %428 = tpu.memref_slice %arg9[%421, %c0_i32_43] : memref<2x3x!tpu.dma_semaphore, #tpu.memory_space<semaphore_mem>> -> memref<1x1x!tpu.dma_semaphore, #tpu.memory_space<semaphore_mem>>
      %429 = tpu.memref_squeeze %428 : memref<1x1x!tpu.dma_semaphore, #tpu.memory_space<semaphore_mem>> -> memref<!tpu.dma_semaphore, #tpu.memory_space<semaphore_mem>>
      tpu.enqueue_dma source(%425 : memref<128x128xf32, #tpu.memory_space<any>>) target(%427 : memref<128x128xf32, #tpu.memory_space<vmem>>) target_semaphore(%429 : memref<!tpu.dma_semaphore, #tpu.memory_space<semaphore_mem>>)
      %c0_i32_47 = arith.constant 0 : i32
      %430 = arith.cmpi sgt, %420, %c0_i32_47 : i32
      %431 = arith.extui %430 : i1 to i32
      %c0_i32_48 = arith.constant 0 : i32
      %432 = arith.cmpi ne, %431, %c0_i32_48 : i32
      scf.if %432 {
        %c128_i32_51 = arith.constant 128 : i32
        %436 = arith.muli %420, %c128_i32_51 : i32
        %c1_i32_52 = arith.constant 1 : i32
        %437 = arith.addi %c1_i32_52, %436 : i32
        %c48_i32_53 = arith.constant 48 : i32
        %438 = arith.subi %437, %c48_i32_53 : i32
        %c1_i32_54 = arith.constant 1 : i32
        %c0_i32_55 = arith.constant 0 : i32
        %439 = tpu.memref_slice %arg2[%arg0, %438, %c0_i32_55] : memref<2x257x128xf32, #tpu.memory_space<any>> -> memref<1x48x128xf32, #tpu.memory_space<any>>
        %440 = tpu.memref_squeeze %439 : memref<1x48x128xf32, #tpu.memory_space<any>> -> memref<48x128xf32, #tpu.memory_space<any>>
        %c0_i32_56 = arith.constant 0 : i32
        %c0_i32_57 = arith.constant 0 : i32
        %441 = tpu.memref_slice %arg6[%421, %c0_i32_56, %c0_i32_57] : memref<2x224x128xf32, #tpu.memory_space<vmem>> -> memref<1x48x128xf32, #tpu.memory_space<vmem>>
        %442 = tpu.memref_squeeze %441 : memref<1x48x128xf32, #tpu.memory_space<vmem>> -> memref<48x128xf32, #tpu.memory_space<vmem>>
        %443 = tpu.memref_slice %arg9[%421, %c1_i32_54] : memref<2x3x!tpu.dma_semaphore, #tpu.memory_space<semaphore_mem>> -> memref<1x1x!tpu.dma_semaphore, #tpu.memory_space<semaphore_mem>>
        %444 = tpu.memref_squeeze %443 : memref<1x1x!tpu.dma_semaphore, #tpu.memory_space<semaphore_mem>> -> memref<!tpu.dma_semaphore, #tpu.memory_space<semaphore_mem>>
        tpu.enqueue_dma source(%440 : memref<48x128xf32, #tpu.memory_space<any>>) target(%442 : memref<48x128xf32, #tpu.memory_space<vmem>>) target_semaphore(%444 : memref<!tpu.dma_semaphore, #tpu.memory_space<semaphore_mem>>)
      } else {
      }
      %c1_i32_49 = arith.constant 1 : i32
      %433 = arith.cmpi slt, %420, %c1_i32_49 : i32
      %434 = arith.extui %433 : i1 to i32
      %c0_i32_50 = arith.constant 0 : i32
      %435 = arith.cmpi ne, %434, %c0_i32_50 : i32
      scf.if %435 {
        %c1_i32_51 = arith.constant 1 : i32
        %436 = arith.addi %420, %c1_i32_51 : i32
        %c128_i32_52 = arith.constant 128 : i32
        %437 = arith.muli %436, %c128_i32_52 : i32
        %c1_i32_53 = arith.constant 1 : i32
        %438 = arith.addi %c1_i32_53, %437 : i32
        %c2_i32_54 = arith.constant 2 : i32
        %c0_i32_55 = arith.constant 0 : i32
        %439 = tpu.memref_slice %arg2[%arg0, %438, %c0_i32_55] : memref<2x257x128xf32, #tpu.memory_space<any>> -> memref<1x48x128xf32, #tpu.memory_space<any>>
        %440 = tpu.memref_squeeze %439 : memref<1x48x128xf32, #tpu.memory_space<any>> -> memref<48x128xf32, #tpu.memory_space<any>>
        %c176_i32 = arith.constant 176 : i32
        %c0_i32_56 = arith.constant 0 : i32
        %441 = tpu.memref_slice %arg6[%421, %c176_i32, %c0_i32_56] : memref<2x224x128xf32, #tpu.memory_space<vmem>> -> memref<1x48x128xf32, #tpu.memory_space<vmem>>
        %442 = tpu.memref_squeeze %441 : memref<1x48x128xf32, #tpu.memory_space<vmem>> -> memref<48x128xf32, #tpu.memory_space<vmem>>
        %443 = tpu.memref_slice %arg9[%421, %c2_i32_54] : memref<2x3x!tpu.dma_semaphore, #tpu.memory_space<semaphore_mem>> -> memref<1x1x!tpu.dma_semaphore, #tpu.memory_space<semaphore_mem>>
        %444 = tpu.memref_squeeze %443 : memref<1x1x!tpu.dma_semaphore, #tpu.memory_space<semaphore_mem>> -> memref<!tpu.dma_semaphore, #tpu.memory_space<semaphore_mem>>
        tpu.enqueue_dma source(%440 : memref<48x128xf32, #tpu.memory_space<any>>) target(%442 : memref<48x128xf32, #tpu.memory_space<vmem>>) target_semaphore(%444 : memref<!tpu.dma_semaphore, #tpu.memory_space<semaphore_mem>>)
      } else {
      }
    } else {
    }
    %c0_i32_11 = arith.constant 0 : i32
    %22 = arith.cmpi eq, %arg1, %c0_i32_11 : i32
    %23 = arith.extui %22 : i1 to i32
    %c0_i32_12 = arith.constant 0 : i32
    %24 = arith.cmpi ne, %23, %c0_i32_12 : i32
    scf.if %24 {
      %cst_39 = arith.constant 0.000000e+00 : f32
      %420 = vector.broadcast %cst_39 : f32 to vector<48x128xf32>
      %421 = arith.index_cast %0 : i32 to index
      %c0_40 = arith.constant 0 : index
      %c0_41 = arith.constant 0 : index
      %422 = vector.load %arg6[%421, %c0_40, %c0_41] : memref<2x224x128xf32, #tpu.memory_space<vmem>>, vector<1x48x128xf32>
      %423 = vector.shape_cast %422 : vector<1x48x128xf32> to vector<48x128xf32>
      %424 = vector.shape_cast %420 : vector<48x128xf32> to vector<1x48x128xf32>
      tpu.vector_store %arg6[%421, %c0_40, %c0_41], %424 {strides = array<i32>} : memref<2x224x128xf32, #tpu.memory_space<vmem>>, vector<1x48x128xf32>,
    } else {
    }
    %c1_i32_13 = arith.constant 1 : i32
    %25 = arith.cmpi eq, %arg1, %c1_i32_13 : i32
    %26 = arith.extui %25 : i1 to i32
    %c0_i32_14 = arith.constant 0 : i32
    %27 = arith.cmpi ne, %26, %c0_i32_14 : i32
    scf.if %27 {
      %cst_39 = arith.constant 0.000000e+00 : f32
      %420 = vector.broadcast %cst_39 : f32 to vector<48x128xf32>
      %421 = arith.index_cast %0 : i32 to index
      %c176 = arith.constant 176 : index
      %c0_40 = arith.constant 0 : index
      %422 = vector.load %arg6[%421, %c176, %c0_40] : memref<2x224x128xf32, #tpu.memory_space<vmem>>, vector<1x48x128xf32>
      %423 = vector.shape_cast %422 : vector<1x48x128xf32> to vector<48x128xf32>
      %424 = vector.shape_cast %420 : vector<48x128xf32> to vector<1x48x128xf32>
      tpu.vector_store %arg6[%421, %c176, %c0_40], %424 {strides = array<i32>} : memref<2x224x128xf32, #tpu.memory_space<vmem>>, vector<1x48x128xf32>,
    } else {
    }
    %c0 = arith.constant 0 : index
    %c0_15 = arith.constant 0 : index
    %c0_16 = arith.constant 0 : index
    %28 = vector.load %arg3[%c0, %c0_15, %c0_16] : memref<7x7x128xf32, #tpu.memory_space<vmem>>, vector<7x7x128xf32>
    %c0_17 = arith.constant 0 : index
    %c0_18 = arith.constant 0 : index
    %29 = vector.load %arg4[%c0_17, %c0_18] : memref<1x128xf32, #tpu.memory_space<vmem>>, vector<1x128xf32>
    %30 = vector.shape_cast %29 : vector<1x128xf32> to vector<128xf32>
    %31 = arith.index_cast %0 : i32 to index
    %c0_19 = arith.constant 0 : index
    %c0_20 = arith.constant 0 : index
    %32 = vector.load %arg6[%31, %c0_19, %c0_20] : memref<2x224x128xf32, #tpu.memory_space<vmem>>, vector<1x224x128xf32>
    %33 = vector.shape_cast %32 : vector<1x224x128xf32> to vector<224x128xf32>
    %34 = vector.shape_cast %33 : vector<224x128xf32> to vector<14x16x128xf32>
    %35 = vector.shape_cast %30 : vector<128xf32> to vector<1x1x128xf32>
    %36 = vector.broadcast %35 : vector<1x1x128xf32> to vector<8x16x128xf32>
    %cst = arith.constant 0.000000e+00 : f32
    %37 = vector.broadcast %cst : f32 to vector<14x3x128xf32>
    %38 = vector.extract_strided_slice %34 {offsets = [0, 0, 0], sizes = [14, 13, 128], strides = [1, 1, 1]} : vector<14x16x128xf32> to vector<14x13x128xf32>
    %39 = tpu.concatenate %37, %38 in 1 : vector<14x3x128xf32>, vector<14x13x128xf32> -> vector<14x16x128xf32>
    %40 = vector.extract_strided_slice %39 {offsets = [0, 0, 0], sizes = [8, 16, 128], strides = [1, 1, 1]} : vector<14x16x128xf32> to vector<8x16x128xf32>
    %41 = vector.extract_strided_slice %28 {offsets = [0, 0, 0], sizes = [1, 1, 128], strides = [1, 1, 1]} : vector<7x7x128xf32> to vector<1x1x128xf32>
    %42 = vector.shape_cast %41 : vector<1x1x128xf32> to vector<128xf32>
    %43 = vector.shape_cast %42 : vector<128xf32> to vector<1x1x128xf32>
    %44 = vector.broadcast %43 : vector<1x1x128xf32> to vector<8x16x128xf32>
    %45 = arith.mulf %40, %44 : vector<8x16x128xf32>
    %46 = arith.addf %36, %45 : vector<8x16x128xf32>
    %47 = vector.extract_strided_slice %39 {offsets = [1, 0, 0], sizes = [8, 16, 128], strides = [1, 1, 1]} : vector<14x16x128xf32> to vector<8x16x128xf32>
    %48 = vector.extract_strided_slice %28 {offsets = [1, 0, 0], sizes = [1, 1, 128], strides = [1, 1, 1]} : vector<7x7x128xf32> to vector<1x1x128xf32>
    %49 = vector.shape_cast %48 : vector<1x1x128xf32> to vector<128xf32>
    %50 = vector.shape_cast %49 : vector<128xf32> to vector<1x1x128xf32>
    %51 = vector.broadcast %50 : vector<1x1x128xf32> to vector<8x16x128xf32>
    %52 = arith.mulf %47, %51 : vector<8x16x128xf32>
    %53 = arith.addf %46, %52 : vector<8x16x128xf32>
    %54 = vector.extract_strided_slice %39 {offsets = [2, 0, 0], sizes = [8, 16, 128], strides = [1, 1, 1]} : vector<14x16x128xf32> to vector<8x16x128xf32>
    %55 = vector.extract_strided_slice %28 {offsets = [2, 0, 0], sizes = [1, 1, 128], strides = [1, 1, 1]} : vector<7x7x128xf32> to vector<1x1x128xf32>
    %56 = vector.shape_cast %55 : vector<1x1x128xf32> to vector<128xf32>
    %57 = vector.shape_cast %56 : vector<128xf32> to vector<1x1x128xf32>
    %58 = vector.broadcast %57 : vector<1x1x128xf32> to vector<8x16x128xf32>
    %59 = arith.mulf %54, %58 : vector<8x16x128xf32>
    %60 = arith.addf %53, %59 : vector<8x16x128xf32>
    %61 = vector.extract_strided_slice %39 {offsets = [3, 0, 0], sizes = [8, 16, 128], strides = [1, 1, 1]} : vector<14x16x128xf32> to vector<8x16x128xf32>
    %62 = vector.extract_strided_slice %28 {offsets = [3, 0, 0], sizes = [1, 1, 128], strides = [1, 1, 1]} : vector<7x7x128xf32> to vector<1x1x128xf32>
    %63 = vector.shape_cast %62 : vector<1x1x128xf32> to vector<128xf32>
    %64 = vector.shape_cast %63 : vector<128xf32> to vector<1x1x128xf32>
    %65 = vector.broadcast %64 : vector<1x1x128xf32> to vector<8x16x128xf32>
    %66 = arith.mulf %61, %65 : vector<8x16x128xf32>
    %67 = arith.addf %60, %66 : vector<8x16x128xf32>
    %68 = vector.extract_strided_slice %39 {offsets = [4, 0, 0], sizes = [8, 16, 128], strides = [1, 1, 1]} : vector<14x16x128xf32> to vector<8x16x128xf32>
    %69 = vector.extract_strided_slice %28 {offsets = [4, 0, 0], sizes = [1, 1, 128], strides = [1, 1, 1]} : vector<7x7x128xf32> to vector<1x1x128xf32>
    %70 = vector.shape_cast %69 : vector<1x1x128xf32> to vector<128xf32>
    %71 = vector.shape_cast %70 : vector<128xf32> to vector<1x1x128xf32>
    %72 = vector.broadcast %71 : vector<1x1x128xf32> to vector<8x16x128xf32>
    %73 = arith.mulf %68, %72 : vector<8x16x128xf32>
    %74 = arith.addf %67, %73 : vector<8x16x128xf32>
    %75 = vector.extract_strided_slice %39 {offsets = [5, 0, 0], sizes = [8, 16, 128], strides = [1, 1, 1]} : vector<14x16x128xf32> to vector<8x16x128xf32>
    %76 = vector.extract_strided_slice %28 {offsets = [5, 0, 0], sizes = [1, 1, 128], strides = [1, 1, 1]} : vector<7x7x128xf32> to vector<1x1x128xf32>
    %77 = vector.shape_cast %76 : vector<1x1x128xf32> to vector<128xf32>
    %78 = vector.shape_cast %77 : vector<128xf32> to vector<1x1x128xf32>
    %79 = vector.broadcast %78 : vector<1x1x128xf32> to vector<8x16x128xf32>
    %80 = arith.mulf %75, %79 : vector<8x16x128xf32>
    %81 = arith.addf %74, %80 : vector<8x16x128xf32>
    %82 = vector.extract_strided_slice %39 {offsets = [6, 0, 0], sizes = [8, 16, 128], strides = [1, 1, 1]} : vector<14x16x128xf32> to vector<8x16x128xf32>
    %83 = vector.extract_strided_slice %28 {offsets = [6, 0, 0], sizes = [1, 1, 128], strides = [1, 1, 1]} : vector<7x7x128xf32> to vector<1x1x128xf32>
    %84 = vector.shape_cast %83 : vector<1x1x128xf32> to vector<128xf32>
    %85 = vector.shape_cast %84 : vector<128xf32> to vector<1x1x128xf32>
    %86 = vector.broadcast %85 : vector<1x1x128xf32> to vector<8x16x128xf32>
    %87 = arith.mulf %82, %86 : vector<8x16x128xf32>
    %88 = arith.addf %81, %87 : vector<8x16x128xf32>
    %cst_21 = arith.constant 0.000000e+00 : f32
    %89 = vector.broadcast %cst_21 : f32 to vector<14x2x128xf32>
    %90 = vector.extract_strided_slice %34 {offsets = [0, 0, 0], sizes = [14, 14, 128], strides = [1, 1, 1]} : vector<14x16x128xf32> to vector<14x14x128xf32>
    %91 = tpu.concatenate %89, %90 in 1 : vector<14x2x128xf32>, vector<14x14x128xf32> -> vector<14x16x128xf32>
    %92 = vector.extract_strided_slice %91 {offsets = [0, 0, 0], sizes = [8, 16, 128], strides = [1, 1, 1]} : vector<14x16x128xf32> to vector<8x16x128xf32>
    %93 = vector.extract_strided_slice %28 {offsets = [0, 1, 0], sizes = [1, 1, 128], strides = [1, 1, 1]} : vector<7x7x128xf32> to vector<1x1x128xf32>
    %94 = vector.shape_cast %93 : vector<1x1x128xf32> to vector<128xf32>
    %95 = vector.shape_cast %94 : vector<128xf32> to vector<1x1x128xf32>
    %96 = vector.broadcast %95 : vector<1x1x128xf32> to vector<8x16x128xf32>
    %97 = arith.mulf %92, %96 : vector<8x16x128xf32>
    %98 = arith.addf %88, %97 : vector<8x16x128xf32>
    %99 = vector.extract_strided_slice %91 {offsets = [1, 0, 0], sizes = [8, 16, 128], strides = [1, 1, 1]} : vector<14x16x128xf32> to vector<8x16x128xf32>
    %100 = vector.extract_strided_slice %28 {offsets = [1, 1, 0], sizes = [1, 1, 128], strides = [1, 1, 1]} : vector<7x7x128xf32> to vector<1x1x128xf32>
    %101 = vector.shape_cast %100 : vector<1x1x128xf32> to vector<128xf32>
    %102 = vector.shape_cast %101 : vector<128xf32> to vector<1x1x128xf32>
    %103 = vector.broadcast %102 : vector<1x1x128xf32> to vector<8x16x128xf32>
    %104 = arith.mulf %99, %103 : vector<8x16x128xf32>
    %105 = arith.addf %98, %104 : vector<8x16x128xf32>
    %106 = vector.extract_strided_slice %91 {offsets = [2, 0, 0], sizes = [8, 16, 128], strides = [1, 1, 1]} : vector<14x16x128xf32> to vector<8x16x128xf32>
    %107 = vector.extract_strided_slice %28 {offsets = [2, 1, 0], sizes = [1, 1, 128], strides = [1, 1, 1]} : vector<7x7x128xf32> to vector<1x1x128xf32>
    %108 = vector.shape_cast %107 : vector<1x1x128xf32> to vector<128xf32>
    %109 = vector.shape_cast %108 : vector<128xf32> to vector<1x1x128xf32>
    %110 = vector.broadcast %109 : vector<1x1x128xf32> to vector<8x16x128xf32>
    %111 = arith.mulf %106, %110 : vector<8x16x128xf32>
    %112 = arith.addf %105, %111 : vector<8x16x128xf32>
    %113 = vector.extract_strided_slice %91 {offsets = [3, 0, 0], sizes = [8, 16, 128], strides = [1, 1, 1]} : vector<14x16x128xf32> to vector<8x16x128xf32>
    %114 = vector.extract_strided_slice %28 {offsets = [3, 1, 0], sizes = [1, 1, 128], strides = [1, 1, 1]} : vector<7x7x128xf32> to vector<1x1x128xf32>
    %115 = vector.shape_cast %114 : vector<1x1x128xf32> to vector<128xf32>
    %116 = vector.shape_cast %115 : vector<128xf32> to vector<1x1x128xf32>
    %117 = vector.broadcast %116 : vector<1x1x128xf32> to vector<8x16x128xf32>
    %118 = arith.mulf %113, %117 : vector<8x16x128xf32>
    %119 = arith.addf %112, %118 : vector<8x16x128xf32>
    %120 = vector.extract_strided_slice %91 {offsets = [4, 0, 0], sizes = [8, 16, 128], strides = [1, 1, 1]} : vector<14x16x128xf32> to vector<8x16x128xf32>
    %121 = vector.extract_strided_slice %28 {offsets = [4, 1, 0], sizes = [1, 1, 128], strides = [1, 1, 1]} : vector<7x7x128xf32> to vector<1x1x128xf32>
    %122 = vector.shape_cast %121 : vector<1x1x128xf32> to vector<128xf32>
    %123 = vector.shape_cast %122 : vector<128xf32> to vector<1x1x128xf32>
    %124 = vector.broadcast %123 : vector<1x1x128xf32> to vector<8x16x128xf32>
    %125 = arith.mulf %120, %124 : vector<8x16x128xf32>
    %126 = arith.addf %119, %125 : vector<8x16x128xf32>
    %127 = vector.extract_strided_slice %91 {offsets = [5, 0, 0], sizes = [8, 16, 128], strides = [1, 1, 1]} : vector<14x16x128xf32> to vector<8x16x128xf32>
    %128 = vector.extract_strided_slice %28 {offsets = [5, 1, 0], sizes = [1, 1, 128], strides = [1, 1, 1]} : vector<7x7x128xf32> to vector<1x1x128xf32>
    %129 = vector.shape_cast %128 : vector<1x1x128xf32> to vector<128xf32>
    %130 = vector.shape_cast %129 : vector<128xf32> to vector<1x1x128xf32>
    %131 = vector.broadcast %130 : vector<1x1x128xf32> to vector<8x16x128xf32>
    %132 = arith.mulf %127, %131 : vector<8x16x128xf32>
    %133 = arith.addf %126, %132 : vector<8x16x128xf32>
    %134 = vector.extract_strided_slice %91 {offsets = [6, 0, 0], sizes = [8, 16, 128], strides = [1, 1, 1]} : vector<14x16x128xf32> to vector<8x16x128xf32>
    %135 = vector.extract_strided_slice %28 {offsets = [6, 1, 0], sizes = [1, 1, 128], strides = [1, 1, 1]} : vector<7x7x128xf32> to vector<1x1x128xf32>
    %136 = vector.shape_cast %135 : vector<1x1x128xf32> to vector<128xf32>
    %137 = vector.shape_cast %136 : vector<128xf32> to vector<1x1x128xf32>
    %138 = vector.broadcast %137 : vector<1x1x128xf32> to vector<8x16x128xf32>
    %139 = arith.mulf %134, %138 : vector<8x16x128xf32>
    %140 = arith.addf %133, %139 : vector<8x16x128xf32>
    %cst_22 = arith.constant 0.000000e+00 : f32
    %141 = vector.broadcast %cst_22 : f32 to vector<14x1x128xf32>
    %142 = vector.extract_strided_slice %34 {offsets = [0, 0, 0], sizes = [14, 15, 128], strides = [1, 1, 1]} : vector<14x16x128xf32> to vector<14x15x128xf32>
    %143 = tpu.concatenate %141, %142 in 1 : vector<14x1x128xf32>, vector<14x15x128xf32> -> vector<14x16x128xf32>
    %144 = vector.extract_strided_slice %143 {offsets = [0, 0, 0], sizes = [8, 16, 128], strides = [1, 1, 1]} : vector<14x16x128xf32> to vector<8x16x128xf32>
    %145 = vector.extract_strided_slice %28 {offsets = [0, 2, 0], sizes = [1, 1, 128], strides = [1, 1, 1]} : vector<7x7x128xf32> to vector<1x1x128xf32>
    %146 = vector.shape_cast %145 : vector<1x1x128xf32> to vector<128xf32>
    %147 = vector.shape_cast %146 : vector<128xf32> to vector<1x1x128xf32>
    %148 = vector.broadcast %147 : vector<1x1x128xf32> to vector<8x16x128xf32>
    %149 = arith.mulf %144, %148 : vector<8x16x128xf32>
    %150 = arith.addf %140, %149 : vector<8x16x128xf32>
    %151 = vector.extract_strided_slice %143 {offsets = [1, 0, 0], sizes = [8, 16, 128], strides = [1, 1, 1]} : vector<14x16x128xf32> to vector<8x16x128xf32>
    %152 = vector.extract_strided_slice %28 {offsets = [1, 2, 0], sizes = [1, 1, 128], strides = [1, 1, 1]} : vector<7x7x128xf32> to vector<1x1x128xf32>
    %153 = vector.shape_cast %152 : vector<1x1x128xf32> to vector<128xf32>
    %154 = vector.shape_cast %153 : vector<128xf32> to vector<1x1x128xf32>
    %155 = vector.broadcast %154 : vector<1x1x128xf32> to vector<8x16x128xf32>
    %156 = arith.mulf %151, %155 : vector<8x16x128xf32>
    %157 = arith.addf %150, %156 : vector<8x16x128xf32>
    %158 = vector.extract_strided_slice %143 {offsets = [2, 0, 0], sizes = [8, 16, 128], strides = [1, 1, 1]} : vector<14x16x128xf32> to vector<8x16x128xf32>
    %159 = vector.extract_strided_slice %28 {offsets = [2, 2, 0], sizes = [1, 1, 128], strides = [1, 1, 1]} : vector<7x7x128xf32> to vector<1x1x128xf32>
    %160 = vector.shape_cast %159 : vector<1x1x128xf32> to vector<128xf32>
    %161 = vector.shape_cast %160 : vector<128xf32> to vector<1x1x128xf32>
    %162 = vector.broadcast %161 : vector<1x1x128xf32> to vector<8x16x128xf32>
    %163 = arith.mulf %158, %162 : vector<8x16x128xf32>
    %164 = arith.addf %157, %163 : vector<8x16x128xf32>
    %165 = vector.extract_strided_slice %143 {offsets = [3, 0, 0], sizes = [8, 16, 128], strides = [1, 1, 1]} : vector<14x16x128xf32> to vector<8x16x128xf32>
    %166 = vector.extract_strided_slice %28 {offsets = [3, 2, 0], sizes = [1, 1, 128], strides = [1, 1, 1]} : vector<7x7x128xf32> to vector<1x1x128xf32>
    %167 = vector.shape_cast %166 : vector<1x1x128xf32> to vector<128xf32>
    %168 = vector.shape_cast %167 : vector<128xf32> to vector<1x1x128xf32>
    %169 = vector.broadcast %168 : vector<1x1x128xf32> to vector<8x16x128xf32>
    %170 = arith.mulf %165, %169 : vector<8x16x128xf32>
    %171 = arith.addf %164, %170 : vector<8x16x128xf32>
    %172 = vector.extract_strided_slice %143 {offsets = [4, 0, 0], sizes = [8, 16, 128], strides = [1, 1, 1]} : vector<14x16x128xf32> to vector<8x16x128xf32>
    %173 = vector.extract_strided_slice %28 {offsets = [4, 2, 0], sizes = [1, 1, 128], strides = [1, 1, 1]} : vector<7x7x128xf32> to vector<1x1x128xf32>
    %174 = vector.shape_cast %173 : vector<1x1x128xf32> to vector<128xf32>
    %175 = vector.shape_cast %174 : vector<128xf32> to vector<1x1x128xf32>
    %176 = vector.broadcast %175 : vector<1x1x128xf32> to vector<8x16x128xf32>
    %177 = arith.mulf %172, %176 : vector<8x16x128xf32>
    %178 = arith.addf %171, %177 : vector<8x16x128xf32>
    %179 = vector.extract_strided_slice %143 {offsets = [5, 0, 0], sizes = [8, 16, 128], strides = [1, 1, 1]} : vector<14x16x128xf32> to vector<8x16x128xf32>
    %180 = vector.extract_strided_slice %28 {offsets = [5, 2, 0], sizes = [1, 1, 128], strides = [1, 1, 1]} : vector<7x7x128xf32> to vector<1x1x128xf32>
    %181 = vector.shape_cast %180 : vector<1x1x128xf32> to vector<128xf32>
    %182 = vector.shape_cast %181 : vector<128xf32> to vector<1x1x128xf32>
    %183 = vector.broadcast %182 : vector<1x1x128xf32> to vector<8x16x128xf32>
    %184 = arith.mulf %179, %183 : vector<8x16x128xf32>
    %185 = arith.addf %178, %184 : vector<8x16x128xf32>
    %186 = vector.extract_strided_slice %143 {offsets = [6, 0, 0], sizes = [8, 16, 128], strides = [1, 1, 1]} : vector<14x16x128xf32> to vector<8x16x128xf32>
    %187 = vector.extract_strided_slice %28 {offsets = [6, 2, 0], sizes = [1, 1, 128], strides = [1, 1, 1]} : vector<7x7x128xf32> to vector<1x1x128xf32>
    %188 = vector.shape_cast %187 : vector<1x1x128xf32> to vector<128xf32>
    %189 = vector.shape_cast %188 : vector<128xf32> to vector<1x1x128xf32>
    %190 = vector.broadcast %189 : vector<1x1x128xf32> to vector<8x16x128xf32>
    %191 = arith.mulf %186, %190 : vector<8x16x128xf32>
    %192 = arith.addf %185, %191 : vector<8x16x128xf32>
    %193 = vector.extract_strided_slice %34 {offsets = [0, 0, 0], sizes = [8, 16, 128], strides = [1, 1, 1]} : vector<14x16x128xf32> to vector<8x16x128xf32>
    %194 = vector.extract_strided_slice %28 {offsets = [0, 3, 0], sizes = [1, 1, 128], strides = [1, 1, 1]} : vector<7x7x128xf32> to vector<1x1x128xf32>
    %195 = vector.shape_cast %194 : vector<1x1x128xf32> to vector<128xf32>
    %196 = vector.shape_cast %195 : vector<128xf32> to vector<1x1x128xf32>
    %197 = vector.broadcast %196 : vector<1x1x128xf32> to vector<8x16x128xf32>
    %198 = arith.mulf %193, %197 : vector<8x16x128xf32>
    %199 = arith.addf %192, %198 : vector<8x16x128xf32>
    %200 = vector.extract_strided_slice %34 {offsets = [1, 0, 0], sizes = [8, 16, 128], strides = [1, 1, 1]} : vector<14x16x128xf32> to vector<8x16x128xf32>
    %201 = vector.extract_strided_slice %28 {offsets = [1, 3, 0], sizes = [1, 1, 128], strides = [1, 1, 1]} : vector<7x7x128xf32> to vector<1x1x128xf32>
    %202 = vector.shape_cast %201 : vector<1x1x128xf32> to vector<128xf32>
    %203 = vector.shape_cast %202 : vector<128xf32> to vector<1x1x128xf32>
    %204 = vector.broadcast %203 : vector<1x1x128xf32> to vector<8x16x128xf32>
    %205 = arith.mulf %200, %204 : vector<8x16x128xf32>
    %206 = arith.addf %199, %205 : vector<8x16x128xf32>
    %207 = vector.extract_strided_slice %34 {offsets = [2, 0, 0], sizes = [8, 16, 128], strides = [1, 1, 1]} : vector<14x16x128xf32> to vector<8x16x128xf32>
    %208 = vector.extract_strided_slice %28 {offsets = [2, 3, 0], sizes = [1, 1, 128], strides = [1, 1, 1]} : vector<7x7x128xf32> to vector<1x1x128xf32>
    %209 = vector.shape_cast %208 : vector<1x1x128xf32> to vector<128xf32>
    %210 = vector.shape_cast %209 : vector<128xf32> to vector<1x1x128xf32>
    %211 = vector.broadcast %210 : vector<1x1x128xf32> to vector<8x16x128xf32>
    %212 = arith.mulf %207, %211 : vector<8x16x128xf32>
    %213 = arith.addf %206, %212 : vector<8x16x128xf32>
    %214 = vector.extract_strided_slice %34 {offsets = [3, 0, 0], sizes = [8, 16, 128], strides = [1, 1, 1]} : vector<14x16x128xf32> to vector<8x16x128xf32>
    %215 = vector.extract_strided_slice %28 {offsets = [3, 3, 0], sizes = [1, 1, 128], strides = [1, 1, 1]} : vector<7x7x128xf32> to vector<1x1x128xf32>
    %216 = vector.shape_cast %215 : vector<1x1x128xf32> to vector<128xf32>
    %217 = vector.shape_cast %216 : vector<128xf32> to vector<1x1x128xf32>
    %218 = vector.broadcast %217 : vector<1x1x128xf32> to vector<8x16x128xf32>
    %219 = arith.mulf %214, %218 : vector<8x16x128xf32>
    %220 = arith.addf %213, %219 : vector<8x16x128xf32>
    %221 = vector.extract_strided_slice %34 {offsets = [4, 0, 0], sizes = [8, 16, 128], strides = [1, 1, 1]} : vector<14x16x128xf32> to vector<8x16x128xf32>
    %222 = vector.extract_strided_slice %28 {offsets = [4, 3, 0], sizes = [1, 1, 128], strides = [1, 1, 1]} : vector<7x7x128xf32> to vector<1x1x128xf32>
    %223 = vector.shape_cast %222 : vector<1x1x128xf32> to vector<128xf32>
    %224 = vector.shape_cast %223 : vector<128xf32> to vector<1x1x128xf32>
    %225 = vector.broadcast %224 : vector<1x1x128xf32> to vector<8x16x128xf32>
    %226 = arith.mulf %221, %225 : vector<8x16x128xf32>
    %227 = arith.addf %220, %226 : vector<8x16x128xf32>
    %228 = vector.extract_strided_slice %34 {offsets = [5, 0, 0], sizes = [8, 16, 128], strides = [1, 1, 1]} : vector<14x16x128xf32> to vector<8x16x128xf32>
    %229 = vector.extract_strided_slice %28 {offsets = [5, 3, 0], sizes = [1, 1, 128], strides = [1, 1, 1]} : vector<7x7x128xf32> to vector<1x1x128xf32>
    %230 = vector.shape_cast %229 : vector<1x1x128xf32> to vector<128xf32>
    %231 = vector.shape_cast %230 : vector<128xf32> to vector<1x1x128xf32>
    %232 = vector.broadcast %231 : vector<1x1x128xf32> to vector<8x16x128xf32>
    %233 = arith.mulf %228, %232 : vector<8x16x128xf32>
    %234 = arith.addf %227, %233 : vector<8x16x128xf32>
    %235 = vector.extract_strided_slice %34 {offsets = [6, 0, 0], sizes = [8, 16, 128], strides = [1, 1, 1]} : vector<14x16x128xf32> to vector<8x16x128xf32>
    %236 = vector.extract_strided_slice %28 {offsets = [6, 3, 0], sizes = [1, 1, 128], strides = [1, 1, 1]} : vector<7x7x128xf32> to vector<1x1x128xf32>
    %237 = vector.shape_cast %236 : vector<1x1x128xf32> to vector<128xf32>
    %238 = vector.shape_cast %237 : vector<128xf32> to vector<1x1x128xf32>
    %239 = vector.broadcast %238 : vector<1x1x128xf32> to vector<8x16x128xf32>
    %240 = arith.mulf %235, %239 : vector<8x16x128xf32>
    %241 = arith.addf %234, %240 : vector<8x16x128xf32>
    %242 = vector.extract_strided_slice %34 {offsets = [0, 1, 0], sizes = [14, 15, 128], strides = [1, 1, 1]} : vector<14x16x128xf32> to vector<14x15x128xf32>
    %cst_23 = arith.constant 0.000000e+00 : f32
    %243 = vector.broadcast %cst_23 : f32 to vector<14x1x128xf32>
    %244 = tpu.concatenate %242, %243 in 1 : vector<14x15x128xf32>, vector<14x1x128xf32> -> vector<14x16x128xf32>
    %245 = vector.extract_strided_slice %244 {offsets = [0, 0, 0], sizes = [8, 16, 128], strides = [1, 1, 1]} : vector<14x16x128xf32> to vector<8x16x128xf32>
    %246 = vector.extract_strided_slice %28 {offsets = [0, 4, 0], sizes = [1, 1, 128], strides = [1, 1, 1]} : vector<7x7x128xf32> to vector<1x1x128xf32>
    %247 = vector.shape_cast %246 : vector<1x1x128xf32> to vector<128xf32>
    %248 = vector.shape_cast %247 : vector<128xf32> to vector<1x1x128xf32>
    %249 = vector.broadcast %248 : vector<1x1x128xf32> to vector<8x16x128xf32>
    %250 = arith.mulf %245, %249 : vector<8x16x128xf32>
    %251 = arith.addf %241, %250 : vector<8x16x128xf32>
    %252 = vector.extract_strided_slice %244 {offsets = [1, 0, 0], sizes = [8, 16, 128], strides = [1, 1, 1]} : vector<14x16x128xf32> to vector<8x16x128xf32>
    %253 = vector.extract_strided_slice %28 {offsets = [1, 4, 0], sizes = [1, 1, 128], strides = [1, 1, 1]} : vector<7x7x128xf32> to vector<1x1x128xf32>
    %254 = vector.shape_cast %253 : vector<1x1x128xf32> to vector<128xf32>
    %255 = vector.shape_cast %254 : vector<128xf32> to vector<1x1x128xf32>
    %256 = vector.broadcast %255 : vector<1x1x128xf32> to vector<8x16x128xf32>
    %257 = arith.mulf %252, %256 : vector<8x16x128xf32>
    %258 = arith.addf %251, %257 : vector<8x16x128xf32>
    %259 = vector.extract_strided_slice %244 {offsets = [2, 0, 0], sizes = [8, 16, 128], strides = [1, 1, 1]} : vector<14x16x128xf32> to vector<8x16x128xf32>
    %260 = vector.extract_strided_slice %28 {offsets = [2, 4, 0], sizes = [1, 1, 128], strides = [1, 1, 1]} : vector<7x7x128xf32> to vector<1x1x128xf32>
    %261 = vector.shape_cast %260 : vector<1x1x128xf32> to vector<128xf32>
    %262 = vector.shape_cast %261 : vector<128xf32> to vector<1x1x128xf32>
    %263 = vector.broadcast %262 : vector<1x1x128xf32> to vector<8x16x128xf32>
    %264 = arith.mulf %259, %263 : vector<8x16x128xf32>
    %265 = arith.addf %258, %264 : vector<8x16x128xf32>
    %266 = vector.extract_strided_slice %244 {offsets = [3, 0, 0], sizes = [8, 16, 128], strides = [1, 1, 1]} : vector<14x16x128xf32> to vector<8x16x128xf32>
    %267 = vector.extract_strided_slice %28 {offsets = [3, 4, 0], sizes = [1, 1, 128], strides = [1, 1, 1]} : vector<7x7x128xf32> to vector<1x1x128xf32>
    %268 = vector.shape_cast %267 : vector<1x1x128xf32> to vector<128xf32>
    %269 = vector.shape_cast %268 : vector<128xf32> to vector<1x1x128xf32>
    %270 = vector.broadcast %269 : vector<1x1x128xf32> to vector<8x16x128xf32>
    %271 = arith.mulf %266, %270 : vector<8x16x128xf32>
    %272 = arith.addf %265, %271 : vector<8x16x128xf32>
    %273 = vector.extract_strided_slice %244 {offsets = [4, 0, 0], sizes = [8, 16, 128], strides = [1, 1, 1]} : vector<14x16x128xf32> to vector<8x16x128xf32>
    %274 = vector.extract_strided_slice %28 {offsets = [4, 4, 0], sizes = [1, 1, 128], strides = [1, 1, 1]} : vector<7x7x128xf32> to vector<1x1x128xf32>
    %275 = vector.shape_cast %274 : vector<1x1x128xf32> to vector<128xf32>
    %276 = vector.shape_cast %275 : vector<128xf32> to vector<1x1x128xf32>
    %277 = vector.broadcast %276 : vector<1x1x128xf32> to vector<8x16x128xf32>
    %278 = arith.mulf %273, %277 : vector<8x16x128xf32>
    %279 = arith.addf %272, %278 : vector<8x16x128xf32>
    %280 = vector.extract_strided_slice %244 {offsets = [5, 0, 0], sizes = [8, 16, 128], strides = [1, 1, 1]} : vector<14x16x128xf32> to vector<8x16x128xf32>
    %281 = vector.extract_strided_slice %28 {offsets = [5, 4, 0], sizes = [1, 1, 128], strides = [1, 1, 1]} : vector<7x7x128xf32> to vector<1x1x128xf32>
    %282 = vector.shape_cast %281 : vector<1x1x128xf32> to vector<128xf32>
    %283 = vector.shape_cast %282 : vector<128xf32> to vector<1x1x128xf32>
    %284 = vector.broadcast %283 : vector<1x1x128xf32> to vector<8x16x128xf32>
    %285 = arith.mulf %280, %284 : vector<8x16x128xf32>
    %286 = arith.addf %279, %285 : vector<8x16x128xf32>
    %287 = vector.extract_strided_slice %244 {offsets = [6, 0, 0], sizes = [8, 16, 128], strides = [1, 1, 1]} : vector<14x16x128xf32> to vector<8x16x128xf32>
    %288 = vector.extract_strided_slice %28 {offsets = [6, 4, 0], sizes = [1, 1, 128], strides = [1, 1, 1]} : vector<7x7x128xf32> to vector<1x1x128xf32>
    %289 = vector.shape_cast %288 : vector<1x1x128xf32> to vector<128xf32>
    %290 = vector.shape_cast %289 : vector<128xf32> to vector<1x1x128xf32>
    %291 = vector.broadcast %290 : vector<1x1x128xf32> to vector<8x16x128xf32>
    %292 = arith.mulf %287, %291 : vector<8x16x128xf32>
    %293 = arith.addf %286, %292 : vector<8x16x128xf32>
    %294 = vector.extract_strided_slice %34 {offsets = [0, 2, 0], sizes = [14, 14, 128], strides = [1, 1, 1]} : vector<14x16x128xf32> to vector<14x14x128xf32>
    %cst_24 = arith.constant 0.000000e+00 : f32
    %295 = vector.broadcast %cst_24 : f32 to vector<14x2x128xf32>
    %296 = tpu.concatenate %294, %295 in 1 : vector<14x14x128xf32>, vector<14x2x128xf32> -> vector<14x16x128xf32>
    %297 = vector.extract_strided_slice %296 {offsets = [0, 0, 0], sizes = [8, 16, 128], strides = [1, 1, 1]} : vector<14x16x128xf32> to vector<8x16x128xf32>
    %298 = vector.extract_strided_slice %28 {offsets = [0, 5, 0], sizes = [1, 1, 128], strides = [1, 1, 1]} : vector<7x7x128xf32> to vector<1x1x128xf32>
    %299 = vector.shape_cast %298 : vector<1x1x128xf32> to vector<128xf32>
    %300 = vector.shape_cast %299 : vector<128xf32> to vector<1x1x128xf32>
    %301 = vector.broadcast %300 : vector<1x1x128xf32> to vector<8x16x128xf32>
    %302 = arith.mulf %297, %301 : vector<8x16x128xf32>
    %303 = arith.addf %293, %302 : vector<8x16x128xf32>
    %304 = vector.extract_strided_slice %296 {offsets = [1, 0, 0], sizes = [8, 16, 128], strides = [1, 1, 1]} : vector<14x16x128xf32> to vector<8x16x128xf32>
    %305 = vector.extract_strided_slice %28 {offsets = [1, 5, 0], sizes = [1, 1, 128], strides = [1, 1, 1]} : vector<7x7x128xf32> to vector<1x1x128xf32>
    %306 = vector.shape_cast %305 : vector<1x1x128xf32> to vector<128xf32>
    %307 = vector.shape_cast %306 : vector<128xf32> to vector<1x1x128xf32>
    %308 = vector.broadcast %307 : vector<1x1x128xf32> to vector<8x16x128xf32>
    %309 = arith.mulf %304, %308 : vector<8x16x128xf32>
    %310 = arith.addf %303, %309 : vector<8x16x128xf32>
    %311 = vector.extract_strided_slice %296 {offsets = [2, 0, 0], sizes = [8, 16, 128], strides = [1, 1, 1]} : vector<14x16x128xf32> to vector<8x16x128xf32>
    %312 = vector.extract_strided_slice %28 {offsets = [2, 5, 0], sizes = [1, 1, 128], strides = [1, 1, 1]} : vector<7x7x128xf32> to vector<1x1x128xf32>
    %313 = vector.shape_cast %312 : vector<1x1x128xf32> to vector<128xf32>
    %314 = vector.shape_cast %313 : vector<128xf32> to vector<1x1x128xf32>
    %315 = vector.broadcast %314 : vector<1x1x128xf32> to vector<8x16x128xf32>
    %316 = arith.mulf %311, %315 : vector<8x16x128xf32>
    %317 = arith.addf %310, %316 : vector<8x16x128xf32>
    %318 = vector.extract_strided_slice %296 {offsets = [3, 0, 0], sizes = [8, 16, 128], strides = [1, 1, 1]} : vector<14x16x128xf32> to vector<8x16x128xf32>
    %319 = vector.extract_strided_slice %28 {offsets = [3, 5, 0], sizes = [1, 1, 128], strides = [1, 1, 1]} : vector<7x7x128xf32> to vector<1x1x128xf32>
    %320 = vector.shape_cast %319 : vector<1x1x128xf32> to vector<128xf32>
    %321 = vector.shape_cast %320 : vector<128xf32> to vector<1x1x128xf32>
    %322 = vector.broadcast %321 : vector<1x1x128xf32> to vector<8x16x128xf32>
    %323 = arith.mulf %318, %322 : vector<8x16x128xf32>
    %324 = arith.addf %317, %323 : vector<8x16x128xf32>
    %325 = vector.extract_strided_slice %296 {offsets = [4, 0, 0], sizes = [8, 16, 128], strides = [1, 1, 1]} : vector<14x16x128xf32> to vector<8x16x128xf32>
    %326 = vector.extract_strided_slice %28 {offsets = [4, 5, 0], sizes = [1, 1, 128], strides = [1, 1, 1]} : vector<7x7x128xf32> to vector<1x1x128xf32>
    %327 = vector.shape_cast %326 : vector<1x1x128xf32> to vector<128xf32>
    %328 = vector.shape_cast %327 : vector<128xf32> to vector<1x1x128xf32>
    %329 = vector.broadcast %328 : vector<1x1x128xf32> to vector<8x16x128xf32>
    %330 = arith.mulf %325, %329 : vector<8x16x128xf32>
    %331 = arith.addf %324, %330 : vector<8x16x128xf32>
    %332 = vector.extract_strided_slice %296 {offsets = [5, 0, 0], sizes = [8, 16, 128], strides = [1, 1, 1]} : vector<14x16x128xf32> to vector<8x16x128xf32>
    %333 = vector.extract_strided_slice %28 {offsets = [5, 5, 0], sizes = [1, 1, 128], strides = [1, 1, 1]} : vector<7x7x128xf32> to vector<1x1x128xf32>
    %334 = vector.shape_cast %333 : vector<1x1x128xf32> to vector<128xf32>
    %335 = vector.shape_cast %334 : vector<128xf32> to vector<1x1x128xf32>
    %336 = vector.broadcast %335 : vector<1x1x128xf32> to vector<8x16x128xf32>
    %337 = arith.mulf %332, %336 : vector<8x16x128xf32>
    %338 = arith.addf %331, %337 : vector<8x16x128xf32>
    %339 = vector.extract_strided_slice %296 {offsets = [6, 0, 0], sizes = [8, 16, 128], strides = [1, 1, 1]} : vector<14x16x128xf32> to vector<8x16x128xf32>
    %340 = vector.extract_strided_slice %28 {offsets = [6, 5, 0], sizes = [1, 1, 128], strides = [1, 1, 1]} : vector<7x7x128xf32> to vector<1x1x128xf32>
    %341 = vector.shape_cast %340 : vector<1x1x128xf32> to vector<128xf32>
    %342 = vector.shape_cast %341 : vector<128xf32> to vector<1x1x128xf32>
    %343 = vector.broadcast %342 : vector<1x1x128xf32> to vector<8x16x128xf32>
    %344 = arith.mulf %339, %343 : vector<8x16x128xf32>
    %345 = arith.addf %338, %344 : vector<8x16x128xf32>
    %346 = vector.extract_strided_slice %34 {offsets = [0, 3, 0], sizes = [14, 13, 128], strides = [1, 1, 1]} : vector<14x16x128xf32> to vector<14x13x128xf32>
    %cst_25 = arith.constant 0.000000e+00 : f32
    %347 = vector.broadcast %cst_25 : f32 to vector<14x3x128xf32>
    %348 = tpu.concatenate %346, %347 in 1 : vector<14x13x128xf32>, vector<14x3x128xf32> -> vector<14x16x128xf32>
    %349 = vector.extract_strided_slice %348 {offsets = [0, 0, 0], sizes = [8, 16, 128], strides = [1, 1, 1]} : vector<14x16x128xf32> to vector<8x16x128xf32>
    %350 = vector.extract_strided_slice %28 {offsets = [0, 6, 0], sizes = [1, 1, 128], strides = [1, 1, 1]} : vector<7x7x128xf32> to vector<1x1x128xf32>
    %351 = vector.shape_cast %350 : vector<1x1x128xf32> to vector<128xf32>
    %352 = vector.shape_cast %351 : vector<128xf32> to vector<1x1x128xf32>
    %353 = vector.broadcast %352 : vector<1x1x128xf32> to vector<8x16x128xf32>
    %354 = arith.mulf %349, %353 : vector<8x16x128xf32>
    %355 = arith.addf %345, %354 : vector<8x16x128xf32>
    %356 = vector.extract_strided_slice %348 {offsets = [1, 0, 0], sizes = [8, 16, 128], strides = [1, 1, 1]} : vector<14x16x128xf32> to vector<8x16x128xf32>
    %357 = vector.extract_strided_slice %28 {offsets = [1, 6, 0], sizes = [1, 1, 128], strides = [1, 1, 1]} : vector<7x7x128xf32> to vector<1x1x128xf32>
    %358 = vector.shape_cast %357 : vector<1x1x128xf32> to vector<128xf32>
    %359 = vector.shape_cast %358 : vector<128xf32> to vector<1x1x128xf32>
    %360 = vector.broadcast %359 : vector<1x1x128xf32> to vector<8x16x128xf32>
    %361 = arith.mulf %356, %360 : vector<8x16x128xf32>
    %362 = arith.addf %355, %361 : vector<8x16x128xf32>
    %363 = vector.extract_strided_slice %348 {offsets = [2, 0, 0], sizes = [8, 16, 128], strides = [1, 1, 1]} : vector<14x16x128xf32> to vector<8x16x128xf32>
    %364 = vector.extract_strided_slice %28 {offsets = [2, 6, 0], sizes = [1, 1, 128], strides = [1, 1, 1]} : vector<7x7x128xf32> to vector<1x1x128xf32>
    %365 = vector.shape_cast %364 : vector<1x1x128xf32> to vector<128xf32>
    %366 = vector.shape_cast %365 : vector<128xf32> to vector<1x1x128xf32>
    %367 = vector.broadcast %366 : vector<1x1x128xf32> to vector<8x16x128xf32>
    %368 = arith.mulf %363, %367 : vector<8x16x128xf32>
    %369 = arith.addf %362, %368 : vector<8x16x128xf32>
    %370 = vector.extract_strided_slice %348 {offsets = [3, 0, 0], sizes = [8, 16, 128], strides = [1, 1, 1]} : vector<14x16x128xf32> to vector<8x16x128xf32>
    %371 = vector.extract_strided_slice %28 {offsets = [3, 6, 0], sizes = [1, 1, 128], strides = [1, 1, 1]} : vector<7x7x128xf32> to vector<1x1x128xf32>
    %372 = vector.shape_cast %371 : vector<1x1x128xf32> to vector<128xf32>
    %373 = vector.shape_cast %372 : vector<128xf32> to vector<1x1x128xf32>
    %374 = vector.broadcast %373 : vector<1x1x128xf32> to vector<8x16x128xf32>
    %375 = arith.mulf %370, %374 : vector<8x16x128xf32>
    %376 = arith.addf %369, %375 : vector<8x16x128xf32>
    %377 = vector.extract_strided_slice %348 {offsets = [4, 0, 0], sizes = [8, 16, 128], strides = [1, 1, 1]} : vector<14x16x128xf32> to vector<8x16x128xf32>
    %378 = vector.extract_strided_slice %28 {offsets = [4, 6, 0], sizes = [1, 1, 128], strides = [1, 1, 1]} : vector<7x7x128xf32> to vector<1x1x128xf32>
    %379 = vector.shape_cast %378 : vector<1x1x128xf32> to vector<128xf32>
    %380 = vector.shape_cast %379 : vector<128xf32> to vector<1x1x128xf32>
    %381 = vector.broadcast %380 : vector<1x1x128xf32> to vector<8x16x128xf32>
    %382 = arith.mulf %377, %381 : vector<8x16x128xf32>
    %383 = arith.addf %376, %382 : vector<8x16x128xf32>
    %384 = vector.extract_strided_slice %348 {offsets = [5, 0, 0], sizes = [8, 16, 128], strides = [1, 1, 1]} : vector<14x16x128xf32> to vector<8x16x128xf32>
    %385 = vector.extract_strided_slice %28 {offsets = [5, 6, 0], sizes = [1, 1, 128], strides = [1, 1, 1]} : vector<7x7x128xf32> to vector<1x1x128xf32>
    %386 = vector.shape_cast %385 : vector<1x1x128xf32> to vector<128xf32>
    %387 = vector.shape_cast %386 : vector<128xf32> to vector<1x1x128xf32>
    %388 = vector.broadcast %387 : vector<1x1x128xf32> to vector<8x16x128xf32>
    %389 = arith.mulf %384, %388 : vector<8x16x128xf32>
    %390 = arith.addf %383, %389 : vector<8x16x128xf32>
    %391 = vector.extract_strided_slice %348 {offsets = [6, 0, 0], sizes = [8, 16, 128], strides = [1, 1, 1]} : vector<14x16x128xf32> to vector<8x16x128xf32>
    %392 = vector.extract_strided_slice %28 {offsets = [6, 6, 0], sizes = [1, 1, 128], strides = [1, 1, 1]} : vector<7x7x128xf32> to vector<1x1x128xf32>
    %393 = vector.shape_cast %392 : vector<1x1x128xf32> to vector<128xf32>
    %394 = vector.shape_cast %393 : vector<128xf32> to vector<1x1x128xf32>
    %395 = vector.broadcast %394 : vector<1x1x128xf32> to vector<8x16x128xf32>
    %396 = arith.mulf %391, %395 : vector<8x16x128xf32>
    %397 = arith.addf %390, %396 : vector<8x16x128xf32>
    %c2_i32_26 = arith.constant 2 : i32
    %398 = arith.cmpi sge, %arg1, %c2_i32_26 : i32
    %399 = arith.extui %398 : i1 to i32
    %c0_i32_27 = arith.constant 0 : i32
    %400 = arith.cmpi ne, %399, %c0_i32_27 : i32
    scf.if %400 {
      %c2_i32_39 = arith.constant 2 : i32
      %420 = arith.subi %arg1, %c2_i32_39 : i32
      %c128_i32_40 = arith.constant 128 : i32
      %421 = arith.muli %420, %c128_i32_40 : i32
      %c1_i32_41 = arith.constant 1 : i32
      %422 = arith.addi %c1_i32_41, %421 : i32
      %c0_i32_42 = arith.constant 0 : i32
      %c0_i32_43 = arith.constant 0 : i32
      %423 = tpu.memref_slice %arg7[%0, %c0_i32_42, %c0_i32_43] : memref<2x128x128xf32, #tpu.memory_space<vmem>> -> memref<1x128x128xf32, #tpu.memory_space<vmem>>
      %424 = tpu.memref_squeeze %423 : memref<1x128x128xf32, #tpu.memory_space<vmem>> -> memref<128x128xf32, #tpu.memory_space<vmem>>
      %c0_i32_44 = arith.constant 0 : i32
      %425 = tpu.memref_slice %arg5[%arg0, %422, %c0_i32_44] : memref<2x257x128xf32, #tpu.memory_space<any>> -> memref<1x128x128xf32, #tpu.memory_space<any>>
      %426 = tpu.memref_squeeze %425 : memref<1x128x128xf32, #tpu.memory_space<any>> -> memref<128x128xf32, #tpu.memory_space<any>>
      %427 = tpu.memref_slice %arg10[%0] : memref<2x!tpu.dma_semaphore, #tpu.memory_space<semaphore_mem>> -> memref<1x!tpu.dma_semaphore, #tpu.memory_space<semaphore_mem>>
      %428 = tpu.memref_squeeze %427 : memref<1x!tpu.dma_semaphore, #tpu.memory_space<semaphore_mem>> -> memref<!tpu.dma_semaphore, #tpu.memory_space<semaphore_mem>>
      tpu.wait_dma2 semaphore(%428 : memref<!tpu.dma_semaphore, #tpu.memory_space<semaphore_mem>>) src(%424 : memref<128x128xf32, #tpu.memory_space<vmem>>) dst(%426 : memref<128x128xf32, #tpu.memory_space<any>>)
    } else {
    }
    %401 = vector.shape_cast %397 : vector<8x16x128xf32> to vector<128x128xf32>
    %402 = arith.index_cast %0 : i32 to index
    %c0_28 = arith.constant 0 : index
    %c0_29 = arith.constant 0 : index
    %403 = vector.load %arg7[%402, %c0_28, %c0_29] : memref<2x128x128xf32, #tpu.memory_space<vmem>>, vector<1x128x128xf32>
    %404 = vector.shape_cast %403 : vector<1x128x128xf32> to vector<128x128xf32>
    %405 = vector.shape_cast %401 : vector<128x128xf32> to vector<1x128x128xf32>
    tpu.vector_store %arg7[%402, %c0_28, %c0_29], %405 {strides = array<i32>} : memref<2x128x128xf32, #tpu.memory_space<vmem>>, vector<1x128x128xf32>,
    %c128_i32_30 = arith.constant 128 : i32
    %406 = arith.muli %arg1, %c128_i32_30 : i32
    %c1_i32_31 = arith.constant 1 : i32
    %407 = arith.addi %c1_i32_31, %406 : i32
    %c0_i32_32 = arith.constant 0 : i32
    %c0_i32_33 = arith.constant 0 : i32
    %408 = tpu.memref_slice %arg7[%0, %c0_i32_32, %c0_i32_33] : memref<2x128x128xf32, #tpu.memory_space<vmem>> -> memref<1x128x128xf32, #tpu.memory_space<vmem>>
    %409 = tpu.memref_squeeze %408 : memref<1x128x128xf32, #tpu.memory_space<vmem>> -> memref<128x128xf32, #tpu.memory_space<vmem>>
    %c0_i32_34 = arith.constant 0 : i32
    %410 = tpu.memref_slice %arg5[%arg0, %407, %c0_i32_34] : memref<2x257x128xf32, #tpu.memory_space<any>> -> memref<1x128x128xf32, #tpu.memory_space<any>>
    %411 = tpu.memref_squeeze %410 : memref<1x128x128xf32, #tpu.memory_space<any>> -> memref<128x128xf32, #tpu.memory_space<any>>
    %412 = tpu.memref_slice %arg10[%0] : memref<2x!tpu.dma_semaphore, #tpu.memory_space<semaphore_mem>> -> memref<1x!tpu.dma_semaphore, #tpu.memory_space<semaphore_mem>>
    %413 = tpu.memref_squeeze %412 : memref<1x!tpu.dma_semaphore, #tpu.memory_space<semaphore_mem>> -> memref<!tpu.dma_semaphore, #tpu.memory_space<semaphore_mem>>
    tpu.enqueue_dma source(%409 : memref<128x128xf32, #tpu.memory_space<vmem>>) target(%411 : memref<128x128xf32, #tpu.memory_space<any>>) target_semaphore(%413 : memref<!tpu.dma_semaphore, #tpu.memory_space<semaphore_mem>>)
    %c0_i32_35 = arith.constant 0 : i32
    %414 = arith.cmpi eq, %arg1, %c0_i32_35 : i32
    %415 = arith.extui %414 : i1 to i32
    %c0_i32_36 = arith.constant 0 : i32
    %416 = arith.cmpi ne, %415, %c0_i32_36 : i32
    scf.if %416 {
      %c0_i32_39 = arith.constant 0 : i32
      %c0_i32_40 = arith.constant 0 : i32
      %c0_i32_41 = arith.constant 0 : i32
      %420 = tpu.memref_slice %arg2[%arg0, %c0_i32_40, %c0_i32_41] : memref<2x257x128xf32, #tpu.memory_space<any>> -> memref<1x1x128xf32, #tpu.memory_space<any>>
      %421 = tpu.memref_squeeze %420 : memref<1x1x128xf32, #tpu.memory_space<any>> -> memref<1x128xf32, #tpu.memory_space<any>>
      %422 = tpu.memref_slice %arg11[%c0_i32_39] : memref<2x!tpu.dma_semaphore, #tpu.memory_space<semaphore_mem>> -> memref<1x!tpu.dma_semaphore, #tpu.memory_space<semaphore_mem>>
      %423 = tpu.memref_squeeze %422 : memref<1x!tpu.dma_semaphore, #tpu.memory_space<semaphore_mem>> -> memref<!tpu.dma_semaphore, #tpu.memory_space<semaphore_mem>>
      tpu.wait_dma2 semaphore(%423 : memref<!tpu.dma_semaphore, #tpu.memory_space<semaphore_mem>>) src(%421 : memref<1x128xf32, #tpu.memory_space<any>>) dst(%arg8 : memref<1x128xf32, #tpu.memory_space<vmem>>)
      %c1_i32_42 = arith.constant 1 : i32
      %c0_i32_43 = arith.constant 0 : i32
      %c0_i32_44 = arith.constant 0 : i32
      %424 = tpu.memref_slice %arg5[%arg0, %c0_i32_43, %c0_i32_44] : memref<2x257x128xf32, #tpu.memory_space<any>> -> memref<1x1x128xf32, #tpu.memory_space<any>>
      %425 = tpu.memref_squeeze %424 : memref<1x1x128xf32, #tpu.memory_space<any>> -> memref<1x128xf32, #tpu.memory_space<any>>
      %426 = tpu.memref_slice %arg11[%c1_i32_42] : memref<2x!tpu.dma_semaphore, #tpu.memory_space<semaphore_mem>> -> memref<1x!tpu.dma_semaphore, #tpu.memory_space<semaphore_mem>>
      %427 = tpu.memref_squeeze %426 : memref<1x!tpu.dma_semaphore, #tpu.memory_space<semaphore_mem>> -> memref<!tpu.dma_semaphore, #tpu.memory_space<semaphore_mem>>
      tpu.enqueue_dma source(%arg8 : memref<1x128xf32, #tpu.memory_space<vmem>>) target(%425 : memref<1x128xf32, #tpu.memory_space<any>>) target_semaphore(%427 : memref<!tpu.dma_semaphore, #tpu.memory_space<semaphore_mem>>)
      %c1_i32_45 = arith.constant 1 : i32
      %c0_i32_46 = arith.constant 0 : i32
      %c0_i32_47 = arith.constant 0 : i32
      %428 = tpu.memref_slice %arg5[%arg0, %c0_i32_46, %c0_i32_47] : memref<2x257x128xf32, #tpu.memory_space<any>> -> memref<1x1x128xf32, #tpu.memory_space<any>>
      %429 = tpu.memref_squeeze %428 : memref<1x1x128xf32, #tpu.memory_space<any>> -> memref<1x128xf32, #tpu.memory_space<any>>
      %430 = tpu.memref_slice %arg11[%c1_i32_45] : memref<2x!tpu.dma_semaphore, #tpu.memory_space<semaphore_mem>> -> memref<1x!tpu.dma_semaphore, #tpu.memory_space<semaphore_mem>>
      %431 = tpu.memref_squeeze %430 : memref<1x!tpu.dma_semaphore, #tpu.memory_space<semaphore_mem>> -> memref<!tpu.dma_semaphore, #tpu.memory_space<semaphore_mem>>
      tpu.wait_dma2 semaphore(%431 : memref<!tpu.dma_semaphore, #tpu.memory_space<semaphore_mem>>) src(%arg8 : memref<1x128xf32, #tpu.memory_space<vmem>>) dst(%429 : memref<1x128xf32, #tpu.memory_space<any>>)
    } else {
    }
    %c1_i32_37 = arith.constant 1 : i32
    %417 = arith.cmpi eq, %arg1, %c1_i32_37 : i32
    %418 = arith.extui %417 : i1 to i32
    %c0_i32_38 = arith.constant 0 : i32
    %419 = arith.cmpi ne, %418, %c0_i32_38 : i32
    scf.if %419 {
      %c1_i32_39 = arith.constant 1 : i32
      %420 = arith.cmpi sge, %arg1, %c1_i32_39 : i32
      %421 = arith.extui %420 : i1 to i32
      %c0_i32_40 = arith.constant 0 : i32
      %422 = arith.cmpi ne, %421, %c0_i32_40 : i32
      scf.if %422 {
        %c1_i32_46 = arith.constant 1 : i32
        %431 = arith.subi %arg1, %c1_i32_46 : i32
        %c1_i32_47 = arith.constant 1 : i32
        %432 = arith.subi %c1_i32_47, %0 : i32
        %c128_i32_48 = arith.constant 128 : i32
        %433 = arith.muli %431, %c128_i32_48 : i32
        %c1_i32_49 = arith.constant 1 : i32
        %434 = arith.addi %c1_i32_49, %433 : i32
        %c0_i32_50 = arith.constant 0 : i32
        %c0_i32_51 = arith.constant 0 : i32
        %435 = tpu.memref_slice %arg7[%432, %c0_i32_50, %c0_i32_51] : memref<2x128x128xf32, #tpu.memory_space<vmem>> -> memref<1x128x128xf32, #tpu.memory_space<vmem>>
        %436 = tpu.memref_squeeze %435 : memref<1x128x128xf32, #tpu.memory_space<vmem>> -> memref<128x128xf32, #tpu.memory_space<vmem>>
        %c0_i32_52 = arith.constant 0 : i32
        %437 = tpu.memref_slice %arg5[%arg0, %434, %c0_i32_52] : memref<2x257x128xf32, #tpu.memory_space<any>> -> memref<1x128x128xf32, #tpu.memory_space<any>>
        %438 = tpu.memref_squeeze %437 : memref<1x128x128xf32, #tpu.memory_space<any>> -> memref<128x128xf32, #tpu.memory_space<any>>
        %439 = tpu.memref_slice %arg10[%432] : memref<2x!tpu.dma_semaphore, #tpu.memory_space<semaphore_mem>> -> memref<1x!tpu.dma_semaphore, #tpu.memory_space<semaphore_mem>>
        %440 = tpu.memref_squeeze %439 : memref<1x!tpu.dma_semaphore, #tpu.memory_space<semaphore_mem>> -> memref<!tpu.dma_semaphore, #tpu.memory_space<semaphore_mem>>
        tpu.wait_dma2 semaphore(%440 : memref<!tpu.dma_semaphore, #tpu.memory_space<semaphore_mem>>) src(%436 : memref<128x128xf32, #tpu.memory_space<vmem>>) dst(%438 : memref<128x128xf32, #tpu.memory_space<any>>)
      } else {
      }
      %c128_i32_41 = arith.constant 128 : i32
      %423 = arith.muli %arg1, %c128_i32_41 : i32
      %c1_i32_42 = arith.constant 1 : i32
      %424 = arith.addi %c1_i32_42, %423 : i32
      %c0_i32_43 = arith.constant 0 : i32
      %c0_i32_44 = arith.constant 0 : i32
      %425 = tpu.memref_slice %arg7[%0, %c0_i32_43, %c0_i32_44] : memref<2x128x128xf32, #tpu.memory_space<vmem>> -> memref<1x128x128xf32, #tpu.memory_space<vmem>>
      %426 = tpu.memref_squeeze %425 : memref<1x128x128xf32, #tpu.memory_space<vmem>> -> memref<128x128xf32, #tpu.memory_space<vmem>>
      %c0_i32_45 = arith.constant 0 : i32
      %427 = tpu.memref_slice %arg5[%arg0, %424, %c0_i32_45] : memref<2x257x128xf32, #tpu.memory_space<any>> -> memref<1x128x128xf32, #tpu.memory_space<any>>
      %428 = tpu.memref_squeeze %427 : memref<1x128x128xf32, #tpu.memory_space<any>> -> memref<128x128xf32, #tpu.memory_space<any>>
      %429 = tpu.memref_slice %arg10[%0] : memref<2x!tpu.dma_semaphore, #tpu.memory_space<semaphore_mem>> -> memref<1x!tpu.dma_semaphore, #tpu.memory_space<semaphore_mem>>
      %430 = tpu.memref_squeeze %429 : memref<1x!tpu.dma_semaphore, #tpu.memory_space<semaphore_mem>> -> memref<!tpu.dma_semaphore, #tpu.memory_space<semaphore_mem>>
      tpu.wait_dma2 semaphore(%430 : memref<!tpu.dma_semaphore, #tpu.memory_space<semaphore_mem>>) src(%426 : memref<128x128xf32, #tpu.memory_space<vmem>>) dst(%428 : memref<128x128xf32, #tpu.memory_space<any>>)
    } else {
    }
    return
  }
  func.func @transform_1(%arg0: i32, %arg1: i32) -> (i32, i32, i32) {
    %c0_i32 = arith.constant 0 : i32
    %c0_i32_0 = arith.constant 0 : i32
    %c0_i32_1 = arith.constant 0 : i32
    %c0_i32_2 = arith.constant 0 : i32
    return %c0_i32, %c0_i32_0, %c0_i32_1 : i32, i32, i32
  }
  func.func @transform_2(%arg0: i32, %arg1: i32) -> (i32, i32) {
    %c0_i32 = arith.constant 0 : i32
    %c0_i32_0 = arith.constant 0 : i32
    %c0_i32_1 = arith.constant 0 : i32
    return %c0_i32, %c0_i32_0 : i32, i32
  }
}

</mosaic_0001>

<bundles_post_ra>
// kernel: ppeg_forward.1
= control target key start
LH: loop header
LB: loop body
LE: loop exit
PB: predicated region body
PF: predicated region fallthrough
CT: control target
= control target key end

     0   :  { %s3777_s12 = smov 0   ;;  %s3779_s13 = smov 0   ;;  %s6829_s0 = inlined_call_operand.vmem [shape: f32[2,257,128], index: 0, kind: input, shape index: {}]   ;;  %s6830_s1 = inlined_call_operand.vmem [shape: f32[7,7,128], index: 1, kind: input, shape index: {}]   ;;  %s6831_s2 = inlined_call_operand.vmem [shape: f32[1,128], index: 2, kind: input, shape index: {}]   ;;  %s6832_s3 = inlined_call_operand.vmem [shape: f32[2,257,128], index: 3, kind: output, shape index: {}]  }
   0x1   :  { %s3781_s14 = smov 0   ;;  %s3783_s15 = smov 0  }
   0x2   :  { %s3785_s16 = smov 0  }
   0x3 LB: > { %s19_s17 = sadd.s32 1, %s3745_s14  ;;  %s22_s18 = sadd.s32 1, %s3749_s15  ;;  %s3753_s16 = sphi %s3785_s16, %s13_s16   ;;  %s3749_s15 = sphi %s3783_s15, %s7549_s15   ;;  %s3745_s14 = sphi %s3781_s14, %s7548_s14   ;;  %s3741_s13 = sphi %s3779_s13, %s7547_s13   ;;  %s3737_s12 = sphi %s3777_s12, %s7546_s12  }
   0x4   : > { %p20_p0 = scmp.ge.s32.totalorder %s19_s17, 2  ;;  %p3367_p2 = scmp.lt.s32.totalorder %s3753_s16, 1 }
   0x6   : > { %s7551_s17 = smov (%p20_p0, %s19_s17), 0  ;;  %s7553_s18 = smov (!%p20_p0, %s22_s18), %s3749_s15 }
   0x7   : > { %p24_p1 = scmp.ge.s32.totalorder %s7553_s18, 2  ;;  %72 = sbr.rel (%p3367_p2) target bundleno = 658 (0x292), region = 28 }
   0x9   : > { %s7555_s18 = smov (%p24_p1, %s7553_s18), 0 }
   0xe   : > { %s3811_s19 = sand.u32 1, %s3737_s12  ;;  %p3368_p3 = scmp.ne.s32.totalorder %s3737_s12, 0 }
   0xf   : > { %s85_s20 = smul.u32 (!%p3368_p3), 264, %s3741_s13  ;;  %s3369_s21 = sshll.u32 (!%p3368_p3), %s3737_s12, 7 }
  0x10   : > { %82 = sbr.rel (%p3368_p3) target bundleno = 52 (0x34), region = 32 }
  0x11   : > { %s88_s22 = smul.u32 (!%p3368_p3), 224, %s3811_s19  ;;  %s3183_s23 = sadd.s32 (!%p3368_p3), %s3369_s21, %s85_s20 }
  0x12   : > { %s91_s24 = smul.u32 (!%p3368_p3), 3, %s3811_s19  ;;  %s3825_s27 = scalar_lea.vmem (!%p3368_p3), %s6829_s0, %s3183_s23 }
  0x13   : > { %v3370_v0 = vld [vmem:[%s3825_s27 + $0x1] sm:$0xff] (!%p3368_p3)  ;;  %v3372_v1 = vld [vmem:[%s3825_s27 + $0x9] sm:$0xff] (!%p3368_p3)  ;;  %v3374_v2 = vld [vmem:[%s3825_s27 + $0x11] sm:$0xff] (!%p3368_p3)  ;;  %s3830_s28 = scalar_lea.vmem (!%p3368_p3), [#allocation2], %s88_s22 }
  0x14   : > { %3371 = vst [vmem:[%s3830_s28 + $0x30] sm:$0xff] (!%p3368_p3), %v3370_v0  ;;  %3373 = vst [vmem:[%s3830_s28 + $0x38] sm:$0xff] (!%p3368_p3), %v3372_v1  ;;  %v3376_v3 = vld [vmem:[%s3825_s27 + $0x19] sm:$0xff] (!%p3368_p3)  ;;  %v3378_v4 = vld [vmem:[%s3825_s27 + $0x21] sm:$0xff] (!%p3368_p3)  ;;  %s3863_s29 = scalar_lea.sflag (!%p3368_p3), [#allocation5], %s91_s24 }
  0x15   : > { %3375 = vst [vmem:[%s3830_s28 + $0x40] sm:$0xff] (!%p3368_p3), %v3374_v2  ;;  %v3380_v5 = vld [vmem:[%s3825_s27 + $0x29] sm:$0xff] (!%p3368_p3)  ;;  %3377 = vst [vmem:[%s3830_s28 + $0x48] sm:$0xff] (!%p3368_p3), %v3376_v3  ;;  %v3382_v6 = vld [vmem:[%s3825_s27 + $0x31] sm:$0xff] (!%p3368_p3) }
  0x16   : > { %3379 = vst [vmem:[%s3830_s28 + $0x50] sm:$0xff] (!%p3368_p3), %v3378_v4  ;;  %3381 = vst [vmem:[%s3830_s28 + $0x58] sm:$0xff] (!%p3368_p3), %v3380_v5  ;;  %v3384_v7 = vld [vmem:[%s3825_s27 + $0x39] sm:$0xff] (!%p3368_p3)  ;;  %v3386_v8 = vld [vmem:[%s3825_s27 + $0x41] sm:$0xff] (!%p3368_p3) }
  0x17   : > { %3383 = vst [vmem:[%s3830_s28 + $0x60] sm:$0xff] %v3382_v6  ;;  %3385 = vst [vmem:[%s3830_s28 + $0x68] sm:$0xff] %v3384_v7  ;;  %v3388_v9 = vld [vmem:[%s3825_s27 + $0x49] sm:$0xff]  ;;  %v3390_v10 = vld [vmem:[%s3825_s27 + $0x51] sm:$0xff] }
  0x18   : > { %3387 = vst [vmem:[%s3830_s28 + $0x70] sm:$0xff] %v3386_v8  ;;  %v3392_v11 = vld [vmem:[%s3825_s27 + $0x59] sm:$0xff]  ;;  %3389 = vst [vmem:[%s3830_s28 + $0x78] sm:$0xff] %v3388_v9  ;;  %v3394_v12 = vld [vmem:[%s3825_s27 + $0x61] sm:$0xff] }
  0x19   : > { %3391 = vst [vmem:[%s3830_s28 + $0x80] sm:$0xff] %v3390_v10  ;;  %3393 = vst [vmem:[%s3830_s28 + $0x88] sm:$0xff] %v3392_v11  ;;  %v3396_v13 = vld [vmem:[%s3825_s27 + $0x69] sm:$0xff]  ;;  %v3398_v14 = vld [vmem:[%s3825_s27 + $0x71] sm:$0xff] }
  0x1a   : > { %3395 = vst [vmem:[%s3830_s28 + $0x90] sm:$0xff] %v3394_v12  ;;  %3397 = vst [vmem:[%s3830_s28 + $0x98] sm:$0xff] %v3396_v13  ;;  %v3400_v15 = vld [vmem:[%s3825_s27 + $0x79] sm:$0xff] }
  0x1b   : > { %3399 = vst [vmem:[%s3830_s28 + $0xa0] sm:$0xff] %v3398_v14  ;;  %3401 = vst [vmem:[%s3830_s28 + $0xa8] sm:$0xff] %v3400_v15 }
  0x1c   : > { %164 = vsyncadd %s3863_s29, 2048  ;;  %p3404_p4 = scmp.le.s32.totalorder %s3737_s12, 0 }
  0x1d   : > { %s3200_s30 = scalar_lea.sflag (!%p3404_p4), %s3863_s29, 1 [#allocation5]  ;;  %v3406_v16 = vld [vmem:[%s3825_s27 - $0x2f] sm:$0xff] (!%p3404_p4)  ;;  %v3407_v17 = vld [vmem:[%s3825_s27 - $0x27] sm:$0xff] (!%p3404_p4)  ;;  %v3408_v18 = vld [vmem:[%s3825_s27 - $0x1f] sm:$0xff] (!%p3404_p4) }
  0x1e   : > { %168 = sbr.rel (%p3404_p4) target bundleno = 38 (0x26), region = 70  ;;  %208 = vst [vmem:[%s3830_s28] sm:$0xff] (!%p3404_p4), %v3406_v16  ;;  %210 = vst [vmem:[%s3830_s28 + $0x8] sm:$0xff] (!%p3404_p4), %v3407_v17  ;;  %v3409_v19 = vld [vmem:[%s3825_s27 - $0x17] sm:$0xff] (!%p3404_p4)  ;;  %v3410_v20 = vld [vmem:[%s3825_s27 - $0xf] sm:$0xff] (!%p3404_p4) }
  0x1f   : > { %212 = vst [vmem:[%s3830_s28 + $0x10] sm:$0xff] (!%p3404_p4), %v3408_v18  ;;  %v3411_v21 = vld [vmem:[%s3825_s27 - $0x7] sm:$0xff] (!%p3404_p4)  ;;  %214 = vst [vmem:[%s3830_s28 + $0x18] sm:$0xff] (!%p3404_p4), %v3409_v19 }
  0x20   : > { %216 = vst [vmem:[%s3830_s28 + $0x20] sm:$0xff] (!%p3404_p4), %v3410_v20  ;;  %218 = vst [vmem:[%s3830_s28 + $0x28] sm:$0xff] (!%p3404_p4), %v3411_v21 }
  0x25   : > { %226 = vsyncadd %s3200_s30, 768 }
  0x26 PF: > { %p3413_p5 = scmp.ge.s32.totalorder %s3737_s12, 1 }
  0x27   : > { %s3211_s4 = scalar_lea.sflag (!%p3413_p5), %s3863_s29, 2 [#allocation5]  ;;  %v3415_v22 = vld [vmem:[%s3825_s27 + $0x81] sm:$0xff] (!%p3413_p5)  ;;  %v3417_v23 = vld [vmem:[%s3825_s27 + $0x89] sm:$0xff] (!%p3413_p5)  ;;  %v3419_v24 = vld [vmem:[%s3825_s27 + $0x91] sm:$0xff] (!%p3413_p5) }
  0x28   : > { %230 = sbr.rel (%p3413_p5) target bundleno = 48 (0x30), region = 108  ;;  %3416 = vst [vmem:[%s3830_s28 + $0xb0] sm:$0xff] (!%p3413_p5), %v3415_v22  ;;  %3418 = vst [vmem:[%s3830_s28 + $0xb8] sm:$0xff] (!%p3413_p5), %v3417_v23  ;;  %v3421_v25 = vld [vmem:[%s3825_s27 + $0x99] sm:$0xff] (!%p3413_p5)  ;;  %v3423_v26 = vld [vmem:[%s3825_s27 + $0xa1] sm:$0xff] (!%p3413_p5) }
  0x29   : > { %3420 = vst [vmem:[%s3830_s28 + $0xc0] sm:$0xff] (!%p3413_p5), %v3419_v24  ;;  %v3425_v27 = vld [vmem:[%s3825_s27 + $0xa9] sm:$0xff] (!%p3413_p5)  ;;  %3422 = vst [vmem:[%s3830_s28 + $0xc8] sm:$0xff] (!%p3413_p5), %v3421_v25 }
  0x2a   : > { %3424 = vst [vmem:[%s3830_s28 + $0xd0] sm:$0xff] (!%p3413_p5), %v3423_v26  ;;  %3426 = vst [vmem:[%s3830_s28 + $0xd8] sm:$0xff] (!%p3413_p5), %v3425_v27 }
  0x2f   : > { %291 = vsyncadd %s3211_s4, 768 }
  0x30 PF: > { %s292_s7 = scalar_lea.vmem %s6829_s0, %s85_s20 }
  0x31   : > { %v310_v28 = vld [vmem:[%s292_s7] sm:$0x1] }
  0x32   : > { %311 = vst [vmem:[#allocation4] sm:$0x1] %v310_v28 }
  0x33   : > { %336 = vsyncadd [#allocation7], 16 }
  0x34 PF: > { %s339_s8 = smul.u32 3, %s3811_s19 }
  0x36   : > { %s340_s9 = scalar_lea.sflag [#allocation5], %s339_s8 }
  0x37   : > { %3709 = dma.done.wait %s340_s9, 2048 }
  0x38   : > { %3710 = vsyncadd %s340_s9, 4294965248  ;;  %p3541_p6 = scmp.gt.s32.totalorder %s3737_s12, 0  ;;  %s3220_s10 = scalar_lea.sflag %s340_s9, 1 [#allocation5] }
  0x3a   : > { %3712 = dma.done.wait (%p3541_p6), %s3220_s10, 768 }
  0x3b   : > { %3714 = vsyncadd (%p3541_p6), %s3220_s10, 4294966528  ;;  %p3430_p7 = scmp.ge.s32.totalorder %s3737_s12, 1  ;;  %p3542_p8 = scmp.lt.s32.totalorder %s3737_s12, 1 }
  0x3c   : > { %s3223_s11 = scalar_lea.sflag %s340_s9, 2 [#allocation5] }
  0x3d   : > { %3716 = dma.done.wait (%p3542_p8), %s3223_s11, 768 }
  0x3e   : > { %3718 = vsyncadd (%p3542_p8), %s3223_s11, 4294966528  ;;  %s3904_s20 = sadd.s32 1, %s3737_s12 }
  0x3f   : > { %p3431_p9 = scmp.ge.s32.totalorder %s3904_s20, 2 }
  0x40   : > { %s367_s21 = ssub.s32 (!%p3431_p9), 1, %s3811_s19  ;;  %s3432_s22 = sshll.u32 (!%p3431_p9), %s3737_s12, 7 }
  0x41   : > { %366 = sbr.rel (%p3431_p9) target bundleno = 99 (0x63), region = 184 }
  0x42   : > { %s3225_s23 = smul.u32 (!%p3431_p9), 264, %s3741_s13 }
  0x43   : > { %s373_s24 = smul.u32 (!%p3431_p9), 224, %s367_s21 }
  0x44   : > { %s3226_s25 = sadd.s32 (!%p3431_p9), %s3432_s22, %s3225_s23  ;;  %s3910_s26 = smul.u32 (!%p3431_p9), 3, %s367_s21 }
  0x45   : > { %s3915_s29 = scalar_lea.vmem (!%p3431_p9), %s6829_s0, %s3226_s25  ;;  %s3920_s30 = scalar_lea.vmem (!%p3431_p9), [#allocation2], %s373_s24 }
  0x46   : > { %v3433_v29 = vld [vmem:[%s3915_s29 + $0x81] sm:$0xff] (!%p3431_p9)  ;;  %v3435_v30 = vld [vmem:[%s3915_s29 + $0x89] sm:$0xff] (!%p3431_p9)  ;;  %v3437_v31 = vld [vmem:[%s3915_s29 + $0x91] sm:$0xff] (!%p3431_p9)  ;;  %s3952_s4 = scalar_lea.sflag (!%p3431_p9), [#allocation5], %s3910_s26 }
  0x47   : > { %3434 = vst [vmem:[%s3920_s30 + $0x30] sm:$0xff] (!%p3431_p9), %v3433_v29  ;;  %3436 = vst [vmem:[%s3920_s30 + $0x38] sm:$0xff] (!%p3431_p9), %v3435_v30  ;;  %v3439_v32 = vld [vmem:[%s3915_s29 + $0x99] sm:$0xff] (!%p3431_p9)  ;;  %v3441_v33 = vld [vmem:[%s3915_s29 + $0xa1] sm:$0xff] (!%p3431_p9) }
  0x48   : > { %3438 = vst [vmem:[%s3920_s30 + $0x40] sm:$0xff] %v3437_v31  ;;  %v3443_v34 = vld [vmem:[%s3915_s29 + $0xa9] sm:$0xff]  ;;  %3440 = vst [vmem:[%s3920_s30 + $0x48] sm:$0xff] %v3439_v32  ;;  %v3445_v35 = vld [vmem:[%s3915_s29 + $0xb1] sm:$0xff] }
  0x49   : > { %3442 = vst [vmem:[%s3920_s30 + $0x50] sm:$0xff] %v3441_v33  ;;  %3444 = vst [vmem:[%s3920_s30 + $0x58] sm:$0xff] %v3443_v34  ;;  %v3447_v36 = vld [vmem:[%s3915_s29 + $0xb9] sm:$0xff]  ;;  %v3449_v37 = vld [vmem:[%s3915_s29 + $0xc1] sm:$0xff] }
  0x4a   : > { %3446 = vst [vmem:[%s3920_s30 + $0x60] sm:$0xff] %v3445_v35  ;;  %3448 = vst [vmem:[%s3920_s30 + $0x68] sm:$0xff] %v3447_v36  ;;  %v3451_v38 = vld [vmem:[%s3915_s29 + $0xc9] sm:$0xff]  ;;  %v3453_v39 = vld [vmem:[%s3915_s29 + $0xd1] sm:$0xff] }
  0x4b   : > { %3450 = vst [vmem:[%s3920_s30 + $0x70] sm:$0xff] %v3449_v37  ;;  %v3455_v40 = vld [vmem:[%s3915_s29 + $0xd9] sm:$0xff]  ;;  %3452 = vst [vmem:[%s3920_s30 + $0x78] sm:$0xff] %v3451_v38  ;;  %v3457_v41 = vld [vmem:[%s3915_s29 + $0xe1] sm:$0xff] }
  0x4c   : > { %3454 = vst [vmem:[%s3920_s30 + $0x80] sm:$0xff] %v3453_v39  ;;  %3456 = vst [vmem:[%s3920_s30 + $0x88] sm:$0xff] %v3455_v40  ;;  %v3459_v42 = vld [vmem:[%s3915_s29 + $0xe9] sm:$0xff]  ;;  %v3461_v43 = vld [vmem:[%s3915_s29 + $0xf1] sm:$0xff] }
  0x4d   : > { %3458 = vst [vmem:[%s3920_s30 + $0x90] sm:$0xff] %v3457_v41  ;;  %3460 = vst [vmem:[%s3920_s30 + $0x98] sm:$0xff] %v3459_v42  ;;  %v3463_v44 = vld [vmem:[%s3915_s29 + $0xf9] sm:$0xff] }
  0x4e   : > { %3462 = vst [vmem:[%s3920_s30 + $0xa0] sm:$0xff] %v3461_v43  ;;  %3464 = vst [vmem:[%s3920_s30 + $0xa8] sm:$0xff] %v3463_v44 }
  0x4f   : > { %449 = vsyncadd %s3952_s4, 2048  ;;  %p3467_p10 = scmp.le.s32.totalorder %s3904_s20, 0 }
  0x50   : > { %s3243_s5 = scalar_lea.sflag (!%p3467_p10), %s3952_s4, 1 [#allocation5]  ;;  %v3469_v45 = vld [vmem:[%s3915_s29 + $0x51] sm:$0xff] (!%p3467_p10)  ;;  %v3470_v46 = vld [vmem:[%s3915_s29 + $0x59] sm:$0xff] (!%p3467_p10)  ;;  %v3471_v47 = vld [vmem:[%s3915_s29 + $0x61] sm:$0xff] (!%p3467_p10) }
  0x51   : > { %453 = sbr.rel (%p3467_p10) target bundleno = 89 (0x59), region = 222  ;;  %493 = vst [vmem:[%s3920_s30] sm:$0xff] (!%p3467_p10), %v3469_v45  ;;  %495 = vst [vmem:[%s3920_s30 + $0x8] sm:$0xff] (!%p3467_p10), %v3470_v46  ;;  %v3472_v48 = vld [vmem:[%s3915_s29 + $0x69] sm:$0xff] (!%p3467_p10)  ;;  %v3473_v49 = vld [vmem:[%s3915_s29 + $0x71] sm:$0xff] (!%p3467_p10) }
  0x52   : > { %497 = vst [vmem:[%s3920_s30 + $0x10] sm:$0xff] (!%p3467_p10), %v3471_v47  ;;  %v3474_v50 = vld [vmem:[%s3915_s29 + $0x79] sm:$0xff] (!%p3467_p10)  ;;  %499 = vst [vmem:[%s3920_s30 + $0x18] sm:$0xff] (!%p3467_p10), %v3472_v48 }
  0x53   : > { %501 = vst [vmem:[%s3920_s30 + $0x20] sm:$0xff] (!%p3467_p10), %v3473_v49  ;;  %503 = vst [vmem:[%s3920_s30 + $0x28] sm:$0xff] (!%p3467_p10), %v3474_v50 }
  0x58   : > { %511 = vsyncadd %s3243_s5, 768 }
  0x59 PF: > { %p3476_p11 = scmp.ge.s32.totalorder %s3904_s20, 1 }
  0x5a   : > { %s3254_s6 = scalar_lea.sflag (!%p3476_p11), %s3952_s4, 2 [#allocation5]  ;;  %v3478_v51 = vld [vmem:[%s3915_s29 + $0x101] sm:$0xff] (!%p3476_p11)  ;;  %v3480_v52 = vld [vmem:[%s3915_s29 + $0x109] sm:$0xff] (!%p3476_p11)  ;;  %v3482_v53 = vld [vmem:[%s3915_s29 + $0x111] sm:$0xff] (!%p3476_p11) }
  0x5b   : > { %515 = sbr.rel (%p3476_p11) target bundleno = 99 (0x63), region = 260  ;;  %3479 = vst [vmem:[%s3920_s30 + $0xb0] sm:$0xff] (!%p3476_p11), %v3478_v51  ;;  %3481 = vst [vmem:[%s3920_s30 + $0xb8] sm:$0xff] (!%p3476_p11), %v3480_v52  ;;  %v3484_v54 = vld [vmem:[%s3915_s29 + $0x119] sm:$0xff] (!%p3476_p11)  ;;  %v3486_v55 = vld [vmem:[%s3915_s29 + $0x121] sm:$0xff] (!%p3476_p11) }
  0x5c   : > { %3483 = vst [vmem:[%s3920_s30 + $0xc0] sm:$0xff] (!%p3476_p11), %v3482_v53  ;;  %v3488_v56 = vld [vmem:[%s3915_s29 + $0x129] sm:$0xff] (!%p3476_p11)  ;;  %3485 = vst [vmem:[%s3920_s30 + $0xc8] sm:$0xff] (!%p3476_p11), %v3484_v54 }
  0x5d   : > { %3487 = vst [vmem:[%s3920_s30 + $0xd0] sm:$0xff] (!%p3476_p11), %v3486_v55  ;;  %3489 = vst [vmem:[%s3920_s30 + $0xd8] sm:$0xff] (!%p3476_p11), %v3488_v56 }
  0x62   : > { %576 = vsyncadd %s3254_s6, 768 }
  0x63 PF: > { %579 = sbr.rel (%p3368_p3) target bundleno = 106 (0x6a), region = 298  ;;  %v3755_v57 = vmov (!%p3368_p3), 0.0  }
  0x64   : > { %s580_s7 = smul.u32 (!%p3368_p3), 224, %s3811_s19 }
  0x66   : > { %s581_s8 = scalar_lea.vmem (!%p3368_p3), [#allocation2], %s580_s7 }
  0x67   : > { %582 = vst [vmem:[%s581_s8] sm:$0xff] (!%p3368_p3), %v3755_v57  ;;  %583 = vst [vmem:[%s581_s8 + $0x8] sm:$0xff] (!%p3368_p3), %v3755_v57 }
  0x68   : > { %584 = vst [vmem:[%s581_s8 + $0x10] sm:$0xff] (!%p3368_p3), %v3755_v57  ;;  %585 = vst [vmem:[%s581_s8 + $0x18] sm:$0xff] (!%p3368_p3), %v3755_v57 }
  0x69   : > { %586 = vst [vmem:[%s581_s8 + $0x20] sm:$0xff] (!%p3368_p3), %v3755_v57  ;;  %587 = vst [vmem:[%s581_s8 + $0x28] sm:$0xff] (!%p3368_p3), %v3755_v57 }
  0x6a PF: > { %p3493_p12 = scmp.ne.s32.totalorder %s3737_s12, 1 }
  0x6b   : > { %s592_s9 = smul.u32 (!%p3493_p12), 224, %s3811_s19  ;;  %v3756_v58 = vmov (!%p3493_p12), 0.0  }
  0x6c   : > { %591 = sbr.rel (%p3493_p12) target bundleno = 115 (0x73), region = 302 }
  0x6d   : > { %s593_s10 = scalar_lea.vmem (!%p3493_p12), [#allocation2], %s592_s9 }
  0x6e   : > { %594 = vst [vmem:[%s593_s10 + $0xb0] sm:$0xff] (!%p3493_p12), %v3756_v58  ;;  %595 = vst [vmem:[%s593_s10 + $0xb8] sm:$0xff] (!%p3493_p12), %v3756_v58 }
  0x6f   : > { %596 = vst [vmem:[%s593_s10 + $0xc0] sm:$0xff] (!%p3493_p12), %v3756_v58  ;;  %597 = vst [vmem:[%s593_s10 + $0xc8] sm:$0xff] (!%p3493_p12), %v3756_v58 }
  0x70   : > { %598 = vst [vmem:[%s593_s10 + $0xd0] sm:$0xff] (!%p3493_p12), %v3756_v58  ;;  %599 = vst [vmem:[%s593_s10 + $0xd8] sm:$0xff] (!%p3493_p12), %v3756_v58 }
  0x73 PF: > { %v757_v59 = vlaneseq  ;;  %s608_s11 = smul.u32 224, %s3811_s19  ;;  %vm672_vm0 = vcmask 1042432   ;;  %v4021_v6 = vld [vmem:[%s6830_s1] sm:$0x7f]  ;;  %vm1009_vm1 = vcmask 1041408   ;;  %vm1346_vm2 = vcmask 1040384  }
  0x74   : > { %7080 = vst [vmem:[#allocation33_spill] sm:$0xff] %v4021_v6  ;;  %vm1935_vm3 = vcmask 1046528   ;;  %vm2272_vm4 = vcmask 1045504   ;;  %vm2609_vm5 = vcmask 1044480   ;;  %p3543_p13 = scmp.ge.s32.totalorder %s3737_s12, 2  ;;  %s6789_s24 = scalar_lea.sflag [#allocation6], %s3811_s19 }
  0x75   : > { %v3989_v60 = vshrl.u32 %v757_v59, 7  ;;  %s3991_s20 = scalar_lea.vmem [#allocation2], %s608_s11 }
  0x77   : > { %7072 = vst [vmem:[#allocation25_spill] sm:$0xff] %v3989_v60  ;;  %v3994_v61 = vld [vmem:[%s3991_s20] sm:$0xff]  ;;  %v3997_v62 = vld [vmem:[%s3991_s20 + $0x8] sm:$0xff]  ;;  %v4000_v63 = vld [vmem:[%s3991_s20 + $0x10] sm:$0xff]  ;;  %v4013_v4 = vsub.s32 0, %v3989_v60  ;;  %v4016_v5 = vsub.s32 1, %v3989_v60 }
  0x78   : > { %7073 = vst [vmem:[#allocation26_spill] sm:$0xff] %v3994_v61  ;;  %7074 = vst [vmem:[#allocation27_spill] sm:$0xff] %v3997_v62  ;;  %v4003_v0 = vld [vmem:[%s3991_s20 + $0x18] sm:$0xff]  ;;  %v4006_v1 = vld [vmem:[%s3991_s20 + $0x20] sm:$0xff]  ;;  %v6833_v3 = vrot.slane %v3994_v61, 5  ;;  %v674_v10 = vrot.slane %v3997_v62, 5 }
  0x79   : > { %7075 = vst [vmem:[#allocation28_spill] sm:$0xff] %v4000_v63  ;;  %7076 = vst [vmem:[#allocation29_spill] sm:$0xff] %v4003_v0  ;;  %v4009_v2 = vld [vmem:[%s3991_s20 + $0x28] sm:$0xff]  ;;  %v4024_v7 = vld [vmem:[%s3991_s20 + $0x30] sm:$0xff]  ;;  %v676_v11 = vrot.slane %v4000_v63, 5  ;;  %v677_v12 = vrot.slane %v4003_v0, 5  ;;  %v760_v43 = vrot.slane %v4021_v6, %v4013_v4 }
  0x7a   : > { %7077 = vst [vmem:[#allocation30_spill] sm:$0xff] %v4006_v1  ;;  %7078 = vst [vmem:[#allocation31_spill] sm:$0xff] %v4009_v2  ;;  %v4027_v8 = vld [vmem:[%s3991_s20 + $0x38] sm:$0xff]  ;;  %v4030_v9 = vld [vmem:[%s3991_s20 + $0x40] sm:$0xff]  ;;  %v679_v16 = vrot.slane %v4006_v1, 5  ;;  %v680_v17 = vrot.slane %v4009_v2, 5  ;;  %v675_v47 = vsel %vm672_vm0, %v6833_v3, %v674_v10 }
  0x7b   : > { %7079 = vst [vmem:[#allocation32_spill] sm:$0xff] %v4016_v5  ;;  %7081 = vst [vmem:[#allocation34_spill] sm:$0xff] %v4024_v7  ;;  %v4036_v13 = vld [vmem:[%s3991_s20 + $0x48] sm:$0xff]  ;;  %v4039_v14 = vld [vmem:[%s3991_s20 + $0x50] sm:$0xff]  ;;  %v682_v18 = vrot.slane %v4024_v7, 5  ;;  %v683_v22 = vrot.slane %v4027_v8, 5  ;;  %v4116_v52 = vsel %vm672_vm0, %v676_v11, %v677_v12 }
  0x7c   : > { %7082 = vst [vmem:[#allocation35_spill] sm:$0xff] %v4027_v8  ;;  %7083 = vst [vmem:[#allocation36_spill] sm:$0xff] %v4030_v9  ;;  %v4042_v15 = vld [vmem:[%s3991_s20 + $0x58] sm:$0xff]  ;;  %v4048_v19 = vld [vmem:[%s3991_s20 + $0x60] sm:$0xff]  ;;  %v685_v23 = vrot.slane %v4030_v9, 5  ;;  %v686_v24 = vrot.slane %v4036_v13, 5  ;;  %v4122_v56 = vsel %vm672_vm0, %v679_v16, %v680_v17 }
  0x7d   : > { %7084 = vst [vmem:[#allocation37_spill] sm:$0xff] %v4036_v13  ;;  %7085 = vst [vmem:[#allocation38_spill] sm:$0xff] %v4039_v14  ;;  %v4051_v20 = vld [vmem:[%s3991_s20 + $0x68] sm:$0xff]  ;;  %v4054_v21 = vld [vmem:[%s3991_s20 + $0x70] sm:$0xff]  ;;  %v688_v28 = vrot.slane %v4039_v14, 5  ;;  %v689_v29 = vrot.slane %v4042_v15, 5  ;;  %v4125_v57 = vsel %vm672_vm0, %v682_v18, %v683_v22 }
  0x7e   : > { %7086 = vst [vmem:[#allocation39_spill] sm:$0xff] %v4042_v15  ;;  %7087 = vst [vmem:[#allocation40_spill] sm:$0xff] %v4048_v19  ;;  %v4060_v25 = vld [vmem:[%s3991_s20 + $0x78] sm:$0xff]  ;;  %v4063_v26 = vld [vmem:[%s3991_s20 + $0x80] sm:$0xff]  ;;  %v691_v30 = vrot.slane %v4048_v19, 5  ;;  %v692_v34 = vrot.slane %v4051_v20, 5  ;;  %v4130_v10 = vsel %vm672_vm0, %v685_v23, %v686_v24 }
  0x7f   : > { %7088 = vst [vmem:[#allocation41_spill] sm:$0xff] %v4051_v20  ;;  %7089 = vst [vmem:[#allocation42_spill] sm:$0xff] %v4054_v21  ;;  %v4066_v27 = vld [vmem:[%s3991_s20 + $0x88] sm:$0xff]  ;;  %v4072_v31 = vld [vmem:[%s3991_s20 + $0x90] sm:$0xff]  ;;  %v694_v35 = vrot.slane %v4054_v21, 5  ;;  %v695_v36 = vrot.slane %v4060_v25, 5  ;;  %v4133_v12 = vsel %vm672_vm0, %v688_v28, %v689_v29 }
  0x80   : > { %7090 = vst [vmem:[#allocation43_spill] sm:$0xff] %v4060_v25  ;;  %7091 = vst [vmem:[#allocation44_spill] sm:$0xff] %v4063_v26  ;;  %v4075_v32 = vld [vmem:[%s3991_s20 + $0x98] sm:$0xff]  ;;  %v4078_v33 = vld [vmem:[%s3991_s20 + $0xa0] sm:$0xff]  ;;  %v697_v40 = vrot.slane %v4063_v26, 5  ;;  %v698_v41 = vrot.slane %v4066_v27, 5  ;;  %v4136_v3 = vsel %vm672_vm0, %v691_v30, %v692_v34 }
  0x81   : > { %7092 = vst [vmem:[#allocation45_spill] sm:$0xff] %v4066_v27  ;;  %7093 = vst [vmem:[#allocation46_spill] sm:$0xff] %v4072_v31  ;;  %v4084_v37 = vld [vmem:[%s3991_s20 + $0xa8] sm:$0xff]  ;;  %v4087_v38 = vld [vmem:[%s3991_s20 + $0xb0] sm:$0xff]  ;;  %v700_v42 = vrot.slane %v4072_v31, 5  ;;  %v701_v48 = vrot.slane %v4075_v32, 5  ;;  %v4140_v17 = vsel %vm672_vm0, %v694_v35, %v695_v36 }
  0x82   : > { %7094 = vst [vmem:[#allocation47_spill] sm:$0xff] %v4075_v32  ;;  %7095 = vst [vmem:[#allocation48_spill] sm:$0xff] %v4078_v33  ;;  %v4090_v39 = vld [vmem:[%s3991_s20 + $0xb8] sm:$0xff]  ;;  %v4098_v44 = vld [vmem:[%s3991_s20 + $0xc0] sm:$0xff]  ;;  %v703_v49 = vrot.slane %v4078_v33, 5  ;;  %v704_v50 = vrot.slane %v4084_v37, 5  ;;  %v4143_v22 = vsel %vm672_vm0, %v697_v40, %v698_v41  ;;  %v774_v33 = vmul.f32 %v760_v43, %v4136_v3 }
  0x83   : > { %7096 = vst [vmem:[#allocation49_spill] sm:$0xff] %v4084_v37  ;;  %7097 = vst [vmem:[#allocation50_spill] sm:$0xff] %v4087_v38  ;;  %v4101_v45 = vld [vmem:[%s3991_s20 + $0xc8] sm:$0xff]  ;;  %v4104_v46 = vld [vmem:[%s3991_s20 + $0xd0] sm:$0xff]  ;;  %v706_v53 = vrot.slane %v4087_v38, 5  ;;  %v707_v54 = vrot.slane %v4090_v39, 5  ;;  %v4146_v6 = vsel %vm672_vm0, %v700_v42, %v701_v48  ;;  %v772_v38 = vmul.f32 %v760_v43, %v4133_v12 }
  0x84   : > { %7098 = vst [vmem:[#allocation51_spill] sm:$0xff] %v4090_v39  ;;  %7099 = vst [vmem:[#allocation52_spill] sm:$0xff] %v4098_v44  ;;  %v4113_v51 = vld [vmem:[%s3991_s20 + $0xd8] sm:$0xff]  ;;  %v709_v55 = vrot.slane %v4098_v44, 5  ;;  %v710_v58 = vrot.slane %v4101_v45, 5  ;;  %v712_v59 = vrot.slane %v4104_v46, 5  ;;  %v4149_v24 = vsel %vm672_vm0, %v703_v49, %v704_v50 }
  0x85   : > { %7100 = vst [vmem:[#allocation53_spill] sm:$0xff] %v4101_v45  ;;  %7101 = vst [vmem:[#allocation54_spill] sm:$0xff] %v4104_v46  ;;  %v713_v60 = vrot.slane %v4113_v51, 5  ;;  %v4152_v29 = vsel %vm672_vm0, %v706_v53, %v707_v54  ;;  %v7107_v5 = vrot.slane %v3994_v61, 5  ;;  %v4165_v48 = vsel %vm672_vm0, 0.0, %v679_v16 }
  0x86   : > { %7102 = vst [vmem:[#allocation55_spill] sm:$0xff] %v4113_v51  ;;  %7103 = vst [vmem:[#allocation56_spill] sm:$0xff] %v4146_v6  ;;  %v4155_v34 = vsel %vm672_vm0, %v709_v55, %v710_v58  ;;  %v744_v51 = vsel %vm672_vm0, 0.0, %v676_v11  ;;  %v4168_v50 = vsel %vm672_vm0, 0.0, %v682_v18  ;;  %v4171_v54 = vsel %vm672_vm0, 0.0, %v685_v23 }
  0x87   : > { %7104 = vst [vmem:[#allocation57_spill] sm:$0xff] %v4149_v24  ;;  %7105 = vst [vmem:[#allocation58_spill] sm:$0xff] %v4152_v29  ;;  %v743_v36 = vsel %vm672_vm0, 0.0, %v7107_v5  ;;  %v4162_v41 = vsel %vm672_vm0, %v712_v59, %v713_v60  ;;  %v4174_v58 = vsel %vm672_vm0, 0.0, %v688_v28  ;;  %v4177_v46 = vsel %vm672_vm0, 0.0, %v691_v30 }
  0x88   : > { %7106 = vst [vmem:[#allocation59_spill] sm:$0xff] %v4155_v34  ;;  %7108 = vst [vmem:[#allocation60_spill] sm:$0xff] %v4162_v41  ;;  %v4180_v5 = vsel %vm672_vm0, 0.0, %v694_v35  ;;  %v4183_v60 = vsel %vm672_vm0, 0.0, %v697_v40  ;;  %v4186_v11 = vsel %vm672_vm0, 0.0, %v700_v42  ;;  %v4189_v16 = vsel %vm672_vm0, 0.0, %v703_v49 }
  0x89   : > { %7109 = vst [vmem:[#allocation61_spill] sm:$0xff] %v4183_v60  ;;  %7110 = vst [vmem:[#allocation62_spill] sm:$0xff] %v4186_v11  ;;  %v4192_v18 = vsel %vm672_vm0, 0.0, %v706_v53  ;;  %v4195_v23 = vsel %vm672_vm0, 0.0, %v709_v55  ;;  %v4198_v28 = vsel %vm672_vm0, 0.0, %v712_v59  ;;  %v761_v30 = vmul.f32 %v760_v43, %v743_v36 }
  0x8a   : > { %7111 = vst [vmem:[#allocation63_spill] sm:$0xff] %v4189_v16  ;;  %7112 = vst [vmem:[#allocation64_spill] sm:$0xff] %v4192_v18  ;;  %v762_v35 = vmul.f32 %v760_v43, %v675_v47  ;;  %v763_v45 = vmul.f32 %v760_v43, %v744_v51  ;;  %v3494_v40 = vld [vmem:[%s6831_s2] ss:$0 sm:$0xff]  ;;  %v764_v42 = vmul.f32 %v760_v43, %v4116_v52  ;;  %v4214_v39 = vld [vmem:[%s6830_s1 + $0x8] sm:$0x7f] }
  0x8b   : > { %7113 = vst [vmem:[#allocation65_spill] sm:$0xff] %v4195_v23  ;;  %7114 = vst [vmem:[#allocation66_spill] sm:$0xff] %v4198_v28  ;;  %v765_v49 = vmul.f32 %v760_v43, %v4165_v48  ;;  %v766_v53 = vmul.f32 %v760_v43, %v4122_v56  ;;  %v767_v44 = vmul.f32 %v760_v43, %v4168_v50  ;;  %v4224_v21 = vld [vmem:[%s6830_s1 + $0x10] sm:$0x7f]  ;;  %v4229_v20 = vld [vmem:[%s6830_s1 + $0x18] sm:$0x7f] }
  0x8c   : > { %v768_v55 = vmul.f32 %v760_v43, %v4125_v57  ;;  %v769_v59 = vmul.f32 %v760_v43, %v4171_v54  ;;  %v770_v36 = vmul.f32 %v760_v43, %v4130_v10  ;;  %v771_v47 = vmul.f32 %v760_v43, %v4174_v58  ;;  %7115 = vst [vmem:[#allocation67_spill] sm:$0xff] %v4214_v39 }
  0x8d   : > { %v773_v37 = vmul.f32 %v760_v43, %v4177_v46  ;;  %v775_v32 = vmul.f32 %v760_v43, %v4180_v5  ;;  %v776_v31 = vmul.f32 %v760_v43, %v4140_v17  ;;  %v777_v27 = vadd.f32 %v3494_v40, %v761_v30  ;;  %7116 = vst [vmem:[#allocation68_spill] sm:$0xff] %v4224_v21  ;;  %v4234_v43 = vld [vmem:[%s6830_s1 + $0x20] sm:$0x7f]  ;;  %v4244_v30 = vld [vmem:[%s6830_s1 + $0x30] sm:$0x7f] }
  0x8e   : > { %v778_v26 = vadd.f32 %v3494_v40, %v762_v35  ;;  %v779_v25 = vadd.f32 %v3494_v40, %v763_v45  ;;  %7117 = vst [vmem:[#allocation69_spill] sm:$0xff] %v4229_v20  ;;  %v780_v19 = vadd.f32 %v3494_v40, %v764_v42  ;;  %v781_v15 = vadd.f32 %v3494_v40, %v765_v49  ;;  %v4239_v45 = vld [vmem:[%s6830_s1 + $0x28] sm:$0x7f] }
  0x8f   : > { %v782_v14 = vadd.f32 %v3494_v40, %v766_v53  ;;  %v783_v13 = vadd.f32 %v3494_v40, %v767_v44  ;;  %7118 = vst [vmem:[#allocation70_spill] sm:$0xff] %v4234_v43  ;;  %7119 = vst [vmem:[#allocation71_spill] sm:$0xff] %v4239_v45  ;;  %v784_v35 = vadd.f32 %v3494_v40, %v768_v55 }
  0x90   : > { %7120 = vst [vmem:[#allocation72_spill] sm:$0xff] %v4244_v30  ;;  %v785_v42 = vadd.f32 %v3494_v40, %v769_v59  ;;  %v786_v49 = vadd.f32 %v3494_v40, %v770_v36  ;;  %v796_v44 = vrot.slane %v4214_v39, %v4013_v4  ;;  %v787_v53 = vadd.f32 %v3494_v40, %v771_v47 }
  0x91   : > { %v788_v9 = vadd.f32 %v3494_v40, %v772_v38  ;;  %v789_v8 = vadd.f32 %v3494_v40, %v773_v37  ;;  %v790_v7 = vadd.f32 %v3494_v40, %v774_v33  ;;  %v791_v2 = vadd.f32 %v3494_v40, %v775_v32 }
  0x92   : > { %v792_v1 = vadd.f32 %v3494_v40, %v776_v31  ;;  %v832_v0 = vrot.slane %v4224_v21, %v4013_v4  ;;  %v4252_v63 = vrot.slane %v4229_v20, %v4013_v4  ;;  %v797_v62 = vmul.f32 %v796_v44, %v744_v51 }
  0x93   : > { %v4256_v55 = vrot.slane %v4234_v43, %v4013_v4  ;;  %v4260_v59 = vrot.slane %v4239_v45, %v4013_v4  ;;  %v4264_v32 = vrot.slane %v4244_v30, %v4013_v4  ;;  %v798_v31 = vmul.f32 %v796_v44, %v4116_v52 }
  0x94   : > { %7121 = vst [vmem:[#allocation73_spill] sm:$0xff] %v4252_v63  ;;  %v799_v33 = vmul.f32 %v796_v44, %v4165_v48  ;;  %v800_v37 = vmul.f32 %v796_v44, %v4122_v56  ;;  %v801_v38 = vmul.f32 %v796_v44, %v4168_v50  ;;  %v802_v51 = vmul.f32 %v796_v44, %v4125_v57 }
  0x95   : > { %7122 = vst [vmem:[#allocation74_spill] sm:$0xff] %v4256_v55  ;;  %7123 = vst [vmem:[#allocation75_spill] sm:$0xff] %v4260_v59  ;;  %v803_v40 = vmul.f32 %v796_v44, %v4171_v54  ;;  %v804_v36 = vmul.f32 %v796_v44, %v4130_v10  ;;  %v805_v47 = vmul.f32 %v796_v44, %v4174_v58 }
  0x96   : > { %7124 = vst [vmem:[#allocation76_spill] sm:$0xff] %v4264_v32  ;;  %v806_v45 = vmul.f32 %v796_v44, %v4133_v12  ;;  %v807_v4 = vmul.f32 %v796_v44, %v4177_v46  ;;  %v808_v52 = vmul.f32 %v796_v44, %v4136_v3  ;;  %v809_v30 = vmul.f32 %v796_v44, %v4180_v5 }
  0x97   : > { %v810_v43 = vmul.f32 %v796_v44, %v4140_v17  ;;  %v811_v20 = vmul.f32 %v796_v44, %v4183_v60  ;;  %v812_v21 = vmul.f32 %v796_v44, %v4143_v22  ;;  %v813_v39 = vadd.f32 %v797_v62, %v777_v27 }
  0x98   : > { %v814_v61 = vadd.f32 %v798_v31, %v778_v26  ;;  %v815_v41 = vadd.f32 %v799_v33, %v779_v25  ;;  %v816_v28 = vadd.f32 %v800_v37, %v780_v19  ;;  %v817_v32 = vadd.f32 %v801_v38, %v781_v15  ;;  %v7126_v26 = vld [vmem:[#allocation62_spill] sm:$0xff] }
  0x99   : > { %v818_v34 = vadd.f32 %v802_v51, %v782_v14  ;;  %v819_v23 = vadd.f32 %v803_v40, %v783_v13  ;;  %v820_v59 = vadd.f32 %v804_v36, %v784_v35  ;;  %v821_v29 = vadd.f32 %v805_v47, %v785_v42 }
  0x9a   : > { %v822_v18 = vadd.f32 %v806_v45, %v786_v49  ;;  %v823_v55 = vadd.f32 %v807_v4, %v787_v53  ;;  %v824_v24 = vadd.f32 %v808_v52, %v788_v9  ;;  %v825_v16 = vadd.f32 %v809_v30, %v789_v8 }
  0x9b   : > { %v826_v63 = vadd.f32 %v810_v43, %v790_v7  ;;  %v827_v6 = vadd.f32 %v811_v20, %v791_v2  ;;  %v828_v11 = vadd.f32 %v812_v21, %v792_v1  ;;  %v833_v60 = vmul.f32 %v832_v0, %v4165_v48  ;;  %v7125_v20 = vld [vmem:[#allocation61_spill] sm:$0xff] }
  0x9c   : > { %v834_v44 = vmul.f32 %v832_v0, %v4122_v56  ;;  %v835_v62 = vmul.f32 %v832_v0, %v4168_v50  ;;  %v836_v19 = vmul.f32 %v832_v0, %v4125_v57  ;;  %v837_v14 = vmul.f32 %v832_v0, %v4171_v54  ;;  %v7127_v56 = vld [vmem:[#allocation56_spill] sm:$0xff]  ;;  %v7128_v52 = vld [vmem:[#allocation73_spill] sm:$0xff] }
  0x9d   : > { %v838_v13 = vmul.f32 %v832_v0, %v4130_v10  ;;  %v839_v15 = vmul.f32 %v832_v0, %v4174_v58  ;;  %v840_v9 = vmul.f32 %v832_v0, %v4133_v12  ;;  %v841_v7 = vmul.f32 %v832_v0, %v4177_v46 }
  0x9e   : > { %v842_v1 = vmul.f32 %v832_v0, %v4136_v3  ;;  %v843_v2 = vmul.f32 %v832_v0, %v4180_v5  ;;  %v844_v8 = vmul.f32 %v832_v0, %v4140_v17  ;;  %v845_v21 = vmul.f32 %v832_v0, %v7125_v20 }
  0x9f   : > { %v846_v25 = vmul.f32 %v832_v0, %v4143_v22  ;;  %v847_v27 = vmul.f32 %v832_v0, %v7126_v26  ;;  %v848_v48 = vmul.f32 %v832_v0, %v7127_v56  ;;  %v849_v43 = vadd.f32 %v833_v60, %v813_v39  ;;  %v7129_v60 = vld [vmem:[#allocation62_spill] sm:$0xff] }
  0xa0   : > { %v850_v45 = vadd.f32 %v834_v44, %v814_v61  ;;  %v851_v30 = vadd.f32 %v835_v62, %v815_v41  ;;  %v852_v35 = vadd.f32 %v836_v19, %v816_v28  ;;  %v853_v42 = vadd.f32 %v837_v14, %v817_v32  ;;  %v7131_v28 = vld [vmem:[#allocation57_spill] sm:$0xff] }
  0xa1   : > { %v854_v49 = vadd.f32 %v838_v13, %v818_v34  ;;  %v855_v53 = vadd.f32 %v839_v15, %v819_v23  ;;  %v856_v31 = vadd.f32 %v840_v9, %v820_v59  ;;  %v857_v33 = vadd.f32 %v841_v7, %v821_v29 }
  0xa2   : > { %v858_v37 = vadd.f32 %v842_v1, %v822_v18  ;;  %v859_v38 = vadd.f32 %v843_v2, %v823_v55  ;;  %v860_v51 = vadd.f32 %v844_v8, %v824_v24  ;;  %v861_v40 = vadd.f32 %v845_v21, %v825_v16  ;;  %v7130_v18 = vld [vmem:[#allocation63_spill] sm:$0xff] }
  0xa3   : > { %v862_v36 = vadd.f32 %v846_v25, %v826_v63  ;;  %v863_v47 = vadd.f32 %v847_v27, %v827_v6  ;;  %v864_v4 = vadd.f32 %v848_v48, %v828_v11  ;;  %v869_v26 = vmul.f32 %v7128_v52, %v4168_v50  ;;  %v7132_v48 = vld [vmem:[#allocation74_spill] sm:$0xff] }
  0xa4   : > { %v870_v61 = vmul.f32 %v7128_v52, %v4125_v57  ;;  %v871_v0 = vmul.f32 %v7128_v52, %v4171_v54  ;;  %v872_v39 = vmul.f32 %v7128_v52, %v4130_v10  ;;  %v873_v29 = vmul.f32 %v7128_v52, %v4174_v58 }
  0xa5   : > { %v874_v63 = vmul.f32 %v7128_v52, %v4133_v12  ;;  %v875_v6 = vmul.f32 %v7128_v52, %v4177_v46  ;;  %v876_v24 = vmul.f32 %v7128_v52, %v4136_v3  ;;  %v877_v57 = vmul.f32 %v7128_v52, %v4180_v5 }
  0xa6   : > { %v878_v34 = vmul.f32 %v7128_v52, %v4140_v17  ;;  %v879_v41 = vmul.f32 %v7128_v52, %v7125_v20  ;;  %v880_v50 = vmul.f32 %v7128_v52, %v4143_v22  ;;  %v881_v11 = vmul.f32 %v7128_v52, %v7129_v60 }
  0xa7   : > { %v882_v16 = vmul.f32 %v7128_v52, %v7127_v56  ;;  %v883_v23 = vmul.f32 %v7128_v52, %v7130_v18  ;;  %v884_v55 = vmul.f32 %v7128_v52, %v7131_v28  ;;  %v885_v59 = vadd.f32 %v869_v26, %v849_v43 }
  0xa8   : > { %v886_v32 = vadd.f32 %v870_v61, %v850_v45  ;;  %v887_v44 = vadd.f32 %v871_v0, %v851_v30  ;;  %v888_v62 = vadd.f32 %v872_v39, %v852_v35  ;;  %v889_v19 = vadd.f32 %v873_v29, %v853_v42 }
  0xa9   : > { %v890_v14 = vadd.f32 %v874_v63, %v854_v49  ;;  %v891_v13 = vadd.f32 %v875_v6, %v855_v53  ;;  %v892_v15 = vadd.f32 %v876_v24, %v856_v31  ;;  %v893_v9 = vadd.f32 %v877_v57, %v857_v33  ;;  %v7133_v33 = vld [vmem:[#allocation63_spill] sm:$0xff] }
  0xaa   : > { %v894_v7 = vadd.f32 %v878_v34, %v858_v37  ;;  %v895_v1 = vadd.f32 %v879_v41, %v859_v38  ;;  %v896_v2 = vadd.f32 %v880_v50, %v860_v51  ;;  %v897_v8 = vadd.f32 %v881_v11, %v861_v40  ;;  %v7134_v51 = vld [vmem:[#allocation64_spill] sm:$0xff] }
  0xab   : > { %v898_v21 = vadd.f32 %v882_v16, %v862_v36  ;;  %v899_v25 = vadd.f32 %v883_v23, %v863_v47  ;;  %v900_v27 = vadd.f32 %v884_v55, %v864_v4  ;;  %v905_v18 = vmul.f32 %v7132_v48, %v4171_v54  ;;  %v7135_v36 = vld [vmem:[#allocation58_spill] sm:$0xff]  ;;  %v7136_v55 = vld [vmem:[#allocation75_spill] sm:$0xff] }
  0xac   : > { %v906_v26 = vmul.f32 %v7132_v48, %v4130_v10  ;;  %v907_v43 = vmul.f32 %v7132_v48, %v4174_v58  ;;  %v908_v45 = vmul.f32 %v7132_v48, %v4133_v12  ;;  %v909_v30 = vmul.f32 %v7132_v48, %v4177_v46 }
  0xad   : > { %v910_v35 = vmul.f32 %v7132_v48, %v4136_v3  ;;  %v911_v42 = vmul.f32 %v7132_v48, %v4180_v5  ;;  %v912_v54 = vmul.f32 %v7132_v48, %v4140_v17  ;;  %v913_v10 = vmul.f32 %v7132_v48, %v7125_v20 }
  0xae   : > { %v914_v49 = vmul.f32 %v7132_v48, %v4143_v22  ;;  %v915_v53 = vmul.f32 %v7132_v48, %v7129_v60  ;;  %v916_v31 = vmul.f32 %v7132_v48, %v7127_v56  ;;  %v917_v37 = vmul.f32 %v7132_v48, %v7133_v33 }
  0xaf   : > { %v918_v38 = vmul.f32 %v7132_v48, %v7131_v28  ;;  %v919_v40 = vmul.f32 %v7132_v48, %v7134_v51  ;;  %v920_v47 = vmul.f32 %v7132_v48, %v7135_v36  ;;  %v921_v4 = vadd.f32 %v905_v18, %v885_v59 }
  0xb0   : > { %v922_v52 = vadd.f32 %v906_v26, %v886_v32  ;;  %v923_v61 = vadd.f32 %v907_v43, %v887_v44  ;;  %v924_v0 = vadd.f32 %v908_v45, %v888_v62  ;;  %v925_v39 = vadd.f32 %v909_v30, %v889_v19 }
  0xb1   : > { %v926_v29 = vadd.f32 %v910_v35, %v890_v14  ;;  %v927_v63 = vadd.f32 %v911_v42, %v891_v13  ;;  %v928_v6 = vadd.f32 %v912_v54, %v892_v15  ;;  %v929_v24 = vadd.f32 %v913_v10, %v893_v9  ;;  %v7137_v9 = vld [vmem:[#allocation64_spill] sm:$0xff] }
  0xb2   : > { %v930_v57 = vadd.f32 %v914_v49, %v894_v7  ;;  %v931_v34 = vadd.f32 %v915_v53, %v895_v1  ;;  %v932_v41 = vadd.f32 %v916_v31, %v896_v2  ;;  %v933_v50 = vadd.f32 %v917_v37, %v897_v8  ;;  %v7138_v2 = vld [vmem:[#allocation65_spill] sm:$0xff] }
  0xb3   : > { %v934_v11 = vadd.f32 %v918_v38, %v898_v21  ;;  %v935_v16 = vadd.f32 %v919_v40, %v899_v25  ;;  %v936_v23 = vadd.f32 %v920_v47, %v900_v27  ;;  %v941_v51 = vmul.f32 %v7136_v55, %v4174_v58  ;;  %v7139_v21 = vld [vmem:[#allocation59_spill] sm:$0xff]  ;;  %v7140_v47 = vld [vmem:[#allocation76_spill] sm:$0xff] }
  0xb4   : > { %v942_v18 = vmul.f32 %v7136_v55, %v4133_v12  ;;  %v943_v59 = vmul.f32 %v7136_v55, %v4177_v46  ;;  %v944_v32 = vmul.f32 %v7136_v55, %v4136_v3  ;;  %v945_v44 = vmul.f32 %v7136_v55, %v4180_v5 }
  0xb5   : > { %v946_v62 = vmul.f32 %v7136_v55, %v4140_v17  ;;  %v947_v19 = vmul.f32 %v7136_v55, %v7125_v20  ;;  %v948_v58 = vmul.f32 %v7136_v55, %v4143_v22  ;;  %v949_v12 = vmul.f32 %v7136_v55, %v7129_v60 }
  0xb6   : > { %v950_v14 = vmul.f32 %v7136_v55, %v7127_v56  ;;  %v951_v13 = vmul.f32 %v7136_v55, %v7133_v33  ;;  %v952_v15 = vmul.f32 %v7136_v55, %v7131_v28  ;;  %v953_v7 = vmul.f32 %v7136_v55, %v7137_v9 }
  0xb7   : > { %v954_v1 = vmul.f32 %v7136_v55, %v7135_v36  ;;  %v955_v8 = vmul.f32 %v7136_v55, %v7138_v2  ;;  %v956_v25 = vmul.f32 %v7136_v55, %v7139_v21  ;;  %v957_v27 = vadd.f32 %v941_v51, %v921_v4 }
  0xb8   : > { %v958_v48 = vadd.f32 %v942_v18, %v922_v52  ;;  %v959_v26 = vadd.f32 %v943_v59, %v923_v61  ;;  %v960_v43 = vadd.f32 %v944_v32, %v924_v0  ;;  %v961_v45 = vadd.f32 %v945_v44, %v925_v39  ;;  %v7144_v18 = vld [vmem:[#allocation27_spill] sm:$0xff]  ;;  %v7145_v32 = vld [vmem:[#allocation28_spill] sm:$0xff] }
  0xb9   : > { %v962_v30 = vadd.f32 %v946_v62, %v926_v29  ;;  %v963_v35 = vadd.f32 %v947_v19, %v927_v63  ;;  %v964_v42 = vadd.f32 %v948_v58, %v928_v6  ;;  %v965_v54 = vadd.f32 %v949_v12, %v929_v24  ;;  %v7141_v29 = vld [vmem:[#allocation66_spill] sm:$0xff]  ;;  %v7142_v63 = vld [vmem:[#allocation60_spill] sm:$0xff]  ;;  %v7146_v62 = vld [vmem:[#allocation29_spill] sm:$0xff] }
  0xba   : > { %v966_v10 = vadd.f32 %v950_v14, %v930_v57  ;;  %v967_v49 = vadd.f32 %v951_v13, %v931_v34  ;;  %v968_v53 = vadd.f32 %v952_v15, %v932_v41  ;;  %v969_v31 = vadd.f32 %v953_v7, %v933_v50 }
  0xbb   : > { %v970_v37 = vadd.f32 %v954_v1, %v934_v11  ;;  %v971_v38 = vadd.f32 %v955_v8, %v935_v16  ;;  %v972_v40 = vadd.f32 %v956_v25, %v936_v23  ;;  %v977_v55 = vmul.f32 %v7140_v47, %v4177_v46  ;;  %v7143_v16 = vld [vmem:[#allocation26_spill] sm:$0xff] }
  0xbc   : > { %v978_v51 = vmul.f32 %v7140_v47, %v4136_v3  ;;  %v979_v4 = vmul.f32 %v7140_v47, %v4180_v5  ;;  %v980_v52 = vmul.f32 %v7140_v47, %v4140_v17  ;;  %v981_v61 = vmul.f32 %v7140_v47, %v7125_v20  ;;  %v7147_v1 = vld [vmem:[#allocation30_spill] sm:$0xff] }
  0xbd   : > { %v982_v0 = vmul.f32 %v7140_v47, %v4143_v22  ;;  %v983_v39 = vmul.f32 %v7140_v47, %v7129_v60  ;;  %v984_v46 = vmul.f32 %v7140_v47, %v7127_v56  ;;  %v985_v3 = vmul.f32 %v7140_v47, %v7133_v33 }
  0xbe   : > { %v986_v5 = vmul.f32 %v7140_v47, %v7131_v28  ;;  %v987_v17 = vmul.f32 %v7140_v47, %v7137_v9  ;;  %v988_v20 = vmul.f32 %v7140_v47, %v7135_v36  ;;  %v989_v22 = vmul.f32 %v7140_v47, %v7138_v2 }
  0xbf   : > { %v990_v60 = vmul.f32 %v7140_v47, %v7139_v21  ;;  %v991_v56 = vmul.f32 %v7140_v47, %v7141_v29  ;;  %v992_v33 = vmul.f32 %v7140_v47, %v7142_v63  ;;  %v4425_v6 = vadd.f32 %v977_v55, %v957_v27  ;;  %v7148_v21 = vld [vmem:[#allocation31_spill] sm:$0xff]  ;;  %v7149_v27 = vld [vmem:[#allocation34_spill] sm:$0xff]  ;;  %v7164_v29 = vld [vmem:[#allocation49_spill] sm:$0xff] }
  0xc0   : > { %v4427_v28 = vadd.f32 %v978_v51, %v958_v48  ;;  %v4429_v24 = vadd.f32 %v979_v4, %v959_v26  ;;  %v4431_v57 = vadd.f32 %v980_v52, %v960_v43  ;;  %v4433_v36 = vadd.f32 %v981_v61, %v961_v45  ;;  %v7150_v26 = vld [vmem:[#allocation35_spill] sm:$0xff]  ;;  %v7157_v55 = vld [vmem:[#allocation42_spill] sm:$0xff]  ;;  %v7159_v61 = vld [vmem:[#allocation44_spill] sm:$0xff] }
  0xc1   : > { %v4435_v34 = vadd.f32 %v982_v0, %v962_v30  ;;  %v4437_v41 = vadd.f32 %v983_v39, %v963_v35  ;;  %v4439_v50 = vadd.f32 %v984_v46, %v964_v42  ;;  %v4441_v11 = vadd.f32 %v985_v3, %v965_v54  ;;  %v7151_v30 = vld [vmem:[#allocation36_spill] sm:$0xff]  ;;  %v7152_v42 = vld [vmem:[#allocation37_spill] sm:$0xff]  ;;  %v7158_v4 = vld [vmem:[#allocation43_spill] sm:$0xff] }
  0xc2   : > { %v1010_v23 = vrot.slane %v7143_v16, 6  ;;  %v1011_v59 = vrot.slane %v7144_v18, 6  ;;  %v1013_v44 = vrot.slane %v7145_v32, 6  ;;  %v1014_v19 = vrot.slane %v7146_v62, 6  ;;  %v7160_v39 = vld [vmem:[#allocation45_spill] sm:$0xff]  ;;  %v7161_v3 = vld [vmem:[#allocation46_spill] sm:$0xff] }
  0xc3   : > { %v4447_v58 = vadd.f32 %v986_v5, %v966_v10  ;;  %v4449_v12 = vadd.f32 %v987_v17, %v967_v49  ;;  %v4451_v14 = vadd.f32 %v988_v20, %v968_v53  ;;  %v4453_v13 = vadd.f32 %v989_v22, %v969_v31  ;;  %v7153_v10 = vld [vmem:[#allocation38_spill] sm:$0xff]  ;;  %v7154_v53 = vld [vmem:[#allocation39_spill] sm:$0xff]  ;;  %v7163_v22 = vld [vmem:[#allocation48_spill] sm:$0xff] }
  0xc4   : > { %v4455_v15 = vadd.f32 %v990_v60, %v970_v37  ;;  %v4457_v9 = vadd.f32 %v991_v56, %v971_v38  ;;  %v4459_v7 = vadd.f32 %v992_v33, %v972_v40  ;;  %v1016_v2 = vrot.slane %v7147_v1, 6  ;;  %v7155_v37 = vld [vmem:[#allocation40_spill] sm:$0xff]  ;;  %v7156_v40 = vld [vmem:[#allocation41_spill] sm:$0xff]  ;;  %v7162_v17 = vld [vmem:[#allocation47_spill] sm:$0xff] }
  0xc5   : > { %v1012_v8 = vsel %vm1009_vm1, %v1010_v23, %v1011_v59  ;;  %v1017_v25 = vrot.slane %v7148_v21, 6  ;;  %v1019_v48 = vrot.slane %v7149_v27, 6  ;;  %v1020_v43 = vrot.slane %v7150_v26, 6  ;;  %v7165_v63 = vld [vmem:[#allocation50_spill] sm:$0xff]  ;;  %v7166_v18 = vld [vmem:[#allocation51_spill] sm:$0xff]  ;;  %v7167_v32 = vld [vmem:[#allocation52_spill] sm:$0xff] }
  0xc6   : > { %v4467_v45 = vsel %vm1009_vm1, %v1013_v44, %v1014_v19  ;;  %v1022_v35 = vrot.slane %v7151_v30, 6  ;;  %v1023_v54 = vrot.slane %v7152_v42, 6  ;;  %v1025_v49 = vrot.slane %v7153_v10, 6  ;;  %v7168_v19 = vld [vmem:[#allocation53_spill] sm:$0xff]  ;;  %v7169_v26 = vld [vmem:[#allocation54_spill] sm:$0xff]  ;;  %v7170_v42 = vld [vmem:[#allocation55_spill] sm:$0xff] }
  0xc7   : > { %v1026_v31 = vrot.slane %v7154_v53, 6  ;;  %v1028_v38 = vrot.slane %v7155_v37, 6  ;;  %v1029_v47 = vrot.slane %v7156_v40, 6  ;;  %v1031_v51 = vrot.slane %v7157_v55, 6 }
  0xc8   : > { %v1032_v52 = vrot.slane %v7158_v4, 6  ;;  %v1034_v0 = vrot.slane %v7159_v61, 6  ;;  %v1035_v46 = vrot.slane %v7160_v39, 6  ;;  %v1037_v5 = vrot.slane %v7161_v3, 6 }
  0xc9   : > { %v1038_v20 = vrot.slane %v7162_v17, 6  ;;  %v1040_v60 = vrot.slane %v7163_v22, 6  ;;  %v1041_v56 = vrot.slane %v7164_v29, 6  ;;  %v1043_v33 = vrot.slane %v7165_v63, 6  ;;  %v7186_v63 = vld [vmem:[#allocation69_spill] sm:$0xff] }
  0xca   : > { %v4485_v16 = vsel %vm1009_vm1, %v1016_v2, %v1017_v25  ;;  %v1044_v59 = vrot.slane %v7166_v18, 6  ;;  %v1046_v62 = vrot.slane %v7167_v32, 6  ;;  %v1047_v1 = vrot.slane %v7168_v19, 6 }
  0xcb   : > { %v4491_v21 = vsel %vm1009_vm1, %v1019_v48, %v1020_v43  ;;  %v4494_v27 = vsel %vm1009_vm1, %v1022_v35, %v1023_v54  ;;  %v1049_v30 = vrot.slane %v7169_v26, 6  ;;  %v1050_v10 = vrot.slane %v7170_v42, 6 }
  0xcc   : > { %v4499_v53 = vsel %vm1009_vm1, %v1025_v49, %v1026_v31  ;;  %v4502_v25 = vsel %vm1009_vm1, %v1028_v38, %v1029_v47  ;;  %v4505_v37 = vsel %vm1009_vm1, %v1031_v51, %v1032_v52  ;;  %v4508_v40 = vsel %vm1009_vm1, %v1034_v0, %v1035_v46 }
  0xcd   : > { %v4511_v43 = vsel %vm1009_vm1, %v1037_v5, %v1038_v20  ;;  %v4514_v54 = vsel %vm1009_vm1, %v1040_v60, %v1041_v56  ;;  %v4517_v55 = vsel %vm1009_vm1, %v1043_v33, %v1044_v59  ;;  %v1080_v31 = vsel %vm1009_vm1, 0.0, %v1010_v23  ;;  %v7179_v20 = vld [vmem:[#allocation33_spill] sm:$0xff] }
  0xce   : > { %7171 = vst [vmem:[#allocation61_spill] sm:$0xff] %v4511_v43  ;;  %7172 = vst [vmem:[#allocation56_spill] sm:$0xff] %v4514_v54  ;;  %v4521_v47 = vsel %vm1009_vm1, %v1046_v62, %v1047_v1  ;;  %v4524_v4 = vsel %vm1009_vm1, %v1049_v30, %v1050_v10  ;;  %v1081_v52 = vsel %vm1009_vm1, 0.0, %v1013_v44  ;;  %v4528_v61 = vsel %vm1009_vm1, 0.0, %v1016_v2  ;;  %v7192_v1 = vld [vmem:[#allocation72_spill] sm:$0xff] }
  0xcf   : > { %7173 = vst [vmem:[#allocation73_spill] sm:$0xff] %v4517_v55  ;;  %7174 = vst [vmem:[#allocation62_spill] sm:$0xff] %v4521_v47  ;;  %v4531_v39 = vsel %vm1009_vm1, 0.0, %v1019_v48  ;;  %v4534_v46 = vsel %vm1009_vm1, 0.0, %v1022_v35  ;;  %v4537_v3 = vsel %vm1009_vm1, 0.0, %v1025_v49  ;;  %v4540_v23 = vsel %vm1009_vm1, 0.0, %v1028_v38 }
  0xd0   : > { %7175 = vst [vmem:[#allocation57_spill] sm:$0xff] %v4524_v4  ;;  %v4543_v17 = vsel %vm1009_vm1, 0.0, %v1031_v51  ;;  %v4546_v44 = vsel %vm1009_vm1, 0.0, %v1034_v0  ;;  %v4549_v2 = vsel %vm1009_vm1, 0.0, %v1037_v5  ;;  %v7178_v48 = vld [vmem:[#allocation32_spill] sm:$0xff]  ;;  %v4554_v35 = vsel %vm1009_vm1, 0.0, %v1040_v60 }
  0xd1   : > { %7176 = vst [vmem:[#allocation74_spill] sm:$0xff] %v4546_v44  ;;  %7177 = vst [vmem:[#allocation63_spill] sm:$0xff] %v4549_v2  ;;  %v1097_v22 = vrot.slane %v7179_v20, %v7178_v48  ;;  %v4557_v49 = vsel %vm1009_vm1, 0.0, %v1043_v33  ;;  %v4560_v38 = vsel %vm1009_vm1, 0.0, %v1046_v62  ;;  %v4563_v51 = vsel %vm1009_vm1, 0.0, %v1049_v30  ;;  %v7184_v0 = vld [vmem:[#allocation67_spill] sm:$0xff] }
  0xd2   : > { %7180 = vst [vmem:[#allocation58_spill] sm:$0xff] %v4554_v35  ;;  %7181 = vst [vmem:[#allocation75_spill] sm:$0xff] %v4557_v49  ;;  %v1133_v29 = vrot.slane %v7184_v0, %v7178_v48  ;;  %v7185_v5 = vld [vmem:[#allocation68_spill] sm:$0xff]  ;;  %v4573_v60 = vrot.slane %v7186_v63, %v7178_v48  ;;  %v7188_v33 = vld [vmem:[#allocation70_spill] sm:$0xff]  ;;  %v4585_v26 = vrot.slane %v7192_v1, %v7178_v48 }
  0xd3   : > { %7182 = vst [vmem:[#allocation64_spill] sm:$0xff] %v4560_v38  ;;  %7183 = vst [vmem:[#allocation65_spill] sm:$0xff] %v4563_v51  ;;  %v4569_v56 = vrot.slane %v7185_v5, %v7178_v48  ;;  %v4577_v18 = vrot.slane %v7188_v33, %v7178_v48  ;;  %v1098_v59 = vmul.f32 %v1097_v22, %v1080_v31  ;;  %v7190_v62 = vld [vmem:[#allocation71_spill] sm:$0xff] }
  0xd4   : > { %7187 = vst [vmem:[#allocation59_spill] sm:$0xff] %v4573_v60  ;;  %v1099_v32 = vmul.f32 %v1097_v22, %v1012_v8  ;;  %v4581_v19 = vrot.slane %v7190_v62, %v7178_v48  ;;  %7193 = vst [vmem:[#allocation60_spill] sm:$0xff] %v4585_v26  ;;  %v1100_v30 = vmul.f32 %v1097_v22, %v1081_v52 }
  0xd5   : > { %7189 = vst [vmem:[#allocation76_spill] sm:$0xff] %v4577_v18  ;;  %v1101_v42 = vmul.f32 %v1097_v22, %v4467_v45  ;;  %v1102_v10 = vmul.f32 %v1097_v22, %v4528_v61  ;;  %v1103_v20 = vmul.f32 %v1097_v22, %v4485_v16  ;;  %v1104_v0 = vmul.f32 %v1097_v22, %v4531_v39 }
  0xd6   : > { %7191 = vst [vmem:[#allocation66_spill] sm:$0xff] %v4581_v19  ;;  %v1105_v31 = vmul.f32 %v1097_v22, %v4491_v21  ;;  %v1106_v8 = vmul.f32 %v1097_v22, %v4534_v46  ;;  %v1107_v5 = vmul.f32 %v1097_v22, %v4494_v27  ;;  %v1108_v63 = vmul.f32 %v1097_v22, %v4537_v3 }
  0xd7   : > { %v1109_v48 = vmul.f32 %v1097_v22, %v4499_v53  ;;  %v1110_v33 = vmul.f32 %v1097_v22, %v4540_v23  ;;  %v1111_v62 = vmul.f32 %v1097_v22, %v4502_v25  ;;  %v1112_v1 = vmul.f32 %v1097_v22, %v4543_v17 }
  0xd8   : > { %v1113_v4 = vmul.f32 %v1097_v22, %v4505_v37  ;;  %v1114_v51 = vadd.f32 %v1098_v59, %v4425_v6  ;;  %v1115_v26 = vadd.f32 %v1099_v32, %v4427_v28  ;;  %v1116_v47 = vadd.f32 %v1100_v30, %v4429_v24 }
  0xd9   : > { %v1117_v38 = vadd.f32 %v1101_v42, %v4431_v57  ;;  %v1118_v19 = vadd.f32 %v1102_v10, %v4433_v36  ;;  %v1119_v55 = vadd.f32 %v1103_v20, %v4435_v34  ;;  %v1120_v49 = vadd.f32 %v1104_v0, %v4437_v41 }
  0xda   : > { %v1121_v18 = vadd.f32 %v1105_v31, %v4439_v50  ;;  %v1122_v54 = vadd.f32 %v1106_v8, %v4441_v11  ;;  %v1123_v22 = vadd.f32 %v1107_v5, %v4447_v58  ;;  %v1124_v6 = vadd.f32 %v1108_v63, %v4449_v12 }
  0xdb   : > { %v1125_v28 = vadd.f32 %v1109_v48, %v4451_v14  ;;  %v1126_v24 = vadd.f32 %v1110_v33, %v4453_v13  ;;  %v1127_v57 = vadd.f32 %v1111_v62, %v4455_v15  ;;  %v1128_v36 = vadd.f32 %v1112_v1, %v4457_v9 }
  0xdc   : > { %v1129_v34 = vadd.f32 %v1113_v4, %v4459_v7  ;;  %v1134_v59 = vmul.f32 %v1133_v29, %v1081_v52  ;;  %v1135_v41 = vmul.f32 %v1133_v29, %v4467_v45  ;;  %v1136_v50 = vmul.f32 %v1133_v29, %v4528_v61 }
  0xdd   : > { %v1137_v11 = vmul.f32 %v1133_v29, %v4485_v16  ;;  %v1138_v58 = vmul.f32 %v1133_v29, %v4531_v39  ;;  %v1139_v12 = vmul.f32 %v1133_v29, %v4491_v21  ;;  %v1140_v14 = vmul.f32 %v1133_v29, %v4534_v46 }
  0xde   : > { %v1141_v13 = vmul.f32 %v1133_v29, %v4494_v27  ;;  %v1142_v15 = vmul.f32 %v1133_v29, %v4537_v3  ;;  %v1143_v9 = vmul.f32 %v1133_v29, %v4499_v53  ;;  %v1144_v7 = vmul.f32 %v1133_v29, %v4540_v23 }
  0xdf   : > { %v1145_v45 = vmul.f32 %v1133_v29, %v4502_v25  ;;  %v1146_v4 = vmul.f32 %v1133_v29, %v4543_v17  ;;  %v1147_v52 = vmul.f32 %v1133_v29, %v4505_v37  ;;  %v1148_v32 = vmul.f32 %v1133_v29, %v4546_v44 }
  0xe0   : > { %v1149_v30 = vmul.f32 %v1133_v29, %v4508_v40  ;;  %v1150_v42 = vadd.f32 %v1134_v59, %v1114_v51  ;;  %v1151_v10 = vadd.f32 %v1135_v41, %v1115_v26  ;;  %v1152_v20 = vadd.f32 %v1136_v50, %v1116_v47  ;;  %v7194_v26 = vld [vmem:[#allocation74_spill] sm:$0xff] }
  0xe1   : > { %v1153_v0 = vadd.f32 %v1137_v11, %v1117_v38  ;;  %v1154_v31 = vadd.f32 %v1138_v58, %v1118_v19  ;;  %v1155_v8 = vadd.f32 %v1139_v12, %v1119_v55  ;;  %v1156_v5 = vadd.f32 %v1140_v14, %v1120_v49 }
  0xe2   : > { %v1157_v63 = vadd.f32 %v1141_v13, %v1121_v18  ;;  %v1158_v48 = vadd.f32 %v1142_v15, %v1122_v54  ;;  %v1159_v33 = vadd.f32 %v1143_v9, %v1123_v22  ;;  %v1160_v62 = vadd.f32 %v1144_v7, %v1124_v6 }
  0xe3   : > { %v1161_v1 = vadd.f32 %v1145_v45, %v1125_v28  ;;  %v1162_v35 = vadd.f32 %v1146_v4, %v1126_v24  ;;  %v1163_v60 = vadd.f32 %v1147_v52, %v1127_v57  ;;  %v1164_v43 = vadd.f32 %v1148_v32, %v1128_v36  ;;  %v7195_v28 = vld [vmem:[#allocation63_spill] sm:$0xff]  ;;  %v7196_v57 = vld [vmem:[#allocation61_spill] sm:$0xff] }
  0xe4   : > { %v1165_v2 = vadd.f32 %v1149_v30, %v1129_v34  ;;  %v1170_v44 = vmul.f32 %v4569_v56, %v4528_v61  ;;  %v1171_v51 = vmul.f32 %v4569_v56, %v4485_v16  ;;  %v1172_v47 = vmul.f32 %v4569_v56, %v4531_v39  ;;  %v7197_v30 = vld [vmem:[#allocation59_spill] sm:$0xff] }
  0xe5   : > { %v1173_v55 = vmul.f32 %v4569_v56, %v4491_v21  ;;  %v1174_v54 = vmul.f32 %v4569_v56, %v4534_v46  ;;  %v1175_v49 = vmul.f32 %v4569_v56, %v4494_v27  ;;  %v1176_v38 = vmul.f32 %v4569_v56, %v4537_v3 }
  0xe6   : > { %v1177_v61 = vmul.f32 %v4569_v56, %v4499_v53  ;;  %v1178_v16 = vmul.f32 %v4569_v56, %v4540_v23  ;;  %v1179_v29 = vmul.f32 %v4569_v56, %v4502_v25  ;;  %v1180_v18 = vmul.f32 %v4569_v56, %v4543_v17 }
  0xe7   : > { %v1181_v19 = vmul.f32 %v4569_v56, %v4505_v37  ;;  %v1182_v22 = vmul.f32 %v4569_v56, %v7194_v26  ;;  %v1183_v6 = vmul.f32 %v4569_v56, %v4508_v40  ;;  %v1184_v24 = vmul.f32 %v4569_v56, %v7195_v28 }
  0xe8   : > { %v1185_v36 = vmul.f32 %v4569_v56, %v7196_v57  ;;  %v1186_v34 = vadd.f32 %v1170_v44, %v1150_v42  ;;  %v1187_v59 = vadd.f32 %v1171_v51, %v1151_v10  ;;  %v1188_v41 = vadd.f32 %v1172_v47, %v1152_v20 }
  0xe9   : > { %v1189_v50 = vadd.f32 %v1173_v55, %v1153_v0  ;;  %v1190_v11 = vadd.f32 %v1174_v54, %v1154_v31  ;;  %v1191_v58 = vadd.f32 %v1175_v49, %v1155_v8  ;;  %v1192_v12 = vadd.f32 %v1176_v38, %v1156_v5  ;;  %v7198_v0 = vld [vmem:[#allocation63_spill] sm:$0xff]  ;;  %v7199_v5 = vld [vmem:[#allocation58_spill] sm:$0xff] }
  0xea   : > { %v1193_v14 = vadd.f32 %v1177_v61, %v1157_v63  ;;  %v1194_v13 = vadd.f32 %v1178_v16, %v1158_v48  ;;  %v1195_v15 = vadd.f32 %v1179_v29, %v1159_v33  ;;  %v1196_v9 = vadd.f32 %v1180_v18, %v1160_v62  ;;  %v7200_v48 = vld [vmem:[#allocation56_spill] sm:$0xff] }
  0xeb   : > { %v1197_v7 = vadd.f32 %v1181_v19, %v1161_v1  ;;  %v1198_v45 = vadd.f32 %v1182_v22, %v1162_v35  ;;  %v1199_v4 = vadd.f32 %v1183_v6, %v1163_v60  ;;  %v1200_v52 = vadd.f32 %v1184_v24, %v1164_v43 }
  0xec   : > { %v1201_v32 = vadd.f32 %v1185_v36, %v1165_v2  ;;  %v1206_v28 = vmul.f32 %v7197_v30, %v4531_v39  ;;  %v1207_v44 = vmul.f32 %v7197_v30, %v4491_v21  ;;  %v1208_v56 = vmul.f32 %v7197_v30, %v4534_v46  ;;  %v7201_v36 = vld [vmem:[#allocation76_spill] sm:$0xff] }
  0xed   : > { %v1209_v42 = vmul.f32 %v7197_v30, %v4494_v27  ;;  %v1210_v10 = vmul.f32 %v7197_v30, %v4537_v3  ;;  %v1211_v35 = vmul.f32 %v7197_v30, %v4499_v53  ;;  %v1212_v43 = vmul.f32 %v7197_v30, %v4540_v23 }
  0xee   : > { %v1213_v39 = vmul.f32 %v7197_v30, %v4502_v25  ;;  %v1214_v21 = vmul.f32 %v7197_v30, %v4543_v17  ;;  %v1215_v2 = vmul.f32 %v7197_v30, %v4505_v37  ;;  %v1216_v60 = vmul.f32 %v7197_v30, %v7194_v26 }
  0xef   : > { %v1217_v20 = vmul.f32 %v7197_v30, %v4508_v40  ;;  %v1218_v31 = vmul.f32 %v7197_v30, %v7198_v0  ;;  %v1219_v8 = vmul.f32 %v7197_v30, %v7196_v57  ;;  %v1220_v63 = vmul.f32 %v7197_v30, %v7199_v5 }
  0xf0   : > { %v1221_v33 = vmul.f32 %v7197_v30, %v7200_v48  ;;  %v1222_v62 = vadd.f32 %v1206_v28, %v1186_v34  ;;  %v1223_v1 = vadd.f32 %v1207_v44, %v1187_v59  ;;  %v1224_v51 = vadd.f32 %v1208_v56, %v1188_v41 }
  0xf1   : > { %v1225_v47 = vadd.f32 %v1209_v42, %v1189_v50  ;;  %v1226_v55 = vadd.f32 %v1210_v10, %v1190_v11  ;;  %v1227_v54 = vadd.f32 %v1211_v35, %v1191_v58  ;;  %v1228_v49 = vadd.f32 %v1212_v43, %v1192_v12 }
  0xf2   : > { %v1229_v38 = vadd.f32 %v1213_v39, %v1193_v14  ;;  %v1230_v61 = vadd.f32 %v1214_v21, %v1194_v13  ;;  %v1231_v16 = vadd.f32 %v1215_v2, %v1195_v15  ;;  %v1232_v29 = vadd.f32 %v1216_v60, %v1196_v9  ;;  %v7202_v13 = vld [vmem:[#allocation58_spill] sm:$0xff] }
  0xf3   : > { %v1233_v18 = vadd.f32 %v1217_v20, %v1197_v7  ;;  %v1234_v19 = vadd.f32 %v1218_v31, %v1198_v45  ;;  %v1235_v22 = vadd.f32 %v1219_v8, %v1199_v4  ;;  %v1236_v6 = vadd.f32 %v1220_v63, %v1200_v52  ;;  %v7203_v7 = vld [vmem:[#allocation75_spill] sm:$0xff]  ;;  %v7204_v4 = vld [vmem:[#allocation73_spill] sm:$0xff] }
  0xf4   : > { %v1237_v24 = vadd.f32 %v1221_v33, %v1201_v32  ;;  %v1242_v5 = vmul.f32 %v7201_v36, %v4534_v46  ;;  %v1243_v28 = vmul.f32 %v7201_v36, %v4494_v27  ;;  %v1244_v34 = vmul.f32 %v7201_v36, %v4537_v3  ;;  %v7205_v33 = vld [vmem:[#allocation66_spill] sm:$0xff] }
  0xf5   : > { %v1245_v59 = vmul.f32 %v7201_v36, %v4499_v53  ;;  %v1246_v41 = vmul.f32 %v7201_v36, %v4540_v23  ;;  %v1247_v50 = vmul.f32 %v7201_v36, %v4502_v25  ;;  %v1248_v11 = vmul.f32 %v7201_v36, %v4543_v17 }
  0xf6   : > { %v1249_v46 = vmul.f32 %v7201_v36, %v4505_v37  ;;  %v1250_v27 = vmul.f32 %v7201_v36, %v7194_v26  ;;  %v1251_v58 = vmul.f32 %v7201_v36, %v4508_v40  ;;  %v1252_v12 = vmul.f32 %v7201_v36, %v7198_v0 }
  0xf7   : > { %v1253_v14 = vmul.f32 %v7201_v36, %v7196_v57  ;;  %v1254_v15 = vmul.f32 %v7201_v36, %v7202_v13  ;;  %v1255_v9 = vmul.f32 %v7201_v36, %v7200_v48  ;;  %v1256_v45 = vmul.f32 %v7201_v36, %v7203_v7 }
  0xf8   : > { %v1257_v52 = vmul.f32 %v7201_v36, %v7204_v4  ;;  %v1258_v32 = vadd.f32 %v1242_v5, %v1222_v62  ;;  %v1259_v30 = vadd.f32 %v1243_v28, %v1223_v1  ;;  %v1260_v44 = vadd.f32 %v1244_v34, %v1224_v51 }
  0xf9   : > { %v1261_v56 = vadd.f32 %v1245_v59, %v1225_v47  ;;  %v1262_v42 = vadd.f32 %v1246_v41, %v1226_v55  ;;  %v1263_v10 = vadd.f32 %v1247_v50, %v1227_v54  ;;  %v1264_v35 = vadd.f32 %v1248_v11, %v1228_v49 }
  0xfa   : > { %v1265_v43 = vadd.f32 %v1249_v46, %v1229_v38  ;;  %v1266_v39 = vadd.f32 %v1250_v27, %v1230_v61  ;;  %v1267_v21 = vadd.f32 %v1251_v58, %v1231_v16  ;;  %v1268_v2 = vadd.f32 %v1252_v12, %v1232_v29  ;;  %v7206_v61 = vld [vmem:[#allocation75_spill] sm:$0xff] }
  0xfb   : > { %v1269_v60 = vadd.f32 %v1253_v14, %v1233_v18  ;;  %v1270_v20 = vadd.f32 %v1254_v15, %v1234_v19  ;;  %v1271_v31 = vadd.f32 %v1255_v9, %v1235_v22  ;;  %v1272_v8 = vadd.f32 %v1256_v45, %v1236_v6  ;;  %v7207_v18 = vld [vmem:[#allocation64_spill] sm:$0xff]  ;;  %v7208_v22 = vld [vmem:[#allocation62_spill] sm:$0xff] }
  0xfc   : > { %v1273_v63 = vadd.f32 %v1257_v52, %v1237_v24  ;;  %v1278_v7 = vmul.f32 %v7205_v33, %v4537_v3  ;;  %v1279_v5 = vmul.f32 %v7205_v33, %v4499_v53  ;;  %v1280_v62 = vmul.f32 %v7205_v33, %v4540_v23  ;;  %v7209_v52 = vld [vmem:[#allocation60_spill] sm:$0xff] }
  0xfd   : > { %v1281_v1 = vmul.f32 %v7205_v33, %v4502_v25  ;;  %v1282_v51 = vmul.f32 %v7205_v33, %v4543_v17  ;;  %v1283_v47 = vmul.f32 %v7205_v33, %v4505_v37  ;;  %v1284_v55 = vmul.f32 %v7205_v33, %v7194_v26 }
  0xfe   : > { %v1285_v3 = vmul.f32 %v7205_v33, %v4508_v40  ;;  %v1286_v53 = vmul.f32 %v7205_v33, %v7198_v0  ;;  %v1287_v54 = vmul.f32 %v7205_v33, %v7196_v57  ;;  %v1288_v49 = vmul.f32 %v7205_v33, %v7202_v13 }
  0xff   : > { %v1289_v38 = vmul.f32 %v7205_v33, %v7200_v48  ;;  %v1290_v16 = vmul.f32 %v7205_v33, %v7206_v61  ;;  %v1291_v29 = vmul.f32 %v7205_v33, %v7204_v4  ;;  %v1292_v19 = vmul.f32 %v7205_v33, %v7207_v18 }
 0x100   : > { %v1293_v6 = vmul.f32 %v7205_v33, %v7208_v22  ;;  %v1294_v24 = vadd.f32 %v1278_v7, %v1258_v32  ;;  %v1295_v36 = vadd.f32 %v1279_v5, %v1259_v30  ;;  %v1296_v28 = vadd.f32 %v1280_v62, %v1260_v44  ;;  %v4816_v62 = vld [vmem:[%s3991_s20 + $0x8] sm:$0xff] }
 0x101   : > { %v1297_v34 = vadd.f32 %v1281_v1, %v1261_v56  ;;  %v1298_v59 = vadd.f32 %v1282_v51, %v1262_v42  ;;  %v1299_v41 = vadd.f32 %v1283_v47, %v1263_v10  ;;  %v1300_v50 = vadd.f32 %v1284_v55, %v1264_v35  ;;  %v7211_v10 = vld [vmem:[#allocation57_spill] sm:$0xff]  ;;  %7213 = vst [vmem:[#allocation27_spill] sm:$0xff] %v4816_v62  ;;  %v4820_v51 = vld [vmem:[%s3991_s20 + $0x10] sm:$0xff]  ;;  %v4824_v55 = vld [vmem:[%s3991_s20 + $0x18] sm:$0xff] }
 0x102   : > { %v1301_v11 = vadd.f32 %v1285_v3, %v1265_v43  ;;  %v1302_v46 = vadd.f32 %v1286_v53, %v1266_v39  ;;  %v1303_v27 = vadd.f32 %v1287_v54, %v1267_v21  ;;  %v1304_v58 = vadd.f32 %v1288_v49, %v1268_v2  ;;  %7214 = vst [vmem:[#allocation28_spill] sm:$0xff] %v4820_v51 }
 0x103   : > { %v1305_v12 = vadd.f32 %v1289_v38, %v1269_v60  ;;  %v1306_v14 = vadd.f32 %v1290_v16, %v1270_v20  ;;  %v1307_v15 = vadd.f32 %v1291_v29, %v1271_v31  ;;  %v1308_v9 = vadd.f32 %v1292_v19, %v1272_v8  ;;  %7215 = vst [vmem:[#allocation29_spill] sm:$0xff] %v4824_v55  ;;  %v4840_v29 = vld [vmem:[%s3991_s20 + $0x20] sm:$0xff]  ;;  %v4844_v19 = vld [vmem:[%s3991_s20 + $0x28] sm:$0xff] }
 0x104   : > { %v1309_v45 = vadd.f32 %v1293_v6, %v1273_v63  ;;  %v1314_v33 = vmul.f32 %v7209_v52, %v4540_v23  ;;  %v1315_v7 = vmul.f32 %v7209_v52, %v4502_v25  ;;  %v1316_v32 = vmul.f32 %v7209_v52, %v4543_v17  ;;  %v4812_v63 = vld [vmem:[%s3991_s20] sm:$0xff]  ;;  %7216 = vst [vmem:[#allocation30_spill] sm:$0xff] %v4840_v29 }
 0x105   : > { %v1317_v30 = vmul.f32 %v7209_v52, %v4505_v37  ;;  %v1318_v44 = vmul.f32 %v7209_v52, %v7194_v26  ;;  %v1319_v56 = vmul.f32 %v7209_v52, %v4508_v40  ;;  %v1320_v42 = vmul.f32 %v7209_v52, %v7198_v0  ;;  %v7210_v0 = vld [vmem:[#allocation65_spill] sm:$0xff]  ;;  %7212 = vst [vmem:[#allocation26_spill] sm:$0xff] %v4812_v63 }
 0x106   : > { %v1321_v23 = vmul.f32 %v7209_v52, %v7196_v57  ;;  %v1322_v25 = vmul.f32 %v7209_v52, %v7202_v13  ;;  %v1323_v17 = vmul.f32 %v7209_v52, %v7200_v48  ;;  %v1324_v37 = vmul.f32 %v7209_v52, %v7206_v61  ;;  %7217 = vst [vmem:[#allocation31_spill] sm:$0xff] %v4844_v19 }
 0x107   : > { %v1325_v26 = vmul.f32 %v7209_v52, %v7204_v4  ;;  %v1326_v40 = vmul.f32 %v7209_v52, %v7207_v18  ;;  %v1327_v57 = vmul.f32 %v7209_v52, %v7208_v22  ;;  %v1328_v13 = vmul.f32 %v7209_v52, %v7210_v0 }
 0x108   : > { %v1329_v48 = vmul.f32 %v7209_v52, %v7211_v10  ;;  %v4791_v35 = vadd.f32 %v1314_v33, %v1294_v24  ;;  %v4793_v43 = vadd.f32 %v1315_v7, %v1295_v36  ;;  %v4795_v4 = vadd.f32 %v1316_v32, %v1296_v28  ;;  %v4858_v36 = vld [vmem:[%s3991_s20 + $0x30] sm:$0xff]  ;;  %v4894_v32 = vld [vmem:[%s3991_s20 + $0x78] sm:$0xff] }
 0x109   : > { %v4797_v39 = vadd.f32 %v1317_v30, %v1297_v34  ;;  %v4799_v21 = vadd.f32 %v1318_v44, %v1298_v59  ;;  %v4801_v2 = vadd.f32 %v1319_v56, %v1299_v41  ;;  %v4803_v60 = vadd.f32 %v1320_v42, %v1300_v50  ;;  %7218 = vst [vmem:[#allocation34_spill] sm:$0xff] %v4858_v36  ;;  %v4862_v34 = vld [vmem:[%s3991_s20 + $0x38] sm:$0xff]  ;;  %v4866_v41 = vld [vmem:[%s3991_s20 + $0x40] sm:$0xff]  ;;  %v4890_v33 = vld [vmem:[%s3991_s20 + $0x70] sm:$0xff] }
 0x10a   : > { %v4805_v20 = vadd.f32 %v1321_v23, %v1301_v11  ;;  %v4807_v31 = vadd.f32 %v1322_v25, %v1302_v46  ;;  %v4809_v8 = vadd.f32 %v1323_v17, %v1303_v27  ;;  %v6902_v5 = vrot.slane %v4812_v63, 7  ;;  %7219 = vst [vmem:[#allocation35_spill] sm:$0xff] %v4862_v34  ;;  %7220 = vst [vmem:[#allocation36_spill] sm:$0xff] %v4866_v41  ;;  %v4870_v11 = vld [vmem:[%s3991_s20 + $0x48] sm:$0xff]  ;;  %v4874_v27 = vld [vmem:[%s3991_s20 + $0x50] sm:$0xff] }
 0x10b   : > { %v1348_v1 = vrot.slane %v4816_v62, 7  ;;  %v6900_v47 = vrot.slane %v4820_v51, 7  ;;  %v1351_v3 = vrot.slane %v4824_v55, 7  ;;  %v4827_v53 = vadd.f32 %v1324_v37, %v1304_v58  ;;  %7221 = vst [vmem:[#allocation37_spill] sm:$0xff] %v4870_v11  ;;  %7222 = vst [vmem:[#allocation38_spill] sm:$0xff] %v4874_v27  ;;  %v4898_v44 = vld [vmem:[%s3991_s20 + $0x80] sm:$0xff] }
 0x10c   : > { %v4829_v54 = vadd.f32 %v1325_v26, %v1305_v12  ;;  %v4831_v49 = vadd.f32 %v1326_v40, %v1306_v14  ;;  %v4833_v38 = vadd.f32 %v1327_v57, %v1307_v15  ;;  %v4835_v61 = vadd.f32 %v1328_v13, %v1308_v9  ;;  %v4878_v12 = vld [vmem:[%s3991_s20 + $0x58] sm:$0xff]  ;;  %v4882_v15 = vld [vmem:[%s3991_s20 + $0x60] sm:$0xff]  ;;  %7226 = vst [vmem:[#allocation42_spill] sm:$0xff] %v4890_v33  ;;  %v4902_v42 = vld [vmem:[%s3991_s20 + $0x88] sm:$0xff] }
 0x10d   : > { %v4837_v16 = vadd.f32 %v1329_v48, %v1309_v45  ;;  %v6901_v18 = vrot.slane %v4840_v29, 7  ;;  %v1354_v22 = vrot.slane %v4844_v19, 7  ;;  %v4850_v6 = vsel %vm1346_vm2, %v6902_v5, %v1348_v1  ;;  %7223 = vst [vmem:[#allocation39_spill] sm:$0xff] %v4878_v12  ;;  %7224 = vst [vmem:[#allocation40_spill] sm:$0xff] %v4882_v15  ;;  %v4886_v45 = vld [vmem:[%s3991_s20 + $0x68] sm:$0xff]  ;;  %v4906_v25 = vld [vmem:[%s3991_s20 + $0x90] sm:$0xff] }
 0x10e   : > { %v4855_v24 = vsel %vm1346_vm2, %v6900_v47, %v1351_v3  ;;  %v1356_v28 = vrot.slane %v4858_v36, 7  ;;  %v1357_v59 = vrot.slane %v4862_v34, 7  ;;  %v1359_v50 = vrot.slane %v4866_v41, 7  ;;  %7225 = vst [vmem:[#allocation41_spill] sm:$0xff] %v4886_v45  ;;  %7227 = vst [vmem:[#allocation43_spill] sm:$0xff] %v4894_v32  ;;  %v4910_v37 = vld [vmem:[%s3991_s20 + $0x98] sm:$0xff] }
 0x10f   : > { %v1360_v46 = vrot.slane %v4870_v11, 7  ;;  %v1362_v58 = vrot.slane %v4874_v27, 7  ;;  %v1363_v14 = vrot.slane %v4878_v12, 7  ;;  %v1365_v9 = vrot.slane %v4882_v15, 7  ;;  %7228 = vst [vmem:[#allocation44_spill] sm:$0xff] %v4898_v44  ;;  %7229 = vst [vmem:[#allocation45_spill] sm:$0xff] %v4902_v42 }
 0x110   : > { %v1366_v52 = vrot.slane %v4886_v45, 7  ;;  %v1368_v7 = vrot.slane %v4890_v33, 7  ;;  %v1369_v30 = vrot.slane %v4894_v32, 7  ;;  %v1371_v56 = vrot.slane %v4898_v44, 7  ;;  %7230 = vst [vmem:[#allocation46_spill] sm:$0xff] %v4906_v25  ;;  %7231 = vst [vmem:[#allocation47_spill] sm:$0xff] %v4910_v37 }
 0x111   : > { %v1372_v23 = vrot.slane %v4902_v42, 7  ;;  %v1374_v17 = vrot.slane %v4906_v25, 7  ;;  %v1375_v26 = vrot.slane %v4910_v37, 7  ;;  %v4916_v40 = vsel %vm1346_vm2, %v6901_v18, %v1354_v22  ;;  %v4919_v57 = vld [vmem:[%s3991_s20 + $0xa0] sm:$0xff]  ;;  %v4923_v13 = vld [vmem:[%s3991_s20 + $0xa8] sm:$0xff]  ;;  %v4927_v48 = vld [vmem:[%s3991_s20 + $0xb0] sm:$0xff] }
 0x112   : > { %7232 = vst [vmem:[#allocation48_spill] sm:$0xff] %v4919_v57  ;;  %v1377_v0 = vrot.slane %v4919_v57, 7  ;;  %7233 = vst [vmem:[#allocation49_spill] sm:$0xff] %v4923_v13  ;;  %v1378_v10 = vrot.slane %v4923_v13, 7  ;;  %v1380_v1 = vrot.slane %v4927_v48, 7  ;;  %v4931_v3 = vsel %vm1346_vm2, %v1356_v28, %v1357_v59  ;;  %v4934_v47 = vld [vmem:[%s3991_s20 + $0xb8] sm:$0xff] }
 0x113   : > { %7234 = vst [vmem:[#allocation50_spill] sm:$0xff] %v4927_v48  ;;  %7235 = vst [vmem:[#allocation51_spill] sm:$0xff] %v4934_v47  ;;  %v1381_v22 = vrot.slane %v4934_v47, 7  ;;  %v4938_v18 = vld [vmem:[%s3991_s20 + $0xc0] sm:$0xff]  ;;  %v4942_v57 = vld [vmem:[%s3991_s20 + $0xc8] sm:$0xff]  ;;  %v4946_v13 = vsel %vm1346_vm2, %v1359_v50, %v1360_v46  ;;  %v4949_v48 = vsel %vm1346_vm2, %v1362_v58, %v1363_v14  ;;  %v4963_v44 = vsel %vm1346_vm2, %v1368_v7, %v1369_v30 }
 0x114   : > { %7236 = vst [vmem:[#allocation52_spill] sm:$0xff] %v4938_v18  ;;  %v1383_v5 = vrot.slane %v4938_v18, 7  ;;  %7237 = vst [vmem:[#allocation53_spill] sm:$0xff] %v4942_v57  ;;  %v1384_v37 = vrot.slane %v4942_v57, 7  ;;  %v4952_v59 = vld [vmem:[%s3991_s20 + $0xd0] sm:$0xff]  ;;  %v4956_v42 = vld [vmem:[%s3991_s20 + $0xd8] sm:$0xff]  ;;  %v4960_v18 = vsel %vm1346_vm2, %v1365_v9, %v1366_v52  ;;  %v4966_v46 = vsel %vm1346_vm2, %v1371_v56, %v1372_v23 }
 0x115   : > { %7238 = vst [vmem:[#allocation54_spill] sm:$0xff] %v4952_v59  ;;  %v1386_v25 = vrot.slane %v4952_v59, 7  ;;  %7239 = vst [vmem:[#allocation55_spill] sm:$0xff] %v4956_v42  ;;  %v1387_v47 = vrot.slane %v4956_v42, 7  ;;  %v4969_v14 = vsel %vm1346_vm2, %v1374_v17, %v1375_v26  ;;  %v4972_v57 = vsel %vm1346_vm2, %v1377_v0, %v1378_v10  ;;  %v5074_v27 = vld [vmem:[%s6830_s1 + $0x28] sm:$0x7f] }
 0x116   : > { %7240 = vst [vmem:[#allocation32_spill] sm:$0xff] %v4969_v14  ;;  %7241 = vst [vmem:[#allocation33_spill] sm:$0xff] %v4972_v57  ;;  %v4975_v59 = vsel %vm1346_vm2, %v1380_v1, %v1381_v22  ;;  %v4978_v42 = vsel %vm1346_vm2, %v1383_v5, %v1384_v37  ;;  %v7244_v52 = vrot.slane %v4812_v63, 7  ;;  %v7246_v23 = vrot.slane %v4820_v51, 7 }
 0x117   : > { %7242 = vst [vmem:[#allocation67_spill] sm:$0xff] %v4975_v59  ;;  %7243 = vst [vmem:[#allocation68_spill] sm:$0xff] %v4978_v42  ;;  %v4984_v32 = vsel %vm1346_vm2, %v1386_v25, %v1387_v47  ;;  %v7247_v10 = vrot.slane %v4840_v29, 7  ;;  %v4997_v37 = vsel %vm1346_vm2, 0.0, %v1356_v28  ;;  %v5000_v33 = vsel %vm1346_vm2, 0.0, %v1359_v50  ;;  %v7251_v50 = vld [vmem:[#allocation25_spill] sm:$0xff] }
 0x118   : > { %v1417_v30 = vsel %vm1346_vm2, 0.0, %v7244_v52  ;;  %7245 = vst [vmem:[#allocation69_spill] sm:$0xff] %v4984_v32  ;;  %v4989_v26 = vsel %vm1346_vm2, 0.0, %v7246_v23  ;;  %v5003_v52 = vsel %vm1346_vm2, 0.0, %v1362_v58  ;;  %v5006_v47 = vsel %vm1346_vm2, 0.0, %v1365_v9  ;;  %7262 = vst [vmem:[#allocation64_spill] sm:$0xff] %v5074_v27 }
 0x119   : > { %v4994_v22 = vsel %vm1346_vm2, 0.0, %v7247_v10  ;;  %v5009_v23 = vsel %vm1346_vm2, 0.0, %v1368_v7  ;;  %v5012_v45 = vsel %vm1346_vm2, 0.0, %v1371_v56  ;;  %v5015_v10 = vsel %vm1346_vm2, 0.0, %v1374_v17  ;;  %v3616_v17 = vld [vmem:[%s6830_s1] sm:$0x7f] }
 0x11a   : > { %7248 = vst [vmem:[#allocation70_spill] sm:$0xff] %v5012_v45  ;;  %7249 = vst [vmem:[#allocation71_spill] sm:$0xff] %v5015_v10  ;;  %v5018_v28 = vsel %vm1346_vm2, 0.0, %v1377_v0  ;;  %v1433_v15 = vsub.s32 2, %v7251_v50  ;;  %v5022_v58 = vsel %vm1346_vm2, 0.0, %v1380_v1  ;;  %v5025_v9 = vsel %vm1346_vm2, 0.0, %v1383_v5 }
 0x11b   : > { %7250 = vst [vmem:[#allocation72_spill] sm:$0xff] %v5018_v28  ;;  %7252 = vst [vmem:[#allocation74_spill] sm:$0xff] %v5022_v58  ;;  %v5028_v7 = vsel %vm1346_vm2, 0.0, %v1386_v25  ;;  %v5031_v56 = vsub.s32 3, %v7251_v50  ;;  %v5042_v5 = vld [vmem:[%s6830_s1 + $0x8] sm:$0x7f] }
 0x11c   : > { %7253 = vst [vmem:[#allocation61_spill] sm:$0xff] %v5025_v9  ;;  %7254 = vst [vmem:[#allocation59_spill] sm:$0xff] %v5028_v7  ;;  %v1434_v0 = vrot.slane %v3616_v17, %v1433_v15  ;;  %v1470_v25 = vrot.slane %v5042_v5, %v1433_v15  ;;  %v5048_v50 = vld [vmem:[%s6830_s1 + $0x10] sm:$0x7f]  ;;  %v5058_v1 = vld [vmem:[%s6830_s1 + $0x18] sm:$0x7f]  ;;  %v5077_v12 = vrot.slane %v5074_v27, %v1433_v15 }
 0x11d   : > { %7255 = vst [vmem:[#allocation63_spill] sm:$0xff] %v5031_v56  ;;  %7256 = vst [vmem:[#allocation56_spill] sm:$0xff] %v5042_v5  ;;  %v5051_v11 = vrot.slane %v5048_v50, %v1433_v15  ;;  %v5061_v41 = vrot.slane %v5058_v1, %v1433_v15  ;;  %v5066_v5 = vld [vmem:[%s6830_s1 + $0x20] sm:$0x7f]  ;;  %v5090_v29 = vrot.slane %v3616_v17, %v5031_v56 }
 0x11e   : > { %7257 = vst [vmem:[#allocation76_spill] sm:$0xff] %v5048_v50  ;;  %7258 = vst [vmem:[#allocation58_spill] sm:$0xff] %v5058_v1  ;;  %v5069_v50 = vrot.slane %v5066_v5, %v1433_v15  ;;  %v5082_v1 = vld [vmem:[%s6830_s1 + $0x30] sm:$0x7f]  ;;  %v1435_v36 = vmul.f32 %v1434_v0, %v1417_v30  ;;  %v1437_v19 = vmul.f32 %v1434_v0, %v4989_v26 }
 0x11f   : > { %7259 = vst [vmem:[#allocation73_spill] sm:$0xff] %v5061_v41  ;;  %7260 = vst [vmem:[#allocation66_spill] sm:$0xff] %v5066_v5  ;;  %v5085_v34 = vrot.slane %v5082_v1, %v1433_v15  ;;  %v1436_v5 = vmul.f32 %v1434_v0, %v4850_v6  ;;  %v1438_v55 = vmul.f32 %v1434_v0, %v4855_v24 }
 0x120   : > { %7261 = vst [vmem:[#allocation75_spill] sm:$0xff] %v5069_v50  ;;  %7263 = vst [vmem:[#allocation62_spill] sm:$0xff] %v5077_v12  ;;  %v1439_v27 = vmul.f32 %v1434_v0, %v4994_v22  ;;  %v1440_v51 = vmul.f32 %v1434_v0, %v4916_v40  ;;  %v1441_v62 = vmul.f32 %v1434_v0, %v4997_v37 }
 0x121   : > { %7264 = vst [vmem:[#allocation60_spill] sm:$0xff] %v5082_v1  ;;  %7265 = vst [vmem:[#allocation65_spill] sm:$0xff] %v5085_v34  ;;  %v1442_v63 = vmul.f32 %v1434_v0, %v4931_v3  ;;  %v1443_v15 = vmul.f32 %v1434_v0, %v5000_v33  ;;  %v1444_v30 = vmul.f32 %v1434_v0, %v4946_v13 }
 0x122   : > { %7266 = vst [vmem:[#allocation57_spill] sm:$0xff] %v5090_v29  ;;  %v1445_v6 = vmul.f32 %v1434_v0, %v5003_v52  ;;  %v1446_v1 = vmul.f32 %v1434_v0, %v4949_v48  ;;  %v1447_v17 = vmul.f32 %v1434_v0, %v5006_v47  ;;  %v1448_v56 = vmul.f32 %v1434_v0, %v4960_v18 }
 0x123   : > { %v1449_v29 = vmul.f32 %v1434_v0, %v5009_v23  ;;  %v1450_v32 = vmul.f32 %v1434_v0, %v4963_v44  ;;  %v1451_v7 = vadd.f32 %v1435_v36, %v4791_v35  ;;  %v1452_v34 = vadd.f32 %v1436_v5, %v4793_v43 }
 0x124   : > { %v1453_v42 = vadd.f32 %v1437_v19, %v4795_v4  ;;  %v1454_v9 = vadd.f32 %v1438_v55, %v4797_v39  ;;  %v1455_v12 = vadd.f32 %v1439_v27, %v4799_v21  ;;  %v1456_v59 = vadd.f32 %v1440_v51, %v4801_v2 }
 0x125   : > { %v1457_v58 = vadd.f32 %v1441_v62, %v4803_v60  ;;  %v1458_v50 = vadd.f32 %v1442_v63, %v4805_v20  ;;  %v1459_v57 = vadd.f32 %v1443_v15, %v4807_v31  ;;  %v1460_v0 = vadd.f32 %v1444_v30, %v4809_v8 }
 0x126   : > { %v1461_v35 = vadd.f32 %v1445_v6, %v4827_v53  ;;  %v1462_v43 = vadd.f32 %v1446_v1, %v4829_v54  ;;  %v1463_v4 = vadd.f32 %v1447_v17, %v4831_v49  ;;  %v1464_v39 = vadd.f32 %v1448_v56, %v4833_v38 }
 0x127   : > { %v1465_v21 = vadd.f32 %v1449_v29, %v4835_v61  ;;  %v1466_v2 = vadd.f32 %v1450_v32, %v4837_v16  ;;  %v1471_v60 = vmul.f32 %v1470_v25, %v4989_v26  ;;  %v1472_v20 = vmul.f32 %v1470_v25, %v4855_v24 }
 0x128   : > { %v1473_v31 = vmul.f32 %v1470_v25, %v4994_v22  ;;  %v1474_v8 = vmul.f32 %v1470_v25, %v4916_v40  ;;  %v1475_v63 = vmul.f32 %v1470_v25, %v4997_v37  ;;  %v1476_v62 = vmul.f32 %v1470_v25, %v4931_v3 }
 0x129   : > { %v1477_v51 = vmul.f32 %v1470_v25, %v5000_v33  ;;  %v1478_v55 = vmul.f32 %v1470_v25, %v4946_v13  ;;  %v1479_v53 = vmul.f32 %v1470_v25, %v5003_v52  ;;  %v1480_v54 = vmul.f32 %v1470_v25, %v4949_v48 }
 0x12a   : > { %v1481_v49 = vmul.f32 %v1470_v25, %v5006_v47  ;;  %v1482_v38 = vmul.f32 %v1470_v25, %v4960_v18  ;;  %v1483_v61 = vmul.f32 %v1470_v25, %v5009_v23  ;;  %v1484_v16 = vmul.f32 %v1470_v25, %v4963_v44 }
 0x12b   : > { %v1485_v29 = vmul.f32 %v1470_v25, %v5012_v45  ;;  %v1486_v19 = vmul.f32 %v1470_v25, %v4966_v46  ;;  %v1487_v24 = vadd.f32 %v1471_v60, %v1451_v7  ;;  %v1488_v36 = vadd.f32 %v1472_v20, %v1452_v34  ;;  %v7267_v25 = vld [vmem:[#allocation70_spill] sm:$0xff] }
 0x12c   : > { %v1489_v27 = vadd.f32 %v1473_v31, %v1453_v42  ;;  %v1490_v32 = vadd.f32 %v1474_v8, %v1454_v9  ;;  %v1491_v26 = vadd.f32 %v1475_v63, %v1455_v12  ;;  %v1492_v56 = vadd.f32 %v1476_v62, %v1456_v59 }
 0x12d   : > { %v1493_v1 = vadd.f32 %v1477_v51, %v1457_v58  ;;  %v1494_v5 = vadd.f32 %v1478_v55, %v1458_v50  ;;  %v1495_v15 = vadd.f32 %v1479_v53, %v1459_v57  ;;  %v1496_v30 = vadd.f32 %v1480_v54, %v1460_v0 }
 0x12e   : > { %v1497_v6 = vadd.f32 %v1481_v49, %v1461_v35  ;;  %v1498_v17 = vadd.f32 %v1482_v38, %v1462_v43  ;;  %v1499_v28 = vadd.f32 %v1483_v61, %v1463_v4  ;;  %v1500_v41 = vadd.f32 %v1484_v16, %v1464_v39  ;;  %v7268_v43 = vld [vmem:[#allocation71_spill] sm:$0xff]  ;;  %v7269_v39 = vld [vmem:[#allocation32_spill] sm:$0xff] }
 0x12f   : > { %v1501_v14 = vadd.f32 %v1485_v29, %v1465_v21  ;;  %v1502_v10 = vadd.f32 %v1486_v19, %v1466_v2  ;;  %v1507_v45 = vmul.f32 %v5051_v11, %v4994_v22  ;;  %v1508_v34 = vmul.f32 %v5051_v11, %v4916_v40  ;;  %v7270_v19 = vld [vmem:[#allocation73_spill] sm:$0xff] }
 0x130   : > { %v1509_v12 = vmul.f32 %v5051_v11, %v4997_v37  ;;  %v1510_v42 = vmul.f32 %v5051_v11, %v4931_v3  ;;  %v1511_v57 = vmul.f32 %v5051_v11, %v5000_v33  ;;  %v1512_v59 = vmul.f32 %v5051_v11, %v4946_v13 }
 0x131   : > { %v1513_v50 = vmul.f32 %v5051_v11, %v5003_v52  ;;  %v1514_v22 = vmul.f32 %v5051_v11, %v4949_v48  ;;  %v1515_v40 = vmul.f32 %v5051_v11, %v5006_v47  ;;  %v1516_v58 = vmul.f32 %v5051_v11, %v4960_v18 }
 0x132   : > { %v1517_v9 = vmul.f32 %v5051_v11, %v5009_v23  ;;  %v1518_v7 = vmul.f32 %v5051_v11, %v4963_v44  ;;  %v1519_v0 = vmul.f32 %v5051_v11, %v7267_v25  ;;  %v1520_v35 = vmul.f32 %v5051_v11, %v4966_v46 }
 0x133   : > { %v1521_v4 = vmul.f32 %v5051_v11, %v7268_v43  ;;  %v1522_v21 = vmul.f32 %v5051_v11, %v7269_v39  ;;  %v1523_v2 = vadd.f32 %v1507_v45, %v1487_v24  ;;  %v1524_v60 = vadd.f32 %v1508_v34, %v1488_v36 }
 0x134   : > { %v1525_v20 = vadd.f32 %v1509_v12, %v1489_v27  ;;  %v1526_v31 = vadd.f32 %v1510_v42, %v1490_v32  ;;  %v1527_v8 = vadd.f32 %v1511_v57, %v1491_v26  ;;  %v1528_v63 = vadd.f32 %v1512_v59, %v1492_v56  ;;  %v7271_v32 = vld [vmem:[#allocation71_spill] sm:$0xff] }
 0x135   : > { %v1529_v62 = vadd.f32 %v1513_v50, %v1493_v1  ;;  %v1530_v51 = vadd.f32 %v1514_v22, %v1494_v5  ;;  %v1531_v55 = vadd.f32 %v1515_v40, %v1495_v15  ;;  %v1532_v53 = vadd.f32 %v1516_v58, %v1496_v30  ;;  %v7272_v1 = vld [vmem:[#allocation72_spill] sm:$0xff]  ;;  %v7273_v15 = vld [vmem:[#allocation33_spill] sm:$0xff] }
 0x136   : > { %v1533_v54 = vadd.f32 %v1517_v9, %v1497_v6  ;;  %v1534_v49 = vadd.f32 %v1518_v7, %v1498_v17  ;;  %v1535_v38 = vadd.f32 %v1519_v0, %v1499_v28  ;;  %v1536_v61 = vadd.f32 %v1520_v35, %v1500_v41 }
 0x137   : > { %v1537_v16 = vadd.f32 %v1521_v4, %v1501_v14  ;;  %v1538_v29 = vadd.f32 %v1522_v21, %v1502_v10  ;;  %v1543_v43 = vmul.f32 %v7270_v19, %v4997_v37  ;;  %v1544_v11 = vmul.f32 %v7270_v19, %v4931_v3  ;;  %v7274_v21 = vld [vmem:[#allocation75_spill] sm:$0xff] }
 0x138   : > { %v1545_v45 = vmul.f32 %v7270_v19, %v5000_v33  ;;  %v1546_v24 = vmul.f32 %v7270_v19, %v4946_v13  ;;  %v1547_v36 = vmul.f32 %v7270_v19, %v5003_v52  ;;  %v1548_v41 = vmul.f32 %v7270_v19, %v4949_v48 }
 0x139   : > { %v1549_v14 = vmul.f32 %v7270_v19, %v5006_v47  ;;  %v1550_v37 = vmul.f32 %v7270_v19, %v4960_v18  ;;  %v1551_v3 = vmul.f32 %v7270_v19, %v5009_v23  ;;  %v1552_v10 = vmul.f32 %v7270_v19, %v4963_v44 }
 0x13a   : > { %v1553_v28 = vmul.f32 %v7270_v19, %v7267_v25  ;;  %v1554_v27 = vmul.f32 %v7270_v19, %v4966_v46  ;;  %v1555_v26 = vmul.f32 %v7270_v19, %v7271_v32  ;;  %v1556_v56 = vmul.f32 %v7270_v19, %v7269_v39 }
 0x13b   : > { %v1557_v5 = vmul.f32 %v7270_v19, %v7272_v1  ;;  %v1558_v30 = vmul.f32 %v7270_v19, %v7273_v15  ;;  %v1559_v6 = vadd.f32 %v1543_v43, %v1523_v2  ;;  %v1560_v17 = vadd.f32 %v1544_v11, %v1524_v60 }
 0x13c   : > { %v1561_v34 = vadd.f32 %v1545_v45, %v1525_v20  ;;  %v1562_v12 = vadd.f32 %v1546_v24, %v1526_v31  ;;  %v1563_v42 = vadd.f32 %v1547_v36, %v1527_v8  ;;  %v1564_v57 = vadd.f32 %v1548_v41, %v1528_v63 }
 0x13d   : > { %v1565_v59 = vadd.f32 %v1549_v14, %v1529_v62  ;;  %v1566_v50 = vadd.f32 %v1550_v37, %v1530_v51  ;;  %v1567_v22 = vadd.f32 %v1551_v3, %v1531_v55  ;;  %v1568_v40 = vadd.f32 %v1552_v10, %v1532_v53  ;;  %v7275_v55 = vld [vmem:[#allocation72_spill] sm:$0xff] }
 0x13e   : > { %v1569_v58 = vadd.f32 %v1553_v28, %v1533_v54  ;;  %v1570_v9 = vadd.f32 %v1554_v27, %v1534_v49  ;;  %v1571_v7 = vadd.f32 %v1555_v26, %v1535_v38  ;;  %v1572_v0 = vadd.f32 %v1556_v56, %v1536_v61  ;;  %v7276_v49 = vld [vmem:[#allocation74_spill] sm:$0xff]  ;;  %v7277_v61 = vld [vmem:[#allocation67_spill] sm:$0xff] }
 0x13f   : > { %v1573_v35 = vadd.f32 %v1557_v5, %v1537_v16  ;;  %v1574_v4 = vadd.f32 %v1558_v30, %v1538_v29  ;;  %v1579_v1 = vmul.f32 %v7274_v21, %v5000_v33  ;;  %v1580_v43 = vmul.f32 %v7274_v21, %v4946_v13  ;;  %v7278_v30 = vld [vmem:[#allocation62_spill] sm:$0xff] }
 0x140   : > { %v1581_v2 = vmul.f32 %v7274_v21, %v5003_v52  ;;  %v1582_v60 = vmul.f32 %v7274_v21, %v4949_v48  ;;  %v1583_v20 = vmul.f32 %v7274_v21, %v5006_v47  ;;  %v1584_v31 = vmul.f32 %v7274_v21, %v4960_v18 }
 0x141   : > { %v1585_v8 = vmul.f32 %v7274_v21, %v5009_v23  ;;  %v1586_v33 = vmul.f32 %v7274_v21, %v4963_v44  ;;  %v1587_v13 = vmul.f32 %v7274_v21, %v7267_v25  ;;  %v1588_v63 = vmul.f32 %v7274_v21, %v4966_v46 }
 0x142   : > { %v1589_v62 = vmul.f32 %v7274_v21, %v7271_v32  ;;  %v1590_v51 = vmul.f32 %v7274_v21, %v7269_v39  ;;  %v1591_v53 = vmul.f32 %v7274_v21, %v7275_v55  ;;  %v1592_v54 = vmul.f32 %v7274_v21, %v7273_v15 }
 0x143   : > { %v1593_v38 = vmul.f32 %v7274_v21, %v7276_v49  ;;  %v1594_v16 = vmul.f32 %v7274_v21, %v7277_v61  ;;  %v1595_v29 = vadd.f32 %v1579_v1, %v1559_v6  ;;  %v1596_v19 = vadd.f32 %v1580_v43, %v1560_v17 }
 0x144   : > { %v1597_v11 = vadd.f32 %v1581_v2, %v1561_v34  ;;  %v1598_v45 = vadd.f32 %v1582_v60, %v1562_v12  ;;  %v1599_v24 = vadd.f32 %v1583_v20, %v1563_v42  ;;  %v1600_v36 = vadd.f32 %v1584_v31, %v1564_v57 }
 0x145   : > { %v1601_v41 = vadd.f32 %v1585_v8, %v1565_v59  ;;  %v1602_v14 = vadd.f32 %v1586_v33, %v1566_v50  ;;  %v1603_v37 = vadd.f32 %v1587_v13, %v1567_v22  ;;  %v1604_v3 = vadd.f32 %v1588_v63, %v1568_v40  ;;  %v7279_v22 = vld [vmem:[#allocation74_spill] sm:$0xff] }
 0x146   : > { %v1605_v10 = vadd.f32 %v1589_v62, %v1569_v58  ;;  %v1606_v28 = vadd.f32 %v1590_v51, %v1570_v9  ;;  %v1607_v27 = vadd.f32 %v1591_v53, %v1571_v7  ;;  %v1608_v26 = vadd.f32 %v1592_v54, %v1572_v0  ;;  %v7280_v9 = vld [vmem:[#allocation61_spill] sm:$0xff]  ;;  %v7281_v0 = vld [vmem:[#allocation68_spill] sm:$0xff] }
 0x147   : > { %v1609_v56 = vadd.f32 %v1593_v38, %v1573_v35  ;;  %v1610_v5 = vadd.f32 %v1594_v16, %v1574_v4  ;;  %v1615_v49 = vmul.f32 %v7278_v30, %v5003_v52  ;;  %v1616_v1 = vmul.f32 %v7278_v30, %v4949_v48  ;;  %v7282_v16 = vld [vmem:[#allocation65_spill] sm:$0xff] }
 0x148   : > { %v1617_v6 = vmul.f32 %v7278_v30, %v5006_v47  ;;  %v1618_v17 = vmul.f32 %v7278_v30, %v4960_v18  ;;  %v1619_v34 = vmul.f32 %v7278_v30, %v5009_v23  ;;  %v1620_v12 = vmul.f32 %v7278_v30, %v4963_v44 }
 0x149   : > { %v1621_v42 = vmul.f32 %v7278_v30, %v7267_v25  ;;  %v1622_v52 = vmul.f32 %v7278_v30, %v4966_v46  ;;  %v1623_v48 = vmul.f32 %v7278_v30, %v7271_v32  ;;  %v1624_v57 = vmul.f32 %v7278_v30, %v7269_v39 }
 0x14a   : > { %v1625_v59 = vmul.f32 %v7278_v30, %v7275_v55  ;;  %v1626_v50 = vmul.f32 %v7278_v30, %v7273_v15  ;;  %v1627_v40 = vmul.f32 %v7278_v30, %v7279_v22  ;;  %v1628_v58 = vmul.f32 %v7278_v30, %v7277_v61 }
 0x14b   : > { %v1629_v7 = vmul.f32 %v7278_v30, %v7280_v9  ;;  %v1630_v35 = vmul.f32 %v7278_v30, %v7281_v0  ;;  %v1631_v4 = vadd.f32 %v1615_v49, %v1595_v29  ;;  %v1632_v21 = vadd.f32 %v1616_v1, %v1596_v19 }
 0x14c   : > { %v1633_v43 = vadd.f32 %v1617_v6, %v1597_v11  ;;  %v1634_v2 = vadd.f32 %v1618_v17, %v1598_v45  ;;  %v1635_v60 = vadd.f32 %v1619_v34, %v1599_v24  ;;  %v1636_v20 = vadd.f32 %v1620_v12, %v1600_v36  ;;  %v7283_v36 = vld [vmem:[#allocation61_spill] sm:$0xff] }
 0x14d   : > { %v1637_v31 = vadd.f32 %v1621_v42, %v1601_v41  ;;  %v1638_v8 = vadd.f32 %v1622_v52, %v1602_v14  ;;  %v1639_v33 = vadd.f32 %v1623_v48, %v1603_v37  ;;  %v1640_v13 = vadd.f32 %v1624_v57, %v1604_v3  ;;  %v7284_v41 = vld [vmem:[#allocation59_spill] sm:$0xff]  ;;  %v7285_v14 = vld [vmem:[#allocation69_spill] sm:$0xff]  ;;  %v7287_v52 = vld [vmem:[#allocation26_spill] sm:$0xff] }
 0x14e   : > { %v1641_v63 = vadd.f32 %v1625_v59, %v1605_v10  ;;  %v1642_v62 = vadd.f32 %v1626_v50, %v1606_v28  ;;  %v1643_v51 = vadd.f32 %v1627_v40, %v1607_v27  ;;  %v1644_v53 = vadd.f32 %v1628_v58, %v1608_v26  ;;  %v7286_v42 = vld [vmem:[#allocation57_spill] sm:$0xff]  ;;  %v7288_v57 = vld [vmem:[#allocation27_spill] sm:$0xff]  ;;  %v7289_v50 = vld [vmem:[#allocation28_spill] sm:$0xff] }
 0x14f   : > { %v1645_v54 = vadd.f32 %v1629_v7, %v1609_v56  ;;  %v1646_v38 = vadd.f32 %v1630_v35, %v1610_v5  ;;  %v1651_v9 = vmul.f32 %v7282_v16, %v5006_v47  ;;  %v1652_v49 = vmul.f32 %v7282_v16, %v4960_v18  ;;  %v7290_v40 = vld [vmem:[#allocation29_spill] sm:$0xff] }
 0x150   : > { %v1653_v29 = vmul.f32 %v7282_v16, %v5009_v23  ;;  %v1654_v19 = vmul.f32 %v7282_v16, %v4963_v44  ;;  %v1655_v11 = vmul.f32 %v7282_v16, %v7267_v25  ;;  %v1656_v45 = vmul.f32 %v7282_v16, %v4966_v46 }
 0x151   : > { %v1657_v24 = vmul.f32 %v7282_v16, %v7271_v32  ;;  %v1658_v47 = vmul.f32 %v7282_v16, %v7269_v39  ;;  %v1659_v18 = vmul.f32 %v7282_v16, %v7275_v55  ;;  %v1660_v23 = vmul.f32 %v7282_v16, %v7273_v15 }
 0x152   : > { %v1661_v44 = vmul.f32 %v7282_v16, %v7279_v22  ;;  %v1662_v25 = vmul.f32 %v7282_v16, %v7277_v61  ;;  %v1663_v46 = vmul.f32 %v7282_v16, %v7283_v36  ;;  %v1664_v32 = vmul.f32 %v7282_v16, %v7281_v0  ;;  %v7292_v0 = vld [vmem:[#allocation31_spill] sm:$0xff] }
 0x153   : > { %v1665_v39 = vmul.f32 %v7282_v16, %v7284_v41  ;;  %v1666_v55 = vmul.f32 %v7282_v16, %v7285_v14  ;;  %v1667_v37 = vadd.f32 %v1651_v9, %v1631_v4  ;;  %v1668_v15 = vadd.f32 %v1652_v49, %v1632_v21  ;;  %v7291_v9 = vld [vmem:[#allocation30_spill] sm:$0xff] }
 0x154   : > { %v1669_v3 = vadd.f32 %v1653_v29, %v1633_v43  ;;  %v1670_v10 = vadd.f32 %v1654_v19, %v1634_v2  ;;  %v1671_v28 = vadd.f32 %v1655_v11, %v1635_v60  ;;  %v1672_v27 = vadd.f32 %v1656_v45, %v1636_v20  ;;  %v7293_v4 = vld [vmem:[#allocation34_spill] sm:$0xff]  ;;  %v7294_v43 = vld [vmem:[#allocation35_spill] sm:$0xff]  ;;  %v7295_v60 = vld [vmem:[#allocation36_spill] sm:$0xff] }
 0x155   : > { %v1673_v26 = vadd.f32 %v1657_v24, %v1637_v31  ;;  %v1674_v61 = vadd.f32 %v1658_v47, %v1638_v8  ;;  %v1675_v56 = vadd.f32 %v1659_v18, %v1639_v33  ;;  %v1676_v5 = vadd.f32 %v1660_v23, %v1640_v13  ;;  %v7296_v31 = vld [vmem:[#allocation37_spill] sm:$0xff]  ;;  %v7297_v33 = vld [vmem:[#allocation38_spill] sm:$0xff]  ;;  %v7302_v29 = vld [vmem:[#allocation43_spill] sm:$0xff] }
 0x156   : > { %v1677_v30 = vadd.f32 %v1661_v44, %v1641_v63  ;;  %v1678_v1 = vadd.f32 %v1662_v25, %v1642_v62  ;;  %v1679_v6 = vadd.f32 %v1663_v46, %v1643_v51  ;;  %v1680_v17 = vadd.f32 %v1664_v32, %v1644_v53  ;;  %v7298_v63 = vld [vmem:[#allocation39_spill] sm:$0xff]  ;;  %v7299_v51 = vld [vmem:[#allocation40_spill] sm:$0xff]  ;;  %v7301_v16 = vld [vmem:[#allocation42_spill] sm:$0xff] }
 0x157   : > { %v1681_v34 = vadd.f32 %v1665_v39, %v1645_v54  ;;  %v1682_v12 = vadd.f32 %v1666_v55, %v1646_v38  ;;  %v1687_v48 = vmul.f32 %v7287_v52, %v7286_v42  ;;  %v1688_v59 = vmul.f32 %v7288_v57, %v7286_v42  ;;  %v7300_v54 = vld [vmem:[#allocation41_spill] sm:$0xff]  ;;  %v7303_v55 = vld [vmem:[#allocation63_spill] sm:$0xff] }
 0x158   : > { %v1689_v22 = vmul.f32 %v7289_v50, %v7286_v42  ;;  %v1690_v58 = vmul.f32 %v7290_v40, %v7286_v42  ;;  %v1691_v7 = vmul.f32 %v7291_v9, %v7286_v42  ;;  %v1692_v35 = vmul.f32 %v7292_v0, %v7286_v42 }
 0x159   : > { %v1693_v21 = vmul.f32 %v7293_v4, %v7286_v42  ;;  %v1694_v2 = vmul.f32 %v7294_v43, %v7286_v42  ;;  %v1695_v20 = vmul.f32 %v7295_v60, %v7286_v42  ;;  %v1696_v8 = vmul.f32 %v7296_v31, %v7286_v42 }
 0x15a   : > { %v1697_v13 = vmul.f32 %v7297_v33, %v7286_v42  ;;  %v1698_v62 = vmul.f32 %v7298_v63, %v7286_v42  ;;  %v1699_v53 = vmul.f32 %v7299_v51, %v7286_v42  ;;  %v1700_v38 = vmul.f32 %v7300_v54, %v7286_v42  ;;  %v7304_v54 = vld [vmem:[#allocation56_spill] sm:$0xff] }
 0x15b   : > { %v1701_v49 = vmul.f32 %v7301_v16, %v7286_v42  ;;  %v1702_v19 = vmul.f32 %v7302_v29, %v7286_v42  ;;  %v1703_v11 = vadd.f32 %v1687_v48, %v1667_v37  ;;  %v1704_v45 = vadd.f32 %v1688_v59, %v1668_v15  ;;  %v7305_v37 = vld [vmem:[#allocation76_spill] sm:$0xff] }
 0x15c   : > { %v1705_v24 = vadd.f32 %v1689_v22, %v1669_v3  ;;  %v1706_v47 = vadd.f32 %v1690_v58, %v1670_v10  ;;  %v1707_v18 = vadd.f32 %v1691_v7, %v1671_v28  ;;  %v1708_v23 = vadd.f32 %v1692_v35, %v1672_v27  ;;  %v7306_v3 = vld [vmem:[#allocation58_spill] sm:$0xff] }
 0x15d   : > { %v1709_v44 = vadd.f32 %v1693_v21, %v1673_v26  ;;  %v1710_v25 = vadd.f32 %v1694_v2, %v1674_v61  ;;  %v1711_v36 = vadd.f32 %v1695_v20, %v1675_v56  ;;  %v1712_v46 = vadd.f32 %v1696_v8, %v1676_v5  ;;  %v7308_v28 = vld [vmem:[#allocation66_spill] sm:$0xff]  ;;  %v7310_v26 = vld [vmem:[#allocation64_spill] sm:$0xff]  ;;  %v7320_v2 = vld [vmem:[#allocation39_spill] sm:$0xff] }
 0x15e   : > { %v1713_v32 = vadd.f32 %v1697_v13, %v1677_v30  ;;  %v1714_v41 = vadd.f32 %v1698_v62, %v1678_v1  ;;  %v1715_v39 = vadd.f32 %v1699_v53, %v1679_v6  ;;  %v1716_v14 = vadd.f32 %v1700_v38, %v1680_v17  ;;  %v7312_v56 = vld [vmem:[#allocation60_spill] sm:$0xff]  ;;  %v7323_v53 = vld [vmem:[#allocation42_spill] sm:$0xff] }
 0x15f   : > { %v1722_v16 = vrot.slane %v7304_v54, %v7303_v55  ;;  %v1717_v51 = vadd.f32 %v1701_v49, %v1681_v34  ;;  %v1718_v63 = vadd.f32 %v1702_v19, %v1682_v12  ;;  %v1758_v15 = vrot.slane %v7305_v37, %v7303_v55  ;;  %v7321_v8 = vld [vmem:[#allocation40_spill] sm:$0xff] }
 0x160   : > { %v5335_v10 = vrot.slane %v7306_v3, %v7303_v55  ;;  %v5339_v27 = vrot.slane %v7308_v28, %v7303_v55  ;;  %v5343_v61 = vrot.slane %v7310_v26, %v7303_v55  ;;  %v5347_v5 = vrot.slane %v7312_v56, %v7303_v55  ;;  %v7324_v49 = vld [vmem:[#allocation44_spill] sm:$0xff]  ;;  %v7325_v55 = vld [vmem:[#allocation45_spill] sm:$0xff] }
 0x161   : > { %v7314_v30 = vrot.slane %v7288_v57, 1  ;;  %v7315_v1 = vrot.slane %v7287_v52, 1  ;;  %v1723_v17 = vmul.f32 %v7289_v50, %v1722_v16  ;;  %v1724_v34 = vmul.f32 %v7290_v40, %v1722_v16 }
 0x162   : > { %7307 = vst [vmem:[#allocation70_spill] sm:$0xff] %v5335_v10  ;;  %7309 = vst [vmem:[#allocation32_spill] sm:$0xff] %v5339_v27  ;;  %v1725_v12 = vmul.f32 %v7291_v9, %v1722_v16  ;;  %v7317_v42 = vrot.slane %v7290_v40, 1  ;;  %v7318_v48 = vrot.slane %v7289_v50, 1  ;;  %v1726_v22 = vmul.f32 %v7292_v0, %v1722_v16  ;;  %v7322_v50 = vld [vmem:[#allocation41_spill] sm:$0xff] }
 0x163   : > { %7311 = vst [vmem:[#allocation73_spill] sm:$0xff] %v5343_v61  ;;  %7313 = vst [vmem:[#allocation71_spill] sm:$0xff] %v5347_v5  ;;  %v5354_v6 = vsel %vm1935_vm3, %v7315_v1, %v7314_v30  ;;  %v1727_v52 = vmul.f32 %v7293_v4, %v1722_v16  ;;  %v1728_v58 = vmul.f32 %v7294_v43, %v1722_v16 }
 0x164   : > { %7316 = vst [vmem:[#allocation33_spill] sm:$0xff] %v5354_v6  ;;  %v5364_v59 = vsel %vm1935_vm3, %v7318_v48, %v7317_v42  ;;  %v1729_v7 = vmul.f32 %v7295_v60, %v1722_v16  ;;  %v1730_v35 = vmul.f32 %v7296_v31, %v1722_v16  ;;  %v1731_v21 = vmul.f32 %v7297_v33, %v1722_v16 }
 0x165   : > { %7319 = vst [vmem:[#allocation75_spill] sm:$0xff] %v5364_v59  ;;  %v1732_v20 = vmul.f32 %v7320_v2, %v1722_v16  ;;  %v1733_v13 = vmul.f32 %v7321_v8, %v1722_v16  ;;  %v1734_v62 = vmul.f32 %v7322_v50, %v1722_v16  ;;  %v1735_v54 = vmul.f32 %v7323_v53, %v1722_v16 }
 0x166   : > { %v1736_v38 = vmul.f32 %v7302_v29, %v1722_v16  ;;  %v1737_v19 = vmul.f32 %v7324_v49, %v1722_v16  ;;  %v1738_v37 = vmul.f32 %v7325_v55, %v1722_v16  ;;  %v1739_v3 = vadd.f32 %v1723_v17, %v1703_v11 }
 0x167   : > { %v1740_v28 = vadd.f32 %v1724_v34, %v1704_v45  ;;  %v1741_v26 = vadd.f32 %v1725_v12, %v1705_v24  ;;  %v1742_v56 = vadd.f32 %v1726_v22, %v1706_v47  ;;  %v1743_v30 = vadd.f32 %v1727_v52, %v1707_v18 }
 0x168   : > { %v1744_v1 = vadd.f32 %v1728_v58, %v1708_v23  ;;  %v1745_v42 = vadd.f32 %v1729_v7, %v1709_v44  ;;  %v1746_v48 = vadd.f32 %v1730_v35, %v1710_v25  ;;  %v1747_v59 = vadd.f32 %v1731_v21, %v1711_v36  ;;  %v7326_v25 = vld [vmem:[#allocation44_spill] sm:$0xff] }
 0x169   : > { %v1748_v6 = vadd.f32 %v1732_v20, %v1712_v46  ;;  %v1749_v40 = vadd.f32 %v1733_v13, %v1713_v32  ;;  %v1750_v57 = vadd.f32 %v1734_v62, %v1714_v41  ;;  %v1751_v5 = vadd.f32 %v1735_v54, %v1715_v39  ;;  %v7327_v32 = vld [vmem:[#allocation46_spill] sm:$0xff]  ;;  %v7328_v39 = vld [vmem:[#allocation47_spill] sm:$0xff] }
 0x16a   : > { %v1752_v61 = vadd.f32 %v1736_v38, %v1716_v14  ;;  %v1753_v27 = vadd.f32 %v1737_v19, %v1717_v51  ;;  %v1754_v10 = vadd.f32 %v1738_v37, %v1718_v63  ;;  %v1759_v49 = vmul.f32 %v7291_v9, %v1758_v15  ;;  %v7329_v9 = vld [vmem:[#allocation70_spill] sm:$0xff] }
 0x16b   : > { %v1760_v16 = vmul.f32 %v7292_v0, %v1758_v15  ;;  %v1761_v11 = vmul.f32 %v7293_v4, %v1758_v15  ;;  %v1762_v45 = vmul.f32 %v7294_v43, %v1758_v15  ;;  %v1763_v24 = vmul.f32 %v7295_v60, %v1758_v15 }
 0x16c   : > { %v1764_v47 = vmul.f32 %v7296_v31, %v1758_v15  ;;  %v1765_v18 = vmul.f32 %v7297_v33, %v1758_v15  ;;  %v1766_v23 = vmul.f32 %v7320_v2, %v1758_v15  ;;  %v1767_v44 = vmul.f32 %v7321_v8, %v1758_v15 }
 0x16d   : > { %v1768_v63 = vmul.f32 %v7322_v50, %v1758_v15  ;;  %v1769_v51 = vmul.f32 %v7323_v53, %v1758_v15  ;;  %v1770_v0 = vmul.f32 %v7302_v29, %v1758_v15  ;;  %v1771_v36 = vmul.f32 %v7326_v25, %v1758_v15 }
 0x16e   : > { %v1772_v46 = vmul.f32 %v7325_v55, %v1758_v15  ;;  %v1773_v41 = vmul.f32 %v7327_v32, %v1758_v15  ;;  %v1774_v14 = vmul.f32 %v7328_v39, %v1758_v15  ;;  %v1775_v17 = vadd.f32 %v1759_v49, %v1739_v3 }
 0x16f   : > { %v1776_v34 = vadd.f32 %v1760_v16, %v1740_v28  ;;  %v1777_v12 = vadd.f32 %v1761_v11, %v1741_v26  ;;  %v1778_v22 = vadd.f32 %v1762_v45, %v1742_v56  ;;  %v1779_v52 = vadd.f32 %v1763_v24, %v1743_v30  ;;  %v7331_v26 = vld [vmem:[#allocation48_spill] sm:$0xff]  ;;  %v7332_v30 = vld [vmem:[#allocation49_spill] sm:$0xff] }
 0x170   : > { %v1780_v58 = vadd.f32 %v1764_v47, %v1744_v1  ;;  %v1781_v7 = vadd.f32 %v1765_v18, %v1745_v42  ;;  %v1782_v35 = vadd.f32 %v1766_v23, %v1746_v48  ;;  %v1783_v21 = vadd.f32 %v1767_v44, %v1747_v59 }
 0x171   : > { %v1784_v20 = vadd.f32 %v1768_v63, %v1748_v6  ;;  %v1785_v13 = vadd.f32 %v1769_v51, %v1749_v40  ;;  %v1786_v62 = vadd.f32 %v1770_v0, %v1750_v57  ;;  %v1787_v54 = vadd.f32 %v1771_v36, %v1751_v5  ;;  %v7330_v6 = vld [vmem:[#allocation46_spill] sm:$0xff] }
 0x172   : > { %v1788_v38 = vadd.f32 %v1772_v46, %v1752_v61  ;;  %v1789_v19 = vadd.f32 %v1773_v41, %v1753_v27  ;;  %v1790_v37 = vadd.f32 %v1774_v14, %v1754_v10  ;;  %v1795_v32 = vmul.f32 %v7293_v4, %v7329_v9  ;;  %v7333_v14 = vld [vmem:[#allocation32_spill] sm:$0xff] }
 0x173   : > { %v1796_v15 = vmul.f32 %v7294_v43, %v7329_v9  ;;  %v1797_v49 = vmul.f32 %v7295_v60, %v7329_v9  ;;  %v1798_v3 = vmul.f32 %v7296_v31, %v7329_v9  ;;  %v1799_v40 = vmul.f32 %v7297_v33, %v7329_v9 }
 0x174   : > { %v1800_v57 = vmul.f32 %v7320_v2, %v7329_v9  ;;  %v1801_v10 = vmul.f32 %v7321_v8, %v7329_v9  ;;  %v1802_v4 = vmul.f32 %v7322_v50, %v7329_v9  ;;  %v1803_v43 = vmul.f32 %v7323_v53, %v7329_v9 }
 0x175   : > { %v1804_v27 = vmul.f32 %v7302_v29, %v7329_v9  ;;  %v1805_v61 = vmul.f32 %v7326_v25, %v7329_v9  ;;  %v1806_v5 = vmul.f32 %v7325_v55, %v7329_v9  ;;  %v1807_v59 = vmul.f32 %v7330_v6, %v7329_v9 }
 0x176   : > { %v1808_v28 = vmul.f32 %v7328_v39, %v7329_v9  ;;  %v1809_v56 = vmul.f32 %v7331_v26, %v7329_v9  ;;  %v1810_v1 = vmul.f32 %v7332_v30, %v7329_v9  ;;  %v1811_v42 = vadd.f32 %v1795_v32, %v1775_v17 }
 0x177   : > { %v1812_v48 = vadd.f32 %v1796_v15, %v1776_v34  ;;  %v1813_v16 = vadd.f32 %v1797_v49, %v1777_v12  ;;  %v1814_v11 = vadd.f32 %v1798_v3, %v1778_v22  ;;  %v1815_v45 = vadd.f32 %v1799_v40, %v1779_v52 }
 0x178   : > { %v1816_v24 = vadd.f32 %v1800_v57, %v1780_v58  ;;  %v1817_v47 = vadd.f32 %v1801_v10, %v1781_v7  ;;  %v1818_v18 = vadd.f32 %v1802_v4, %v1782_v35  ;;  %v1819_v23 = vadd.f32 %v1803_v43, %v1783_v21  ;;  %v7334_v35 = vld [vmem:[#allocation48_spill] sm:$0xff] }
 0x179   : > { %v1820_v44 = vadd.f32 %v1804_v27, %v1784_v20  ;;  %v1821_v63 = vadd.f32 %v1805_v61, %v1785_v13  ;;  %v1822_v51 = vadd.f32 %v1806_v5, %v1786_v62  ;;  %v1823_v0 = vadd.f32 %v1807_v59, %v1787_v54  ;;  %v7335_v13 = vld [vmem:[#allocation50_spill] sm:$0xff]  ;;  %v7336_v54 = vld [vmem:[#allocation51_spill] sm:$0xff] }
 0x17a   : > { %v1824_v36 = vadd.f32 %v1808_v28, %v1788_v38  ;;  %v1825_v46 = vadd.f32 %v1809_v56, %v1789_v19  ;;  %v1826_v41 = vadd.f32 %v1810_v1, %v1790_v37  ;;  %v1831_v26 = vmul.f32 %v7295_v60, %v7333_v14  ;;  %v7337_v1 = vld [vmem:[#allocation73_spill] sm:$0xff] }
 0x17b   : > { %v1832_v9 = vmul.f32 %v7296_v31, %v7333_v14  ;;  %v1833_v32 = vmul.f32 %v7297_v33, %v7333_v14  ;;  %v1834_v17 = vmul.f32 %v7320_v2, %v7333_v14  ;;  %v1835_v34 = vmul.f32 %v7321_v8, %v7333_v14 }
 0x17c   : > { %v1836_v12 = vmul.f32 %v7322_v50, %v7333_v14  ;;  %v1837_v22 = vmul.f32 %v7323_v53, %v7333_v14  ;;  %v1838_v60 = vmul.f32 %v7302_v29, %v7333_v14  ;;  %v1839_v31 = vmul.f32 %v7326_v25, %v7333_v14 }
 0x17d   : > { %v1840_v52 = vmul.f32 %v7325_v55, %v7333_v14  ;;  %v1841_v58 = vmul.f32 %v7330_v6, %v7333_v14  ;;  %v1842_v7 = vmul.f32 %v7328_v39, %v7333_v14  ;;  %v1843_v21 = vmul.f32 %v7334_v35, %v7333_v14 }
 0x17e   : > { %v1844_v20 = vmul.f32 %v7332_v30, %v7333_v14  ;;  %v1845_v62 = vmul.f32 %v7335_v13, %v7333_v14  ;;  %v1846_v38 = vmul.f32 %v7336_v54, %v7333_v14  ;;  %v1847_v19 = vadd.f32 %v1831_v26, %v1811_v42 }
 0x17f   : > { %v1848_v37 = vadd.f32 %v1832_v9, %v1812_v48  ;;  %v1849_v15 = vadd.f32 %v1833_v32, %v1813_v16  ;;  %v1850_v49 = vadd.f32 %v1834_v17, %v1814_v11  ;;  %v1851_v3 = vadd.f32 %v1835_v34, %v1815_v45 }
 0x180   : > { %v1852_v40 = vadd.f32 %v1836_v12, %v1816_v24  ;;  %v1853_v57 = vadd.f32 %v1837_v22, %v1817_v47  ;;  %v1854_v10 = vadd.f32 %v1838_v60, %v1818_v18  ;;  %v1855_v4 = vadd.f32 %v1839_v31, %v1819_v23  ;;  %v7338_v23 = vld [vmem:[#allocation50_spill] sm:$0xff] }
 0x181   : > { %v1856_v43 = vadd.f32 %v1840_v52, %v1820_v44  ;;  %v1857_v27 = vadd.f32 %v1841_v58, %v1821_v63  ;;  %v1858_v61 = vadd.f32 %v1842_v7, %v1822_v51  ;;  %v1859_v5 = vadd.f32 %v1843_v21, %v1823_v0  ;;  %v7339_v51 = vld [vmem:[#allocation52_spill] sm:$0xff] }
 0x182   : > { %v1860_v59 = vadd.f32 %v1844_v20, %v1824_v36  ;;  %v1861_v28 = vadd.f32 %v1845_v62, %v1825_v46  ;;  %v1862_v56 = vadd.f32 %v1846_v38, %v1826_v41  ;;  %v1867_v13 = vmul.f32 %v7297_v33, %v7337_v1  ;;  %v7340_v36 = vld [vmem:[#allocation53_spill] sm:$0xff]  ;;  %v7341_v38 = vld [vmem:[#allocation71_spill] sm:$0xff] }
 0x183   : > { %v1868_v26 = vmul.f32 %v7320_v2, %v7337_v1  ;;  %v1869_v42 = vmul.f32 %v7321_v8, %v7337_v1  ;;  %v1870_v48 = vmul.f32 %v7322_v50, %v7337_v1  ;;  %v1871_v16 = vmul.f32 %v7323_v53, %v7337_v1 }
 0x184   : > { %v1872_v11 = vmul.f32 %v7302_v29, %v7337_v1  ;;  %v1873_v45 = vmul.f32 %v7326_v25, %v7337_v1  ;;  %v1874_v33 = vmul.f32 %v7325_v55, %v7337_v1  ;;  %v1875_v2 = vmul.f32 %v7330_v6, %v7337_v1 }
 0x185   : > { %v1876_v24 = vmul.f32 %v7328_v39, %v7337_v1  ;;  %v1877_v47 = vmul.f32 %v7334_v35, %v7337_v1  ;;  %v1878_v18 = vmul.f32 %v7332_v30, %v7337_v1  ;;  %v1879_v44 = vmul.f32 %v7338_v23, %v7337_v1 }
 0x186   : > { %v1880_v63 = vmul.f32 %v7336_v54, %v7337_v1  ;;  %v1881_v0 = vmul.f32 %v7339_v51, %v7337_v1  ;;  %v1882_v46 = vmul.f32 %v7340_v36, %v7337_v1  ;;  %v1883_v41 = vadd.f32 %v1867_v13, %v1847_v19 }
 0x187   : > { %v1884_v14 = vadd.f32 %v1868_v26, %v1848_v37  ;;  %v1885_v9 = vadd.f32 %v1869_v42, %v1849_v15  ;;  %v1886_v32 = vadd.f32 %v1870_v48, %v1850_v49  ;;  %v1887_v17 = vadd.f32 %v1871_v16, %v1851_v3 }
 0x188   : > { %v1888_v34 = vadd.f32 %v1872_v11, %v1852_v40  ;;  %v1889_v12 = vadd.f32 %v1873_v45, %v1853_v57  ;;  %v1890_v22 = vadd.f32 %v1874_v33, %v1854_v10  ;;  %v1891_v60 = vadd.f32 %v1875_v2, %v1855_v4  ;;  %v5556_v45 = vld [vmem:[%s3991_s20 + $0x28] sm:$0xff]  ;;  %v5560_v2 = vld [vmem:[%s3991_s20 + $0x30] sm:$0xff] }
 0x189   : > { %v1892_v31 = vadd.f32 %v1876_v24, %v1856_v43  ;;  %v1893_v52 = vadd.f32 %v1877_v47, %v1857_v27  ;;  %v1894_v58 = vadd.f32 %v1878_v18, %v1858_v61  ;;  %v1895_v7 = vadd.f32 %v1879_v44, %v1859_v5  ;;  %7345 = vst [vmem:[#allocation72_spill] sm:$0xff] %v5556_v45  ;;  %v5564_v47 = vld [vmem:[%s3991_s20 + $0x38] sm:$0xff] }
 0x18a   : > { %v1896_v21 = vadd.f32 %v1880_v63, %v1860_v59  ;;  %v1897_v20 = vadd.f32 %v1881_v0, %v1861_v28  ;;  %v1898_v62 = vadd.f32 %v1882_v46, %v1862_v56  ;;  %v1903_v51 = vmul.f32 %v7321_v8, %v7341_v38  ;;  %7346 = vst [vmem:[#allocation67_spill] sm:$0xff] %v5560_v2  ;;  %v5572_v63 = vld [vmem:[%s3991_s20 + $0x48] sm:$0xff]  ;;  %v5576_v0 = vld [vmem:[%s3991_s20 + $0x50] sm:$0xff]  ;;  %v5580_v46 = vld [vmem:[%s3991_s20 + $0x58] sm:$0xff] }
 0x18b   : > { %v1904_v13 = vmul.f32 %v7322_v50, %v7341_v38  ;;  %v1905_v19 = vmul.f32 %v7323_v53, %v7341_v38  ;;  %v1906_v37 = vmul.f32 %v7302_v29, %v7341_v38  ;;  %v1907_v15 = vmul.f32 %v7326_v25, %v7341_v38  ;;  %7347 = vst [vmem:[#allocation62_spill] sm:$0xff] %v5564_v47 }
 0x18c   : > { %v1908_v49 = vmul.f32 %v7325_v55, %v7341_v38  ;;  %v1909_v3 = vmul.f32 %v7330_v6, %v7341_v38  ;;  %v1910_v8 = vmul.f32 %v7328_v39, %v7341_v38  ;;  %v1911_v50 = vmul.f32 %v7334_v35, %v7341_v38  ;;  %v7342_v55 = vld [vmem:[#allocation52_spill] sm:$0xff]  ;;  %v7343_v39 = vld [vmem:[#allocation54_spill] sm:$0xff]  ;;  %v7344_v35 = vld [vmem:[#allocation55_spill] sm:$0xff]  ;;  %7349 = vst [vmem:[#allocation68_spill] sm:$0xff] %v5572_v63 }
 0x18d   : > { %v1912_v53 = vmul.f32 %v7332_v30, %v7341_v38  ;;  %v1913_v29 = vmul.f32 %v7338_v23, %v7341_v38  ;;  %v1914_v25 = vmul.f32 %v7336_v54, %v7341_v38  ;;  %v1915_v40 = vmul.f32 %v7342_v55, %v7341_v38  ;;  %v5568_v23 = vld [vmem:[%s3991_s20 + $0x40] sm:$0xff]  ;;  %7350 = vst [vmem:[#allocation65_spill] sm:$0xff] %v5576_v0  ;;  %v5639_v55 = vld [vmem:[%s3991_s20 + $0xb8] sm:$0xff] }
 0x18e   : > { %v1916_v6 = vmul.f32 %v7340_v36, %v7341_v38  ;;  %v1917_v57 = vmul.f32 %v7343_v39, %v7341_v38  ;;  %v1918_v10 = vmul.f32 %v7344_v35, %v7341_v38  ;;  %v5523_v4 = vadd.f32 %v1903_v51, %v1883_v41  ;;  %7348 = vst [vmem:[#allocation74_spill] sm:$0xff] %v5568_v23  ;;  %v5650_v35 = vld [vmem:[%s3991_s20 + $0xc8] sm:$0xff] }
 0x18f   : > { %v5525_v30 = vadd.f32 %v1904_v13, %v1884_v14  ;;  %v5527_v43 = vadd.f32 %v1905_v19, %v1885_v9  ;;  %v5529_v54 = vadd.f32 %v1906_v37, %v1886_v32  ;;  %v5531_v27 = vadd.f32 %v1907_v15, %v1887_v17  ;;  %7351 = vst [vmem:[#allocation61_spill] sm:$0xff] %v5580_v46  ;;  %v5584_v14 = vld [vmem:[%s3991_s20 + $0x60] sm:$0xff]  ;;  %v5588_v32 = vld [vmem:[%s3991_s20 + $0x68] sm:$0xff] }
 0x190   : > { %v5533_v61 = vadd.f32 %v1908_v49, %v1888_v34  ;;  %v5535_v5 = vadd.f32 %v1909_v3, %v1889_v12  ;;  %v5537_v59 = vadd.f32 %v1910_v8, %v1890_v22  ;;  %v5539_v28 = vadd.f32 %v1911_v50, %v1891_v60  ;;  %7352 = vst [vmem:[#allocation59_spill] sm:$0xff] %v5584_v14  ;;  %v5592_v34 = vld [vmem:[%s3991_s20 + $0x70] sm:$0xff]  ;;  %v5596_v22 = vld [vmem:[%s3991_s20 + $0x78] sm:$0xff]  ;;  %v5621_v15 = vld [vmem:[%s3991_s20 + $0xa0] sm:$0xff] }
 0x191   : > { %v5541_v56 = vadd.f32 %v1912_v53, %v1892_v31  ;;  %v5543_v1 = vadd.f32 %v1913_v29, %v1893_v52  ;;  %v5545_v26 = vadd.f32 %v1914_v25, %v1894_v58  ;;  %v5547_v42 = vadd.f32 %v1915_v40, %v1895_v7  ;;  %7353 = vst [vmem:[#allocation69_spill] sm:$0xff] %v5588_v32  ;;  %v5600_v31 = vld [vmem:[%s3991_s20 + $0x80] sm:$0xff]  ;;  %v5604_v58 = vld [vmem:[%s3991_s20 + $0x88] sm:$0xff]  ;;  %v5629_v50 = vld [vmem:[%s3991_s20 + $0xb0] sm:$0xff] }
 0x192   : > { %v5549_v48 = vadd.f32 %v1916_v6, %v1896_v21  ;;  %v5551_v16 = vadd.f32 %v1917_v57, %v1897_v20  ;;  %v5553_v11 = vadd.f32 %v1918_v10, %v1898_v62  ;;  %v1943_v33 = vrot.slane %v5556_v45, 1  ;;  %7354 = vst [vmem:[#allocation57_spill] sm:$0xff] %v5592_v34  ;;  %7355 = vst [vmem:[#allocation26_spill] sm:$0xff] %v5596_v22  ;;  %v5608_v21 = vld [vmem:[%s3991_s20 + $0x90] sm:$0xff]  ;;  %v5612_v62 = vld [vmem:[%s3991_s20 + $0x98] sm:$0xff] }
 0x193   : > { %v1945_v24 = vrot.slane %v5560_v2, 1  ;;  %v1946_v18 = vrot.slane %v5564_v47, 1  ;;  %v1948_v44 = vrot.slane %v5568_v23, 1  ;;  %v1949_v51 = vrot.slane %v5572_v63, 1  ;;  %7356 = vst [vmem:[#allocation28_spill] sm:$0xff] %v5600_v31  ;;  %7357 = vst [vmem:[#allocation31_spill] sm:$0xff] %v5604_v58 }
 0x194   : > { %v1951_v36 = vrot.slane %v5576_v0, 1  ;;  %v1952_v41 = vrot.slane %v5580_v46, 1  ;;  %v1954_v9 = vrot.slane %v5584_v14, 1  ;;  %v1955_v17 = vrot.slane %v5588_v32, 1  ;;  %7358 = vst [vmem:[#allocation34_spill] sm:$0xff] %v5608_v21  ;;  %7359 = vst [vmem:[#allocation35_spill] sm:$0xff] %v5612_v62 }
 0x195   : > { %v1957_v12 = vrot.slane %v5592_v34, 1  ;;  %v1958_v60 = vrot.slane %v5596_v22, 1  ;;  %v1960_v52 = vrot.slane %v5600_v31, 1  ;;  %v1961_v7 = vrot.slane %v5604_v58, 1  ;;  %v7360_v13 = vld [vmem:[#allocation30_spill] sm:$0xff]  ;;  %7362 = vst [vmem:[#allocation36_spill] sm:$0xff] %v5621_v15 }
 0x196   : > { %v1963_v20 = vrot.slane %v5608_v21, 1  ;;  %v1964_v38 = vrot.slane %v5612_v62, 1  ;;  %v7361_v19 = vrot.slane %v7360_v13, 1  ;;  %v1966_v49 = vrot.slane %v5621_v15, 1  ;;  %v5625_v3 = vld [vmem:[%s3991_s20 + $0xa8] sm:$0xff]  ;;  %7364 = vst [vmem:[#allocation38_spill] sm:$0xff] %v5629_v50 }
 0x197   : > { %7363 = vst [vmem:[#allocation37_spill] sm:$0xff] %v5625_v3  ;;  %v1967_v8 = vrot.slane %v5625_v3, 1  ;;  %v1969_v53 = vrot.slane %v5629_v50, 1  ;;  %v5633_v29 = vsel %vm1935_vm3, %v1945_v24, %v1946_v18  ;;  %v5636_v25 = vsel %vm1935_vm3, %v1948_v44, %v1949_v51  ;;  %7365 = vst [vmem:[#allocation43_spill] sm:$0xff] %v5639_v55  ;;  %v5643_v6 = vld [vmem:[%s3991_s20 + $0xc0] sm:$0xff]  ;;  %v5654_v24 = vld [vmem:[%s3991_s20 + $0xd0] sm:$0xff] }
 0x198   : > { %v5618_v37 = vsel %vm1935_vm3, %v7361_v19, %v1943_v33  ;;  %v1970_v40 = vrot.slane %v5639_v55, 1  ;;  %7366 = vst [vmem:[#allocation63_spill] sm:$0xff] %v5643_v6  ;;  %v1972_v39 = vrot.slane %v5643_v6, 1  ;;  %v5647_v57 = vsel %vm1935_vm3, %v1951_v36, %v1952_v41  ;;  %7367 = vst [vmem:[#allocation56_spill] sm:$0xff] %v5650_v35  ;;  %v5658_v13 = vld [vmem:[%s3991_s20 + $0xd8] sm:$0xff]  ;;  %v7376_v15 = vld [vmem:[#allocation29_spill] sm:$0xff] }
 0x199   : > { %v1973_v10 = vrot.slane %v5650_v35, 1  ;;  %7368 = vst [vmem:[#allocation76_spill] sm:$0xff] %v5654_v24  ;;  %v1975_v44 = vrot.slane %v5654_v24, 1  ;;  %7369 = vst [vmem:[#allocation58_spill] sm:$0xff] %v5658_v13  ;;  %v1976_v19 = vrot.slane %v5658_v13, 1  ;;  %v5662_v55 = vsel %vm1935_vm3, %v1954_v9, %v1955_v17  ;;  %v7374_v3 = vld [vmem:[#allocation27_spill] sm:$0xff] }
 0x19a   : > { %v5665_v6 = vsel %vm1935_vm3, %v1957_v12, %v1958_v60  ;;  %v5668_v36 = vsel %vm1935_vm3, %v1960_v52, %v1961_v7  ;;  %v5671_v50 = vsel %vm1935_vm3, %v1963_v20, %v1964_v38  ;;  %v5674_v35 = vsel %vm1935_vm3, %v1966_v49, %v1967_v8  ;;  %v5732_v21 = vld [vmem:[%s3991_s20 + $0x8] sm:$0xff]  ;;  %v5765_v31 = vld [vmem:[%s3991_s20 + $0x18] sm:$0xff]  ;;  %v5769_v22 = vld [vmem:[%s3991_s20 + $0x20] sm:$0xff] }
 0x19b   : > { %7370 = vst [vmem:[#allocation66_spill] sm:$0xff] %v5668_v36  ;;  %7371 = vst [vmem:[#allocation64_spill] sm:$0xff] %v5671_v50  ;;  %v5677_v24 = vsel %vm1935_vm3, %v1969_v53, %v1970_v40  ;;  %v7375_v13 = vrot.slane %v7374_v3, 1  ;;  %v7377_v62 = vrot.slane %v7376_v15, 1  ;;  %v5688_v52 = vsel %vm1935_vm3, %v1972_v39, %v1973_v10  ;;  %v5791_v34 = vld [vmem:[%s6830_s1 + $0x28] sm:$0x7f] }
 0x19c   : > { %7372 = vst [vmem:[#allocation60_spill] sm:$0xff] %v5674_v35  ;;  %7373 = vst [vmem:[#allocation39_spill] sm:$0xff] %v5677_v24  ;;  %v5691_v20 = vsel %vm1935_vm3, %v1975_v44, %v1976_v19  ;;  %v5694_v49 = vsel %vm1935_vm3, %v1943_v33, 0.0  ;;  %v5697_v3 = vsel %vm1935_vm3, %v1946_v18, 0.0  ;;  %v5700_v53 = vsel %vm1935_vm3, %v1949_v51, 0.0  ;;  %v7382_v51 = vld [vmem:[#allocation25_spill] sm:$0xff] }
 0x19d   : > { %v2006_v9 = vsel %vm1935_vm3, %v7375_v13, 0.0  ;;  %v5685_v12 = vsel %vm1935_vm3, %v7377_v62, 0.0  ;;  %7378 = vst [vmem:[#allocation40_spill] sm:$0xff] %v5688_v52  ;;  %7379 = vst [vmem:[#allocation41_spill] sm:$0xff] %v5691_v20  ;;  %v5703_v15 = vsel %vm1935_vm3, %v1952_v41, 0.0  ;;  %v5706_v62 = vsel %vm1935_vm3, %v1955_v17, 0.0 }
 0x19e   : > { %v5709_v39 = vsel %vm1935_vm3, %v1958_v60, 0.0  ;;  %v5712_v44 = vsel %vm1935_vm3, %v1961_v7, 0.0  ;;  %v5715_v33 = vsel %vm1935_vm3, %v1964_v38, 0.0  ;;  %v5718_v18 = vsel %vm1935_vm3, %v1967_v8, 0.0  ;;  %v5728_v60 = vld [vmem:[%s3991_s20] sm:$0xff]  ;;  %7386 = vst [vmem:[#allocation46_spill] sm:$0xff] %v5732_v21 }
 0x19f   : > { %7380 = vst [vmem:[#allocation42_spill] sm:$0xff] %v5715_v33  ;;  %7381 = vst [vmem:[#allocation45_spill] sm:$0xff] %v5718_v18  ;;  %v2022_v13 = vsub.s32 4, %v7382_v51  ;;  %v5722_v41 = vsel %vm1935_vm3, %v1970_v40, 0.0  ;;  %v5725_v17 = vsel %vm1935_vm3, %v1973_v10, 0.0  ;;  %v2273_v7 = vrot.slane %v5728_v60, 2 }
 0x1a0   : > { %7383 = vst [vmem:[#allocation44_spill] sm:$0xff] %v5722_v41  ;;  %7384 = vst [vmem:[#allocation47_spill] sm:$0xff] %v5725_v17  ;;  %v5736_v8 = vsel %vm1935_vm3, %v1976_v19, 0.0  ;;  %v5741_v40 = vld [vmem:[%s6830_s1] sm:$0x7f]  ;;  %v5745_v51 = vld [vmem:[%s3991_s20 + $0x10] sm:$0xff] }
 0x1a1   : > { %7385 = vst [vmem:[#allocation70_spill] sm:$0xff] %v5728_v60  ;;  %7387 = vst [vmem:[#allocation49_spill] sm:$0xff] %v5736_v8  ;;  %v2023_v10 = vrot.slane %v5741_v40, %v2022_v13  ;;  %v5751_v60 = vld [vmem:[%s6830_s1 + $0x8] sm:$0x7f]  ;;  %v5759_v38 = vld [vmem:[%s6830_s1 + $0x10] sm:$0x7f]  ;;  %v5794_v58 = vrot.slane %v5791_v34, %v2022_v13 }
 0x1a2   : > { %7388 = vst [vmem:[#allocation32_spill] sm:$0xff] %v5741_v40  ;;  %7389 = vst [vmem:[#allocation48_spill] sm:$0xff] %v5745_v51  ;;  %v5754_v19 = vrot.slane %v5751_v60, %v2022_v13  ;;  %v5762_v40 = vrot.slane %v5759_v38, %v2022_v13  ;;  %v7403_v63 = vld [vmem:[#allocation75_spill] sm:$0xff]  ;;  %v7404_v47 = vrot.slane %v5732_v21, 2 }
 0x1a3   : > { %7390 = vst [vmem:[#allocation51_spill] sm:$0xff] %v5751_v60  ;;  %7391 = vst [vmem:[#allocation73_spill] sm:$0xff] %v5759_v38  ;;  %v5775_v60 = vld [vmem:[%s6830_s1 + $0x18] sm:$0x7f]  ;;  %v5783_v38 = vld [vmem:[%s6830_s1 + $0x20] sm:$0x7f]  ;;  %v2026_v23 = vmul.f32 %v2023_v10, %v7403_v63  ;;  %v2028_v51 = vmul.f32 %v2023_v10, %v5618_v37  ;;  %v2030_v45 = vmul.f32 %v2023_v10, %v5633_v29 }
 0x1a4   : > { %7392 = vst [vmem:[#allocation50_spill] sm:$0xff] %v5765_v31  ;;  %7393 = vst [vmem:[#allocation53_spill] sm:$0xff] %v5769_v22  ;;  %v5778_v32 = vrot.slane %v5775_v60, %v2022_v13  ;;  %v5786_v14 = vrot.slane %v5783_v38, %v2022_v13  ;;  %v7402_v22 = vld [vmem:[#allocation33_spill] sm:$0xff]  ;;  %v5809_v2 = vsel %vm2272_vm4, %v2273_v7, %v7404_v47 }
 0x1a5   : > { %7394 = vst [vmem:[#allocation71_spill] sm:$0xff] %v5775_v60  ;;  %7396 = vst [vmem:[#allocation54_spill] sm:$0xff] %v5783_v38  ;;  %v5799_v60 = vld [vmem:[%s6830_s1 + $0x30] sm:$0x7f]  ;;  %v2024_v0 = vmul.f32 %v2023_v10, %v7402_v22  ;;  %v2025_v38 = vmul.f32 %v2023_v10, %v2006_v9  ;;  %v2029_v31 = vmul.f32 %v2023_v10, %v5694_v49 }
 0x1a6   : > { %7395 = vst [vmem:[#allocation52_spill] sm:$0xff] %v5778_v32  ;;  %7397 = vst [vmem:[#allocation55_spill] sm:$0xff] %v5786_v14  ;;  %v5802_v46 = vrot.slane %v5799_v60, %v2022_v13  ;;  %v2031_v13 = vmul.f32 %v2023_v10, %v5697_v3  ;;  %v2032_v22 = vmul.f32 %v2023_v10, %v5636_v25 }
 0x1a7   : > { %7398 = vst [vmem:[#allocation30_spill] sm:$0xff] %v5791_v34  ;;  %7399 = vst [vmem:[#allocation27_spill] sm:$0xff] %v5794_v58  ;;  %v2027_v34 = vmul.f32 %v2023_v10, %v5685_v12  ;;  %v2033_v9 = vmul.f32 %v2023_v10, %v5700_v53  ;;  %v2035_v21 = vmul.f32 %v2023_v10, %v5703_v15 }
 0x1a8   : > { %7400 = vst [vmem:[#allocation29_spill] sm:$0xff] %v5799_v60  ;;  %7401 = vst [vmem:[#allocation77_spill] sm:$0xff] %v5802_v46  ;;  %v2034_v60 = vmul.f32 %v2023_v10, %v5647_v57  ;;  %v2036_v47 = vmul.f32 %v2023_v10, %v5662_v55  ;;  %v2037_v7 = vmul.f32 %v2023_v10, %v5706_v62 }
 0x1a9   : > { %7405 = vst [vmem:[#allocation33_spill] sm:$0xff] %v5809_v2  ;;  %v2038_v2 = vmul.f32 %v2023_v10, %v5665_v6  ;;  %v2039_v8 = vmul.f32 %v2023_v10, %v5709_v39  ;;  %v2040_v20 = vadd.f32 %v2024_v0, %v5523_v4  ;;  %v2041_v46 = vadd.f32 %v2025_v38, %v5525_v30 }
 0x1aa   : > { %v2042_v17 = vadd.f32 %v2026_v23, %v5527_v43  ;;  %v2043_v52 = vadd.f32 %v2027_v34, %v5529_v54  ;;  %v2044_v58 = vadd.f32 %v2028_v51, %v5531_v27  ;;  %v2045_v41 = vadd.f32 %v2029_v31, %v5533_v61 }
 0x1ab   : > { %v2046_v24 = vadd.f32 %v2030_v45, %v5535_v5  ;;  %v2047_v14 = vadd.f32 %v2031_v13, %v5537_v59  ;;  %v2048_v18 = vadd.f32 %v2032_v22, %v5539_v28  ;;  %v2049_v10 = vadd.f32 %v2033_v9, %v5541_v56 }
 0x1ac   : > { %v2050_v4 = vadd.f32 %v2034_v60, %v5543_v1  ;;  %v2051_v30 = vadd.f32 %v2035_v21, %v5545_v26  ;;  %v2052_v43 = vadd.f32 %v2036_v47, %v5547_v42  ;;  %v2053_v54 = vadd.f32 %v2037_v7, %v5549_v48 }
 0x1ad   : > { %v2054_v27 = vadd.f32 %v2038_v2, %v5551_v16  ;;  %v2055_v61 = vadd.f32 %v2039_v8, %v5553_v11  ;;  %v2060_v5 = vmul.f32 %v5754_v19, %v7403_v63  ;;  %v2061_v59 = vmul.f32 %v5754_v19, %v5685_v12 }
 0x1ae   : > { %v2062_v28 = vmul.f32 %v5754_v19, %v5618_v37  ;;  %v2063_v56 = vmul.f32 %v5754_v19, %v5694_v49  ;;  %v2064_v1 = vmul.f32 %v5754_v19, %v5633_v29  ;;  %v2065_v26 = vmul.f32 %v5754_v19, %v5697_v3 }
 0x1af   : > { %v2066_v42 = vmul.f32 %v5754_v19, %v5636_v25  ;;  %v2067_v48 = vmul.f32 %v5754_v19, %v5700_v53  ;;  %v2068_v16 = vmul.f32 %v5754_v19, %v5647_v57  ;;  %v2069_v11 = vmul.f32 %v5754_v19, %v5703_v15 }
 0x1b0   : > { %v2070_v45 = vmul.f32 %v5754_v19, %v5662_v55  ;;  %v2071_v2 = vmul.f32 %v5754_v19, %v5706_v62  ;;  %v2072_v23 = vmul.f32 %v5754_v19, %v5665_v6  ;;  %v2073_v63 = vmul.f32 %v5754_v19, %v5709_v39 }
 0x1b1   : > { %v2074_v0 = vmul.f32 %v5754_v19, %v5668_v36  ;;  %v2075_v34 = vmul.f32 %v5754_v19, %v5712_v44  ;;  %v2076_v31 = vadd.f32 %v2060_v5, %v2040_v20  ;;  %v2077_v21 = vadd.f32 %v2061_v59, %v2041_v46  ;;  %v7406_v19 = vld [vmem:[#allocation66_spill] sm:$0xff] }
 0x1b2   : > { %v2078_v12 = vadd.f32 %v2062_v28, %v2042_v17  ;;  %v2079_v51 = vadd.f32 %v2063_v56, %v2043_v52  ;;  %v2080_v60 = vadd.f32 %v2064_v1, %v2044_v58  ;;  %v2081_v38 = vadd.f32 %v2065_v26, %v2045_v41 }
 0x1b3   : > { %v2082_v8 = vadd.f32 %v2066_v42, %v2046_v24  ;;  %v2083_v13 = vadd.f32 %v2067_v48, %v2047_v14  ;;  %v2084_v22 = vadd.f32 %v2068_v16, %v2048_v18  ;;  %v2085_v9 = vadd.f32 %v2069_v11, %v2049_v10 }
 0x1b4   : > { %v2086_v47 = vadd.f32 %v2070_v45, %v2050_v4  ;;  %v2087_v7 = vadd.f32 %v2071_v2, %v2051_v30  ;;  %v2088_v35 = vadd.f32 %v2072_v23, %v2052_v43  ;;  %v2089_v32 = vadd.f32 %v2073_v63, %v2053_v54  ;;  %v7407_v30 = vld [vmem:[#allocation64_spill] sm:$0xff]  ;;  %v7408_v54 = vld [vmem:[#allocation42_spill] sm:$0xff] }
 0x1b5   : > { %v2090_v33 = vadd.f32 %v2074_v0, %v2054_v27  ;;  %v2091_v50 = vadd.f32 %v2075_v34, %v2055_v61  ;;  %v2096_v36 = vmul.f32 %v5762_v40, %v5618_v37  ;;  %v2097_v46 = vmul.f32 %v5762_v40, %v5694_v49  ;;  %v7409_v34 = vld [vmem:[#allocation52_spill] sm:$0xff] }
 0x1b6   : > { %v2098_v58 = vmul.f32 %v5762_v40, %v5633_v29  ;;  %v2099_v14 = vmul.f32 %v5762_v40, %v5697_v3  ;;  %v2100_v24 = vmul.f32 %v5762_v40, %v5636_v25  ;;  %v2101_v52 = vmul.f32 %v5762_v40, %v5700_v53 }
 0x1b7   : > { %v2102_v20 = vmul.f32 %v5762_v40, %v5647_v57  ;;  %v2103_v37 = vmul.f32 %v5762_v40, %v5703_v15  ;;  %v2104_v49 = vmul.f32 %v5762_v40, %v5662_v55  ;;  %v2105_v18 = vmul.f32 %v5762_v40, %v5706_v62 }
 0x1b8   : > { %v2106_v41 = vmul.f32 %v5762_v40, %v5665_v6  ;;  %v2107_v17 = vmul.f32 %v5762_v40, %v5709_v39  ;;  %v2108_v10 = vmul.f32 %v5762_v40, %v7406_v19  ;;  %v2109_v4 = vmul.f32 %v5762_v40, %v5712_v44 }
 0x1b9   : > { %v2110_v43 = vmul.f32 %v5762_v40, %v7407_v30  ;;  %v2111_v27 = vmul.f32 %v5762_v40, %v7408_v54  ;;  %v2112_v61 = vadd.f32 %v2096_v36, %v2076_v31  ;;  %v2113_v5 = vadd.f32 %v2097_v46, %v2077_v21 }
 0x1ba   : > { %v2114_v59 = vadd.f32 %v2098_v58, %v2078_v12  ;;  %v2115_v28 = vadd.f32 %v2099_v14, %v2079_v51  ;;  %v2116_v56 = vadd.f32 %v2100_v24, %v2080_v60  ;;  %v2117_v1 = vadd.f32 %v2101_v52, %v2081_v38  ;;  %v7410_v51 = vld [vmem:[#allocation64_spill] sm:$0xff] }
 0x1bb   : > { %v2118_v26 = vadd.f32 %v2102_v20, %v2082_v8  ;;  %v2119_v42 = vadd.f32 %v2103_v37, %v2083_v13  ;;  %v2120_v48 = vadd.f32 %v2104_v49, %v2084_v22  ;;  %v2121_v16 = vadd.f32 %v2105_v18, %v2085_v9  ;;  %v7411_v8 = vld [vmem:[#allocation60_spill] sm:$0xff]  ;;  %v7412_v22 = vld [vmem:[#allocation45_spill] sm:$0xff] }
 0x1bc   : > { %v2122_v11 = vadd.f32 %v2106_v41, %v2086_v47  ;;  %v2123_v45 = vadd.f32 %v2107_v17, %v2087_v7  ;;  %v2124_v2 = vadd.f32 %v2108_v10, %v2088_v35  ;;  %v2125_v23 = vadd.f32 %v2109_v4, %v2089_v32 }
 0x1bd   : > { %v2126_v63 = vadd.f32 %v2110_v43, %v2090_v33  ;;  %v2127_v0 = vadd.f32 %v2111_v27, %v2091_v50  ;;  %v2132_v30 = vmul.f32 %v7409_v34, %v5633_v29  ;;  %v2133_v36 = vmul.f32 %v7409_v34, %v5697_v3  ;;  %v7413_v27 = vld [vmem:[#allocation55_spill] sm:$0xff] }
 0x1be   : > { %v2134_v40 = vmul.f32 %v7409_v34, %v5636_v25  ;;  %v2135_v31 = vmul.f32 %v7409_v34, %v5700_v53  ;;  %v2136_v21 = vmul.f32 %v7409_v34, %v5647_v57  ;;  %v2137_v32 = vmul.f32 %v7409_v34, %v5703_v15 }
 0x1bf   : > { %v2138_v50 = vmul.f32 %v7409_v34, %v5662_v55  ;;  %v2139_v29 = vmul.f32 %v7409_v34, %v5706_v62  ;;  %v2140_v35 = vmul.f32 %v7409_v34, %v5665_v6  ;;  %v2141_v3 = vmul.f32 %v7409_v34, %v5709_v39 }
 0x1c0   : > { %v2142_v33 = vmul.f32 %v7409_v34, %v7406_v19  ;;  %v2143_v12 = vmul.f32 %v7409_v34, %v5712_v44  ;;  %v2144_v60 = vmul.f32 %v7409_v34, %v7410_v51  ;;  %v2145_v38 = vmul.f32 %v7409_v34, %v7408_v54 }
 0x1c1   : > { %v2146_v13 = vmul.f32 %v7409_v34, %v7411_v8  ;;  %v2147_v9 = vmul.f32 %v7409_v34, %v7412_v22  ;;  %v2148_v47 = vadd.f32 %v2132_v30, %v2112_v61  ;;  %v2149_v7 = vadd.f32 %v2133_v36, %v2113_v5 }
 0x1c2   : > { %v2150_v46 = vadd.f32 %v2134_v40, %v2114_v59  ;;  %v2151_v58 = vadd.f32 %v2135_v31, %v2115_v28  ;;  %v2152_v14 = vadd.f32 %v2136_v21, %v2116_v56  ;;  %v2153_v24 = vadd.f32 %v2137_v32, %v2117_v1 }
 0x1c3   : > { %v2154_v52 = vadd.f32 %v2138_v50, %v2118_v26  ;;  %v2155_v20 = vadd.f32 %v2139_v29, %v2119_v42  ;;  %v2156_v37 = vadd.f32 %v2140_v35, %v2120_v48  ;;  %v2157_v49 = vadd.f32 %v2141_v3, %v2121_v16  ;;  %v7414_v48 = vld [vmem:[#allocation60_spill] sm:$0xff] }
 0x1c4   : > { %v2158_v18 = vadd.f32 %v2142_v33, %v2122_v11  ;;  %v2159_v41 = vadd.f32 %v2143_v12, %v2123_v45  ;;  %v2160_v17 = vadd.f32 %v2144_v60, %v2124_v2  ;;  %v2161_v10 = vadd.f32 %v2145_v38, %v2125_v23  ;;  %v7415_v45 = vld [vmem:[#allocation39_spill] sm:$0xff]  ;;  %v7416_v23 = vld [vmem:[#allocation44_spill] sm:$0xff] }
 0x1c5   : > { %v2162_v4 = vadd.f32 %v2146_v13, %v2126_v63  ;;  %v2163_v43 = vadd.f32 %v2147_v9, %v2127_v0  ;;  %v2168_v8 = vmul.f32 %v7413_v27, %v5636_v25  ;;  %v2169_v30 = vmul.f32 %v7413_v27, %v5700_v53  ;;  %v7417_v9 = vld [vmem:[#allocation27_spill] sm:$0xff] }
 0x1c6   : > { %v2170_v61 = vmul.f32 %v7413_v27, %v5647_v57  ;;  %v2171_v5 = vmul.f32 %v7413_v27, %v5703_v15  ;;  %v2172_v59 = vmul.f32 %v7413_v27, %v5662_v55  ;;  %v2173_v28 = vmul.f32 %v7413_v27, %v5706_v62 }
 0x1c7   : > { %v2174_v56 = vmul.f32 %v7413_v27, %v5665_v6  ;;  %v2175_v25 = vmul.f32 %v7413_v27, %v5709_v39  ;;  %v2176_v53 = vmul.f32 %v7413_v27, %v7406_v19  ;;  %v2177_v1 = vmul.f32 %v7413_v27, %v5712_v44 }
 0x1c8   : > { %v2178_v26 = vmul.f32 %v7413_v27, %v7410_v51  ;;  %v2179_v42 = vmul.f32 %v7413_v27, %v7408_v54  ;;  %v2180_v16 = vmul.f32 %v7413_v27, %v7414_v48  ;;  %v2181_v11 = vmul.f32 %v7413_v27, %v7412_v22 }
 0x1c9   : > { %v2182_v2 = vmul.f32 %v7413_v27, %v7415_v45  ;;  %v2183_v63 = vmul.f32 %v7413_v27, %v7416_v23  ;;  %v2184_v0 = vadd.f32 %v2168_v8, %v2148_v47  ;;  %v2185_v34 = vadd.f32 %v2169_v30, %v2149_v7 }
 0x1ca   : > { %v2186_v36 = vadd.f32 %v2170_v61, %v2150_v46  ;;  %v2187_v40 = vadd.f32 %v2171_v5, %v2151_v58  ;;  %v2188_v31 = vadd.f32 %v2172_v59, %v2152_v14  ;;  %v2189_v21 = vadd.f32 %v2173_v28, %v2153_v24 }
 0x1cb   : > { %v2190_v32 = vadd.f32 %v2174_v56, %v2154_v52  ;;  %v2191_v50 = vadd.f32 %v2175_v25, %v2155_v20  ;;  %v2192_v29 = vadd.f32 %v2176_v53, %v2156_v37  ;;  %v2193_v35 = vadd.f32 %v2177_v1, %v2157_v49  ;;  %v7418_v37 = vld [vmem:[#allocation39_spill] sm:$0xff] }
 0x1cc   : > { %v2194_v3 = vadd.f32 %v2178_v26, %v2158_v18  ;;  %v2195_v33 = vadd.f32 %v2179_v42, %v2159_v41  ;;  %v2196_v12 = vadd.f32 %v2180_v16, %v2160_v17  ;;  %v2197_v60 = vadd.f32 %v2181_v11, %v2161_v10  ;;  %v7419_v41 = vld [vmem:[#allocation40_spill] sm:$0xff]  ;;  %v7420_v10 = vld [vmem:[#allocation47_spill] sm:$0xff] }
 0x1cd   : > { %v2198_v38 = vadd.f32 %v2182_v2, %v2162_v4  ;;  %v2199_v13 = vadd.f32 %v2183_v63, %v2163_v43  ;;  %v2204_v45 = vmul.f32 %v7417_v9, %v5647_v57  ;;  %v2205_v8 = vmul.f32 %v7417_v9, %v5703_v15  ;;  %v7421_v63 = vld [vmem:[#allocation77_spill] sm:$0xff] }
 0x1ce   : > { %v2206_v47 = vmul.f32 %v7417_v9, %v5662_v55  ;;  %v2207_v7 = vmul.f32 %v7417_v9, %v5706_v62  ;;  %v2208_v46 = vmul.f32 %v7417_v9, %v5665_v6  ;;  %v2209_v58 = vmul.f32 %v7417_v9, %v5709_v39 }
 0x1cf   : > { %v2210_v14 = vmul.f32 %v7417_v9, %v7406_v19  ;;  %v2211_v57 = vmul.f32 %v7417_v9, %v5712_v44  ;;  %v2212_v15 = vmul.f32 %v7417_v9, %v7410_v51  ;;  %v2213_v24 = vmul.f32 %v7417_v9, %v7408_v54 }
 0x1d0   : > { %v2214_v52 = vmul.f32 %v7417_v9, %v7414_v48  ;;  %v2215_v20 = vmul.f32 %v7417_v9, %v7412_v22  ;;  %v2216_v49 = vmul.f32 %v7417_v9, %v7418_v37  ;;  %v2217_v18 = vmul.f32 %v7417_v9, %v7416_v23 }
 0x1d1   : > { %v2218_v17 = vmul.f32 %v7417_v9, %v7419_v41  ;;  %v2219_v4 = vmul.f32 %v7417_v9, %v7420_v10  ;;  %v2220_v43 = vadd.f32 %v2204_v45, %v2184_v0  ;;  %v2221_v27 = vadd.f32 %v2205_v8, %v2185_v34 }
 0x1d2   : > { %v2222_v30 = vadd.f32 %v2206_v47, %v2186_v36  ;;  %v2223_v61 = vadd.f32 %v2207_v7, %v2187_v40  ;;  %v2224_v5 = vadd.f32 %v2208_v46, %v2188_v31  ;;  %v2225_v59 = vadd.f32 %v2209_v58, %v2189_v21  ;;  %v7422_v21 = vld [vmem:[#allocation40_spill] sm:$0xff] }
 0x1d3   : > { %v2226_v28 = vadd.f32 %v2210_v14, %v2190_v32  ;;  %v2227_v56 = vadd.f32 %v2211_v57, %v2191_v50  ;;  %v2228_v25 = vadd.f32 %v2212_v15, %v2192_v29  ;;  %v2229_v53 = vadd.f32 %v2213_v24, %v2193_v35  ;;  %v7423_v32 = vld [vmem:[#allocation41_spill] sm:$0xff]  ;;  %v7425_v46 = vld [vmem:[#allocation72_spill] sm:$0xff]  ;;  %v7426_v15 = vld [vmem:[#allocation50_spill] sm:$0xff] }
 0x1d4   : > { %v2230_v1 = vadd.f32 %v2214_v52, %v2194_v3  ;;  %v2231_v26 = vadd.f32 %v2215_v20, %v2195_v33  ;;  %v2232_v42 = vadd.f32 %v2216_v49, %v2196_v12  ;;  %v2233_v16 = vadd.f32 %v2217_v18, %v2197_v60  ;;  %v7424_v50 = vld [vmem:[#allocation49_spill] sm:$0xff]  ;;  %v7428_v52 = vld [vmem:[#allocation48_spill] sm:$0xff]  ;;  %v7430_v49 = vld [vmem:[#allocation67_spill] sm:$0xff] }
 0x1d5   : > { %v2234_v11 = vadd.f32 %v2218_v17, %v2198_v38  ;;  %v2235_v2 = vadd.f32 %v2219_v4, %v2199_v13  ;;  %v2240_v41 = vmul.f32 %v7421_v63, %v5662_v55  ;;  %v2241_v45 = vmul.f32 %v7421_v63, %v5706_v62 }
 0x1d6   : > { %v2242_v0 = vmul.f32 %v7421_v63, %v5665_v6  ;;  %v2243_v34 = vmul.f32 %v7421_v63, %v5709_v39  ;;  %v2244_v36 = vmul.f32 %v7421_v63, %v7406_v19  ;;  %v2245_v40 = vmul.f32 %v7421_v63, %v5712_v44 }
 0x1d7   : > { %v2246_v31 = vmul.f32 %v7421_v63, %v7410_v51  ;;  %v2247_v55 = vmul.f32 %v7421_v63, %v7408_v54  ;;  %v2248_v62 = vmul.f32 %v7421_v63, %v7414_v48  ;;  %v2249_v6 = vmul.f32 %v7421_v63, %v7412_v22 }
 0x1d8   : > { %v2250_v39 = vmul.f32 %v7421_v63, %v7418_v37  ;;  %v2251_v19 = vmul.f32 %v7421_v63, %v7416_v23  ;;  %v2252_v44 = vmul.f32 %v7421_v63, %v7422_v21  ;;  %v2253_v51 = vmul.f32 %v7421_v63, %v7420_v10  ;;  %v7432_v10 = vld [vmem:[#allocation74_spill] sm:$0xff] }
 0x1d9   : > { %v2254_v54 = vmul.f32 %v7421_v63, %v7423_v32  ;;  %v2255_v48 = vmul.f32 %v7421_v63, %v7424_v50  ;;  %v6032_v29 = vadd.f32 %v2240_v41, %v2220_v43  ;;  %v6034_v22 = vadd.f32 %v2241_v45, %v2221_v27  ;;  %v7431_v41 = vld [vmem:[#allocation62_spill] sm:$0xff]  ;;  %v7433_v43 = vld [vmem:[#allocation68_spill] sm:$0xff] }
 0x1da   : > { %v6036_v35 = vadd.f32 %v2242_v0, %v2222_v30  ;;  %v6038_v3 = vadd.f32 %v2243_v34, %v2223_v61  ;;  %v6040_v23 = vadd.f32 %v2244_v36, %v2224_v5  ;;  %v6042_v33 = vadd.f32 %v2245_v40, %v2225_v59  ;;  %v7434_v30 = vld [vmem:[#allocation65_spill] sm:$0xff]  ;;  %v7442_v45 = vld [vmem:[#allocation28_spill] sm:$0xff]  ;;  %v7443_v34 = vld [vmem:[#allocation31_spill] sm:$0xff] }
 0x1db   : > { %v6044_v12 = vadd.f32 %v2246_v31, %v2226_v28  ;;  %v6046_v60 = vadd.f32 %v2247_v55, %v2227_v56  ;;  %v6048_v38 = vadd.f32 %v2248_v62, %v2228_v25  ;;  %v6050_v13 = vadd.f32 %v2249_v6, %v2229_v53  ;;  %v7435_v5 = vld [vmem:[#allocation53_spill] sm:$0xff]  ;;  %v7438_v53 = vld [vmem:[#allocation59_spill] sm:$0xff]  ;;  %v7444_v40 = vld [vmem:[#allocation34_spill] sm:$0xff] }
 0x1dc   : > { %v6052_v9 = vadd.f32 %v2250_v39, %v2230_v1  ;;  %v6054_v8 = vadd.f32 %v2251_v19, %v2231_v26  ;;  %v6056_v47 = vadd.f32 %v2252_v44, %v2232_v42  ;;  %v6058_v7 = vadd.f32 %v2253_v51, %v2233_v16  ;;  %v7437_v56 = vld [vmem:[#allocation61_spill] sm:$0xff]  ;;  %v7445_v55 = vld [vmem:[#allocation35_spill] sm:$0xff]  ;;  %v7446_v6 = vld [vmem:[#allocation36_spill] sm:$0xff] }
 0x1dd   : > { %v2280_v58 = vrot.slane %v7425_v46, 2  ;;  %v6061_v14 = vadd.f32 %v2254_v54, %v2234_v11  ;;  %v6063_v57 = vadd.f32 %v2255_v48, %v2235_v2  ;;  %v7427_v24 = vrot.slane %v7426_v15, 2  ;;  %v7439_v26 = vld [vmem:[#allocation69_spill] sm:$0xff]  ;;  %v7441_v2 = vld [vmem:[#allocation26_spill] sm:$0xff]  ;;  %v7449_v54 = vld [vmem:[#allocation43_spill] sm:$0xff] }
 0x1de   : > { %v7429_v20 = vrot.slane %v7428_v52, 2  ;;  %v2282_v18 = vrot.slane %v7430_v49, 2  ;;  %v2283_v17 = vrot.slane %v7431_v41, 2  ;;  %v2285_v4 = vrot.slane %v7432_v10, 2  ;;  %v7440_v16 = vld [vmem:[#allocation57_spill] sm:$0xff]  ;;  %v7448_v51 = vld [vmem:[#allocation38_spill] sm:$0xff] }
 0x1df   : > { %v2286_v27 = vrot.slane %v7433_v43, 2  ;;  %v2288_v61 = vrot.slane %v7434_v30, 2  ;;  %v7436_v59 = vrot.slane %v7435_v5, 2  ;;  %v2289_v25 = vrot.slane %v7437_v56, 2  ;;  %v7447_v19 = vld [vmem:[#allocation37_spill] sm:$0xff]  ;;  %v7450_v48 = vld [vmem:[#allocation63_spill] sm:$0xff] }
 0x1e0   : > { %v6070_v37 = vsel %vm2272_vm4, %v7429_v20, %v7427_v24  ;;  %v2291_v1 = vrot.slane %v7438_v53, 2  ;;  %v2292_v42 = vrot.slane %v7439_v26, 2  ;;  %v2294_v11 = vrot.slane %v7440_v16, 2  ;;  %v7451_v49 = vld [vmem:[#allocation56_spill] sm:$0xff]  ;;  %v7458_v26 = vld [vmem:[#allocation46_spill] sm:$0xff] }
 0x1e1   : > { %v6080_v28 = vsel %vm2272_vm4, %v7436_v59, %v2280_v58  ;;  %v2295_v63 = vrot.slane %v7441_v2, 2  ;;  %v2297_v0 = vrot.slane %v7442_v45, 2  ;;  %v2298_v36 = vrot.slane %v7443_v34, 2  ;;  %v7452_v10 = vld [vmem:[#allocation76_spill] sm:$0xff]  ;;  %v7454_v59 = vld [vmem:[#allocation58_spill] sm:$0xff] }
 0x1e2   : > { %v2300_v31 = vrot.slane %v7444_v40, 2  ;;  %v2301_v62 = vrot.slane %v7445_v55, 2  ;;  %v2303_v39 = vrot.slane %v7446_v6, 2  ;;  %v2304_v21 = vrot.slane %v7447_v19, 2  ;;  %v7464_v19 = vld [vmem:[#allocation25_spill] sm:$0xff] }
 0x1e3   : > { %v6094_v44 = vsel %vm2272_vm4, %v2282_v18, %v2283_v17  ;;  %v2306_v32 = vrot.slane %v7448_v51, 2  ;;  %v2307_v50 = vrot.slane %v7449_v54, 2  ;;  %v2309_v46 = vrot.slane %v7450_v48, 2 }
 0x1e4   : > { %v6100_v24 = vsel %vm2272_vm4, %v2285_v4, %v2286_v27  ;;  %v6103_v20 = vsel %vm2272_vm4, %v2288_v61, %v2289_v25  ;;  %v2310_v41 = vrot.slane %v7451_v49, 2  ;;  %v2312_v43 = vrot.slane %v7452_v10, 2 }
 0x1e5   : > { %v6108_v30 = vsel %vm2272_vm4, %v2291_v1, %v2292_v42  ;;  %v6111_v18 = vsel %vm2272_vm4, %v2294_v11, %v2295_v63  ;;  %v6114_v5 = vsel %vm2272_vm4, %v2297_v0, %v2298_v36  ;;  %v2313_v56 = vrot.slane %v7454_v59, 2  ;;  %v7473_v59 = vld [vmem:[#allocation71_spill] sm:$0xff] }
 0x1e6   : > { %7453 = vst [vmem:[#allocation75_spill] sm:$0xff] %v6114_v5  ;;  %v6118_v4 = vsel %vm2272_vm4, %v2300_v31, %v2301_v62  ;;  %v6121_v61 = vsel %vm2272_vm4, %v2303_v39, %v2304_v21  ;;  %v6124_v53 = vsel %vm2272_vm4, %v2306_v32, %v2307_v50  ;;  %v7459_v1 = vrot.slane %v7458_v26, 2 }
 0x1e7   : > { %7455 = vst [vmem:[#allocation66_spill] sm:$0xff] %v6118_v4  ;;  %7456 = vst [vmem:[#allocation42_spill] sm:$0xff] %v6121_v61  ;;  %v6130_v11 = vsel %vm2272_vm4, %v2309_v46, %v2310_v41  ;;  %v7461_v2 = vrot.slane %v7426_v15, 2  ;;  %v6136_v0 = vsel %vm2272_vm4, %v2280_v58, 0.0  ;;  %v6139_v34 = vsel %vm2272_vm4, %v2283_v17, 0.0  ;;  %v7471_v46 = vld [vmem:[#allocation51_spill] sm:$0xff] }
 0x1e8   : > { %7457 = vst [vmem:[#allocation52_spill] sm:$0xff] %v6124_v53  ;;  %v2343_v16 = vsel %vm2272_vm4, %v7459_v1, 0.0  ;;  %7460 = vst [vmem:[#allocation64_spill] sm:$0xff] %v6130_v11  ;;  %v6142_v40 = vsel %vm2272_vm4, %v2312_v43, %v2313_v56  ;;  %v6145_v31 = vsel %vm2272_vm4, %v2286_v27, 0.0  ;;  %v6148_v55 = vsel %vm2272_vm4, %v2289_v25, 0.0 }
 0x1e9   : > { %v2344_v45 = vsel %vm2272_vm4, %v7461_v2, 0.0  ;;  %7462 = vst [vmem:[#allocation45_spill] sm:$0xff] %v6142_v40  ;;  %v6151_v6 = vsel %vm2272_vm4, %v2292_v42, 0.0  ;;  %v6154_v39 = vsel %vm2272_vm4, %v2295_v63, 0.0  ;;  %v6157_v58 = vsel %vm2272_vm4, %v2298_v36, 0.0  ;;  %v7467_v42 = vld [vmem:[#allocation70_spill] sm:$0xff] }
 0x1ea   : > { %v6160_v17 = vsel %vm2272_vm4, %v2301_v62, 0.0  ;;  %v2359_v51 = vsub.s32 5, %v7464_v19  ;;  %v6164_v27 = vsel %vm2272_vm4, %v2304_v21, 0.0  ;;  %v6167_v25 = vsel %vm2272_vm4, %v2307_v50, 0.0  ;;  %v7470_v62 = vld [vmem:[#allocation32_spill] sm:$0xff]  ;;  %v7472_v21 = vld [vmem:[#allocation73_spill] sm:$0xff] }
 0x1eb   : > { %7463 = vst [vmem:[#allocation55_spill] sm:$0xff] %v6160_v17  ;;  %7465 = vst [vmem:[#allocation60_spill] sm:$0xff] %v6164_v27  ;;  %v2610_v32 = vrot.slane %v7467_v42, 3  ;;  %v6172_v54 = vsel %vm2272_vm4, %v2310_v41, 0.0  ;;  %v6175_v36 = vsel %vm2272_vm4, %v2313_v56, 0.0  ;;  %v7475_v41 = vld [vmem:[#allocation54_spill] sm:$0xff] }
 0x1ec   : > { %7466 = vst [vmem:[#allocation44_spill] sm:$0xff] %v6167_v25  ;;  %7468 = vst [vmem:[#allocation27_spill] sm:$0xff] %v6172_v54  ;;  %v2360_v48 = vrot.slane %v7470_v62, %v2359_v51  ;;  %v2396_v49 = vrot.slane %v7471_v46, %v2359_v51  ;;  %v6180_v10 = vrot.slane %v7472_v21, %v2359_v51  ;;  %v7477_v56 = vld [vmem:[#allocation30_spill] sm:$0xff]  ;;  %v7479_v62 = vld [vmem:[#allocation29_spill] sm:$0xff]  ;;  %v7482_v43 = vrot.slane %v7458_v26, 3 }
 0x1ed   : > { %7469 = vst [vmem:[#allocation39_spill] sm:$0xff] %v6175_v36  ;;  %v6186_v1 = vrot.slane %v7473_v59, %v2359_v51  ;;  %v6189_v2 = vrot.slane %v7475_v41, %v2359_v51  ;;  %v6192_v42 = vrot.slane %v7477_v56, %v2359_v51  ;;  %v6195_v63 = vrot.slane %v7479_v62, %v2359_v51  ;;  %v7481_v46 = vld [vmem:[#allocation33_spill] sm:$0xff] }
 0x1ee   : > { %v2361_v21 = vmul.f32 %v2360_v48, %v7481_v46  ;;  %v2362_v19 = vmul.f32 %v2360_v48, %v2343_v16  ;;  %v2363_v50 = vmul.f32 %v2360_v48, %v6070_v37  ;;  %v6202_v52 = vsel %vm2609_vm5, %v2610_v32, %v7482_v43 }
 0x1ef   : > { %7474 = vst [vmem:[#allocation47_spill] sm:$0xff] %v6186_v1  ;;  %7476 = vst [vmem:[#allocation77_spill] sm:$0xff] %v6189_v2  ;;  %v2364_v59 = vmul.f32 %v2360_v48, %v2344_v45  ;;  %v2365_v41 = vmul.f32 %v2360_v48, %v6080_v28  ;;  %v2366_v15 = vmul.f32 %v2360_v48, %v6136_v0 }
 0x1f0   : > { %7478 = vst [vmem:[#allocation40_spill] sm:$0xff] %v6192_v42  ;;  %7480 = vst [vmem:[#allocation41_spill] sm:$0xff] %v6195_v63  ;;  %v2367_v56 = vmul.f32 %v2360_v48, %v6094_v44  ;;  %v2368_v51 = vmul.f32 %v2360_v48, %v6139_v34  ;;  %v2369_v62 = vmul.f32 %v2360_v48, %v6100_v24 }
 0x1f1   : > { %7483 = vst [vmem:[#allocation49_spill] sm:$0xff] %v6202_v52  ;;  %v2370_v16 = vmul.f32 %v2360_v48, %v6145_v31  ;;  %v2371_v46 = vmul.f32 %v2360_v48, %v6103_v20  ;;  %v2372_v26 = vmul.f32 %v2360_v48, %v6148_v55  ;;  %v2373_v32 = vmul.f32 %v2360_v48, %v6108_v30 }
 0x1f2   : > { %v2374_v43 = vmul.f32 %v2360_v48, %v6151_v6  ;;  %v2375_v52 = vmul.f32 %v2360_v48, %v6111_v18  ;;  %v2376_v36 = vmul.f32 %v2360_v48, %v6154_v39  ;;  %v2377_v40 = vadd.f32 %v2361_v21, %v6032_v29 }
 0x1f3   : > { %v2378_v63 = vadd.f32 %v2362_v19, %v6034_v22  ;;  %v2379_v54 = vadd.f32 %v2363_v50, %v6036_v35  ;;  %v2380_v11 = vadd.f32 %v2364_v59, %v6038_v3  ;;  %v2381_v42 = vadd.f32 %v2365_v41, %v6040_v23 }
 0x1f4   : > { %v2382_v25 = vadd.f32 %v2366_v15, %v6042_v33  ;;  %v2383_v53 = vadd.f32 %v2367_v56, %v6044_v12  ;;  %v2384_v2 = vadd.f32 %v2368_v51, %v6046_v60  ;;  %v2385_v27 = vadd.f32 %v2369_v62, %v6048_v38 }
 0x1f5   : > { %v2386_v48 = vadd.f32 %v2370_v16, %v6050_v13  ;;  %v2387_v29 = vadd.f32 %v2371_v46, %v6052_v9  ;;  %v2388_v22 = vadd.f32 %v2372_v26, %v6054_v8  ;;  %v2389_v35 = vadd.f32 %v2373_v32, %v6056_v47 }
 0x1f6   : > { %v2390_v3 = vadd.f32 %v2374_v43, %v6058_v7  ;;  %v2391_v23 = vadd.f32 %v2375_v52, %v6061_v14  ;;  %v2392_v33 = vadd.f32 %v2376_v36, %v6063_v57  ;;  %v2397_v12 = vmul.f32 %v2396_v49, %v6070_v37 }
 0x1f7   : > { %v2398_v15 = vmul.f32 %v2396_v49, %v2344_v45  ;;  %v2399_v60 = vmul.f32 %v2396_v49, %v6080_v28  ;;  %v2400_v38 = vmul.f32 %v2396_v49, %v6136_v0  ;;  %v2401_v13 = vmul.f32 %v2396_v49, %v6094_v44 }
 0x1f8   : > { %v2402_v9 = vmul.f32 %v2396_v49, %v6139_v34  ;;  %v2403_v8 = vmul.f32 %v2396_v49, %v6100_v24  ;;  %v2404_v47 = vmul.f32 %v2396_v49, %v6145_v31  ;;  %v2405_v7 = vmul.f32 %v2396_v49, %v6103_v20 }
 0x1f9   : > { %v2406_v14 = vmul.f32 %v2396_v49, %v6148_v55  ;;  %v2407_v57 = vmul.f32 %v2396_v49, %v6108_v30  ;;  %v2408_v52 = vmul.f32 %v2396_v49, %v6151_v6  ;;  %v2409_v37 = vmul.f32 %v2396_v49, %v6111_v18 }
 0x1fa   : > { %v2410_v26 = vmul.f32 %v2396_v49, %v6154_v39  ;;  %v2411_v45 = vmul.f32 %v2396_v49, %v6114_v5  ;;  %v2412_v19 = vmul.f32 %v2396_v49, %v6157_v58  ;;  %v2413_v36 = vadd.f32 %v2397_v12, %v2377_v40 }
 0x1fb   : > { %v2414_v50 = vadd.f32 %v2398_v15, %v2378_v63  ;;  %v2415_v21 = vadd.f32 %v2399_v60, %v2379_v54  ;;  %v2416_v59 = vadd.f32 %v2400_v38, %v2380_v11  ;;  %v2417_v41 = vadd.f32 %v2401_v13, %v2381_v42  ;;  %v7484_v42 = vld [vmem:[#allocation75_spill] sm:$0xff] }
 0x1fc   : > { %v2418_v56 = vadd.f32 %v2402_v9, %v2382_v25  ;;  %v2419_v51 = vadd.f32 %v2403_v8, %v2383_v53  ;;  %v2420_v62 = vadd.f32 %v2404_v47, %v2384_v2  ;;  %v2421_v16 = vadd.f32 %v2405_v7, %v2385_v27 }
 0x1fd   : > { %v2422_v46 = vadd.f32 %v2406_v14, %v2386_v48  ;;  %v2423_v32 = vadd.f32 %v2407_v57, %v2387_v29  ;;  %v2424_v43 = vadd.f32 %v2408_v52, %v2388_v22  ;;  %v2425_v61 = vadd.f32 %v2409_v37, %v2389_v35  ;;  %v7485_v22 = vld [vmem:[#allocation66_spill] sm:$0xff] }
 0x1fe   : > { %v2426_v1 = vadd.f32 %v2410_v26, %v2390_v3  ;;  %v2427_v17 = vadd.f32 %v2411_v45, %v2391_v23  ;;  %v2428_v4 = vadd.f32 %v2412_v19, %v2392_v33  ;;  %v2433_v5 = vmul.f32 %v6180_v10, %v6080_v28  ;;  %v7486_v3 = vld [vmem:[#allocation55_spill] sm:$0xff] }
 0x1ff   : > { %v2434_v40 = vmul.f32 %v6180_v10, %v6136_v0  ;;  %v2435_v11 = vmul.f32 %v6180_v10, %v6094_v44  ;;  %v2436_v53 = vmul.f32 %v6180_v10, %v6139_v34  ;;  %v2437_v27 = vmul.f32 %v6180_v10, %v6100_v24  ;;  %v7487_v19 = vld [vmem:[#allocation47_spill] sm:$0xff] }
 0x200   : > { %v2438_v25 = vmul.f32 %v6180_v10, %v6145_v31  ;;  %v2439_v63 = vmul.f32 %v6180_v10, %v6103_v20  ;;  %v2440_v28 = vmul.f32 %v6180_v10, %v6148_v55  ;;  %v2441_v0 = vmul.f32 %v6180_v10, %v6108_v30 }
 0x201   : > { %v2442_v54 = vmul.f32 %v6180_v10, %v6151_v6  ;;  %v2443_v49 = vmul.f32 %v6180_v10, %v6111_v18  ;;  %v2444_v2 = vmul.f32 %v6180_v10, %v6154_v39  ;;  %v2445_v48 = vmul.f32 %v6180_v10, %v7484_v42 }
 0x202   : > { %v2446_v29 = vmul.f32 %v6180_v10, %v6157_v58  ;;  %v2447_v35 = vmul.f32 %v6180_v10, %v7485_v22  ;;  %v2448_v23 = vmul.f32 %v6180_v10, %v7486_v3  ;;  %v2449_v33 = vadd.f32 %v2433_v5, %v2413_v36 }
 0x203   : > { %v2450_v12 = vadd.f32 %v2434_v40, %v2414_v50  ;;  %v2451_v15 = vadd.f32 %v2435_v11, %v2415_v21  ;;  %v2452_v60 = vadd.f32 %v2436_v53, %v2416_v59  ;;  %v2453_v38 = vadd.f32 %v2437_v27, %v2417_v41  ;;  %v7488_v59 = vld [vmem:[#allocation66_spill] sm:$0xff] }
 0x204   : > { %v2454_v13 = vadd.f32 %v2438_v25, %v2418_v56  ;;  %v2455_v9 = vadd.f32 %v2439_v63, %v2419_v51  ;;  %v2456_v8 = vadd.f32 %v2440_v28, %v2420_v62  ;;  %v2457_v47 = vadd.f32 %v2441_v0, %v2421_v16  ;;  %v7489_v51 = vld [vmem:[#allocation42_spill] sm:$0xff]  ;;  %v7490_v16 = vld [vmem:[#allocation60_spill] sm:$0xff] }
 0x205   : > { %v2458_v7 = vadd.f32 %v2442_v54, %v2422_v46  ;;  %v2459_v14 = vadd.f32 %v2443_v49, %v2423_v32  ;;  %v2460_v57 = vadd.f32 %v2444_v2, %v2424_v43  ;;  %v2461_v52 = vadd.f32 %v2445_v48, %v2425_v61 }
 0x206   : > { %v2462_v37 = vadd.f32 %v2446_v29, %v2426_v1  ;;  %v2463_v26 = vadd.f32 %v2447_v35, %v2427_v17  ;;  %v2464_v45 = vadd.f32 %v2448_v23, %v2428_v4  ;;  %v2469_v22 = vmul.f32 %v7487_v19, %v6094_v44  ;;  %v7491_v23 = vld [vmem:[#allocation77_spill] sm:$0xff] }
 0x207   : > { %v2470_v5 = vmul.f32 %v7487_v19, %v6139_v34  ;;  %v2471_v10 = vmul.f32 %v7487_v19, %v6100_v24  ;;  %v2472_v36 = vmul.f32 %v7487_v19, %v6145_v31  ;;  %v2473_v50 = vmul.f32 %v7487_v19, %v6103_v20 }
 0x208   : > { %v2474_v61 = vmul.f32 %v7487_v19, %v6148_v55  ;;  %v2475_v4 = vmul.f32 %v7487_v19, %v6108_v30  ;;  %v2476_v44 = vmul.f32 %v7487_v19, %v6151_v6  ;;  %v2477_v34 = vmul.f32 %v7487_v19, %v6111_v18 }
 0x209   : > { %v2478_v17 = vmul.f32 %v7487_v19, %v6154_v39  ;;  %v2479_v1 = vmul.f32 %v7487_v19, %v7484_v42  ;;  %v2480_v21 = vmul.f32 %v7487_v19, %v6157_v58  ;;  %v2481_v41 = vmul.f32 %v7487_v19, %v7488_v59 }
 0x20a   : > { %v2482_v56 = vmul.f32 %v7487_v19, %v7486_v3  ;;  %v2483_v62 = vmul.f32 %v7487_v19, %v7489_v51  ;;  %v2484_v46 = vmul.f32 %v7487_v19, %v7490_v16  ;;  %v2485_v32 = vadd.f32 %v2469_v22, %v2449_v33 }
 0x20b   : > { %v2486_v43 = vadd.f32 %v2470_v5, %v2450_v12  ;;  %v2487_v40 = vadd.f32 %v2471_v10, %v2451_v15  ;;  %v2488_v11 = vadd.f32 %v2472_v36, %v2452_v60  ;;  %v2489_v53 = vadd.f32 %v2473_v50, %v2453_v38 }
 0x20c   : > { %v2490_v27 = vadd.f32 %v2474_v61, %v2454_v13  ;;  %v2491_v25 = vadd.f32 %v2475_v4, %v2455_v9  ;;  %v2492_v63 = vadd.f32 %v2476_v44, %v2456_v8  ;;  %v2493_v28 = vadd.f32 %v2477_v34, %v2457_v47  ;;  %v7492_v47 = vld [vmem:[#allocation42_spill] sm:$0xff] }
 0x20d   : > { %v2494_v0 = vadd.f32 %v2478_v17, %v2458_v7  ;;  %v2495_v54 = vadd.f32 %v2479_v1, %v2459_v14  ;;  %v2496_v49 = vadd.f32 %v2480_v21, %v2460_v57  ;;  %v2497_v2 = vadd.f32 %v2481_v41, %v2461_v52  ;;  %v7493_v57 = vld [vmem:[#allocation52_spill] sm:$0xff] }
 0x20e   : > { %v2498_v48 = vadd.f32 %v2482_v56, %v2462_v37  ;;  %v2499_v29 = vadd.f32 %v2483_v62, %v2463_v26  ;;  %v2500_v35 = vadd.f32 %v2484_v46, %v2464_v45  ;;  %v2505_v51 = vmul.f32 %v7491_v23, %v6100_v24  ;;  %v7494_v37 = vld [vmem:[#allocation44_spill] sm:$0xff] }
 0x20f   : > { %v2506_v22 = vmul.f32 %v7491_v23, %v6145_v31  ;;  %v2507_v33 = vmul.f32 %v7491_v23, %v6103_v20  ;;  %v2508_v12 = vmul.f32 %v7491_v23, %v6148_v55  ;;  %v2509_v15 = vmul.f32 %v7491_v23, %v6108_v30  ;;  %v7495_v46 = vld [vmem:[#allocation40_spill] sm:$0xff] }
 0x210   : > { %v2510_v60 = vmul.f32 %v7491_v23, %v6151_v6  ;;  %v2511_v38 = vmul.f32 %v7491_v23, %v6111_v18  ;;  %v2512_v24 = vmul.f32 %v7491_v23, %v6154_v39  ;;  %v2513_v31 = vmul.f32 %v7491_v23, %v7484_v42 }
 0x211   : > { %v2514_v13 = vmul.f32 %v7491_v23, %v6157_v58  ;;  %v2515_v9 = vmul.f32 %v7491_v23, %v7488_v59  ;;  %v2516_v8 = vmul.f32 %v7491_v23, %v7486_v3  ;;  %v2517_v7 = vmul.f32 %v7491_v23, %v7492_v47 }
 0x212   : > { %v2518_v14 = vmul.f32 %v7491_v23, %v7490_v16  ;;  %v2519_v52 = vmul.f32 %v7491_v23, %v7493_v57  ;;  %v2520_v26 = vmul.f32 %v7491_v23, %v7494_v37  ;;  %v2521_v45 = vadd.f32 %v2505_v51, %v2485_v32 }
 0x213   : > { %v2522_v19 = vadd.f32 %v2506_v22, %v2486_v43  ;;  %v2523_v5 = vadd.f32 %v2507_v33, %v2487_v40  ;;  %v2524_v10 = vadd.f32 %v2508_v12, %v2488_v11  ;;  %v2525_v36 = vadd.f32 %v2509_v15, %v2489_v53 }
 0x214   : > { %v2526_v50 = vadd.f32 %v2510_v60, %v2490_v27  ;;  %v2527_v61 = vadd.f32 %v2511_v38, %v2491_v25  ;;  %v2528_v4 = vadd.f32 %v2512_v24, %v2492_v63  ;;  %v2529_v44 = vadd.f32 %v2513_v31, %v2493_v28  ;;  %v7496_v28 = vld [vmem:[#allocation52_spill] sm:$0xff] }
 0x215   : > { %v2530_v34 = vadd.f32 %v2514_v13, %v2494_v0  ;;  %v2531_v17 = vadd.f32 %v2515_v9, %v2495_v54  ;;  %v2532_v1 = vadd.f32 %v2516_v8, %v2496_v49  ;;  %v2533_v21 = vadd.f32 %v2517_v7, %v2497_v2  ;;  %v7497_v49 = vld [vmem:[#allocation64_spill] sm:$0xff] }
 0x216   : > { %v2534_v41 = vadd.f32 %v2518_v14, %v2498_v48  ;;  %v2535_v56 = vadd.f32 %v2519_v52, %v2499_v29  ;;  %v2536_v62 = vadd.f32 %v2520_v26, %v2500_v35  ;;  %v2541_v57 = vmul.f32 %v7495_v46, %v6103_v20  ;;  %v7498_v48 = vld [vmem:[#allocation27_spill] sm:$0xff]  ;;  %v7499_v26 = vld [vmem:[#allocation41_spill] sm:$0xff] }
 0x217   : > { %v2542_v51 = vmul.f32 %v7495_v46, %v6148_v55  ;;  %v2543_v32 = vmul.f32 %v7495_v46, %v6108_v30  ;;  %v2544_v43 = vmul.f32 %v7495_v46, %v6151_v6  ;;  %v2545_v40 = vmul.f32 %v7495_v46, %v6111_v18 }
 0x218   : > { %v2546_v11 = vmul.f32 %v7495_v46, %v6154_v39  ;;  %v2547_v53 = vmul.f32 %v7495_v46, %v7484_v42  ;;  %v2548_v20 = vmul.f32 %v7495_v46, %v6157_v58  ;;  %v2549_v55 = vmul.f32 %v7495_v46, %v7488_v59 }
 0x219   : > { %v2550_v27 = vmul.f32 %v7495_v46, %v7486_v3  ;;  %v2551_v25 = vmul.f32 %v7495_v46, %v7492_v47  ;;  %v2552_v63 = vmul.f32 %v7495_v46, %v7490_v16  ;;  %v2553_v0 = vmul.f32 %v7495_v46, %v7496_v28 }
 0x21a   : > { %v2554_v54 = vmul.f32 %v7495_v46, %v7494_v37  ;;  %v2555_v2 = vmul.f32 %v7495_v46, %v7497_v49  ;;  %v2556_v29 = vmul.f32 %v7495_v46, %v7498_v48  ;;  %v2557_v35 = vadd.f32 %v2541_v57, %v2521_v45 }
 0x21b   : > { %v2558_v23 = vadd.f32 %v2542_v51, %v2522_v19  ;;  %v2559_v22 = vadd.f32 %v2543_v32, %v2523_v5  ;;  %v2560_v33 = vadd.f32 %v2544_v43, %v2524_v10  ;;  %v2561_v12 = vadd.f32 %v2545_v40, %v2525_v36  ;;  %v3658_v43 = vld [vmem:[%s3991_s20 + $0x20] sm:$0xff] }
 0x21c   : > { %v2562_v15 = vadd.f32 %v2546_v11, %v2526_v50  ;;  %v2563_v60 = vadd.f32 %v2547_v53, %v2527_v61  ;;  %v2564_v38 = vadd.f32 %v2548_v20, %v2528_v4  ;;  %v2565_v24 = vadd.f32 %v2549_v55, %v2529_v44  ;;  %v7500_v50 = vld [vmem:[#allocation64_spill] sm:$0xff]  ;;  %v7501_v61 = vld [vmem:[#allocation45_spill] sm:$0xff] }
 0x21d   : > { %v2566_v31 = vadd.f32 %v2550_v27, %v2530_v34  ;;  %v2567_v13 = vadd.f32 %v2551_v25, %v2531_v17  ;;  %v2568_v9 = vadd.f32 %v2552_v63, %v2532_v1  ;;  %v2569_v8 = vadd.f32 %v2553_v0, %v2533_v21  ;;  %v6435_v11 = vld [vmem:[%s3991_s20 + $0x28] sm:$0xff] }
 0x21e   : > { %v2570_v7 = vadd.f32 %v2554_v54, %v2534_v41  ;;  %v2571_v14 = vadd.f32 %v2555_v2, %v2535_v56  ;;  %v2572_v52 = vadd.f32 %v2556_v29, %v2536_v62  ;;  %v2577_v49 = vmul.f32 %v7499_v26, %v6108_v30  ;;  %v7503_v25 = vld [vmem:[#allocation50_spill] sm:$0xff] }
 0x21f   : > { %v2578_v57 = vmul.f32 %v7499_v26, %v6151_v6  ;;  %v2579_v45 = vmul.f32 %v7499_v26, %v6111_v18  ;;  %v2580_v19 = vmul.f32 %v7499_v26, %v6154_v39  ;;  %v2581_v5 = vmul.f32 %v7499_v26, %v7484_v42 }
 0x220   : > { %v2582_v10 = vmul.f32 %v7499_v26, %v6157_v58  ;;  %v2583_v36 = vmul.f32 %v7499_v26, %v7488_v59  ;;  %v2584_v30 = vmul.f32 %v7499_v26, %v7486_v3  ;;  %v2585_v6 = vmul.f32 %v7499_v26, %v7492_v47  ;;  %v7502_v47 = vld [vmem:[#allocation39_spill] sm:$0xff] }
 0x221   : > { %v2586_v18 = vmul.f32 %v7499_v26, %v7490_v16  ;;  %v2587_v39 = vmul.f32 %v7499_v26, %v7496_v28  ;;  %v2588_v42 = vmul.f32 %v7499_v26, %v7494_v37  ;;  %v2589_v58 = vmul.f32 %v7499_v26, %v7500_v50  ;;  %v7505_v28 = vld [vmem:[#allocation48_spill] sm:$0xff]  ;;  %v3675_v50 = vld [vmem:[%s3991_s20 + $0xa8] sm:$0xff] }
 0x222   : > { %v2590_v59 = vmul.f32 %v7499_v26, %v7498_v48  ;;  %v2591_v3 = vmul.f32 %v7499_v26, %v7501_v61  ;;  %v2592_v4 = vmul.f32 %v7499_v26, %v7502_v47  ;;  %v6407_v16 = vadd.f32 %v2577_v49, %v2557_v35  ;;  %v3660_v49 = vld [vmem:[%s3991_s20 + $0x30] sm:$0xff]  ;;  %v3661_v48 = vld [vmem:[%s3991_s20 + $0x38] sm:$0xff]  ;;  %v3662_v35 = vld [vmem:[%s3991_s20 + $0x40] sm:$0xff] }
 0x223   : > { %v6409_v44 = vadd.f32 %v2578_v57, %v2558_v23  ;;  %v6411_v34 = vadd.f32 %v2579_v45, %v2559_v22  ;;  %v6413_v37 = vadd.f32 %v2580_v19, %v2560_v33  ;;  %v6415_v17 = vadd.f32 %v2581_v5, %v2561_v12  ;;  %v3663_v22 = vld [vmem:[%s3991_s20 + $0x48] sm:$0xff]  ;;  %v3670_v57 = vld [vmem:[%s3991_s20 + $0x80] sm:$0xff] }
 0x224   : > { %v6417_v1 = vadd.f32 %v2582_v10, %v2562_v15  ;;  %v6419_v21 = vadd.f32 %v2583_v36, %v2563_v60  ;;  %v6421_v41 = vadd.f32 %v2584_v30, %v2564_v38  ;;  %v6423_v56 = vadd.f32 %v2585_v6, %v2565_v24  ;;  %v3664_v15 = vld [vmem:[%s3991_s20 + $0x50] sm:$0xff]  ;;  %v3665_v38 = vld [vmem:[%s3991_s20 + $0x58] sm:$0xff]  ;;  %v3671_v19 = vld [vmem:[%s3991_s20 + $0x88] sm:$0xff] }
 0x225   : > { %v6425_v62 = vadd.f32 %v2586_v18, %v2566_v31  ;;  %v6427_v46 = vadd.f32 %v2587_v39, %v2567_v13  ;;  %v6429_v51 = vadd.f32 %v2588_v42, %v2568_v9  ;;  %v6431_v32 = vadd.f32 %v2589_v58, %v2569_v8  ;;  %v3666_v31 = vld [vmem:[%s3991_s20 + $0x60] sm:$0xff]  ;;  %v3667_v9 = vld [vmem:[%s3991_s20 + $0x68] sm:$0xff]  ;;  %v3672_v10 = vld [vmem:[%s3991_s20 + $0x90] sm:$0xff] }
 0x226   : > { %v2616_v40 = vrot.slane %v3658_v43, 3  ;;  %v2617_v53 = vrot.slane %v6435_v11, 3  ;;  %v6438_v20 = vadd.f32 %v2590_v59, %v2570_v7  ;;  %v6440_v55 = vadd.f32 %v2591_v3, %v2571_v14  ;;  %v3668_v7 = vld [vmem:[%s3991_s20 + $0x70] sm:$0xff]  ;;  %v3673_v30 = vld [vmem:[%s3991_s20 + $0x98] sm:$0xff]  ;;  %v3674_v18 = vld [vmem:[%s3991_s20 + $0xa0] sm:$0xff] }
 0x227   : > { %v6442_v27 = vadd.f32 %v2592_v4, %v2572_v52  ;;  %v7504_v63 = vrot.slane %v7503_v25, 3  ;;  %v7506_v0 = vrot.slane %v7505_v28, 3  ;;  %v2619_v2 = vrot.slane %v3660_v49, 3  ;;  %v3669_v52 = vld [vmem:[%s3991_s20 + $0x78] sm:$0xff]  ;;  %v3676_v59 = vld [vmem:[%s3991_s20 + $0xb0] sm:$0xff]  ;;  %v3678_v43 = vld [vmem:[%s3991_s20 + $0xc0] sm:$0xff] }
 0x228   : > { %v2620_v29 = vrot.slane %v3661_v48, 3  ;;  %v2622_v23 = vrot.slane %v3662_v35, 3  ;;  %v2623_v33 = vrot.slane %v3663_v22, 3  ;;  %v6456_v12 = vsel %vm2609_vm5, %v2616_v40, %v2617_v53  ;;  %v3677_v3 = vld [vmem:[%s3991_s20 + $0xb8] sm:$0xff]  ;;  %v3679_v11 = vld [vmem:[%s3991_s20 + $0xc8] sm:$0xff]  ;;  %v3680_v28 = vld [vmem:[%s3991_s20 + $0xd0] sm:$0xff] }
 0x229   : > { %v6449_v54 = vsel %vm2609_vm5, %v7506_v0, %v7504_v63  ;;  %v2625_v60 = vrot.slane %v3664_v15, 3  ;;  %v2626_v24 = vrot.slane %v3665_v38, 3  ;;  %v2628_v13 = vrot.slane %v3666_v31, 3  ;;  %v3681_v35 = vld [vmem:[%s3991_s20 + $0xd8] sm:$0xff] }
 0x22a   : > { %v2629_v8 = vrot.slane %v3667_v9, 3  ;;  %v2631_v14 = vrot.slane %v3668_v7, 3  ;;  %v2632_v26 = vrot.slane %v3669_v52, 3  ;;  %v2634_v45 = vrot.slane %v3670_v57, 3 }
 0x22b   : > { %v2635_v5 = vrot.slane %v3671_v19, 3  ;;  %v2637_v36 = vrot.slane %v3672_v10, 3  ;;  %v2638_v6 = vrot.slane %v3673_v30, 3  ;;  %v2640_v39 = vrot.slane %v3674_v18, 3  ;;  %v7516_v18 = vld [vmem:[#allocation25_spill] sm:$0xff] }
 0x22c   : > { %v6470_v42 = vsel %vm2609_vm5, %v2619_v2, %v2620_v29  ;;  %v2641_v58 = vrot.slane %v3675_v50, 3  ;;  %v2643_v61 = vrot.slane %v3676_v59, 3  ;;  %v2644_v47 = vrot.slane %v3677_v3, 3  ;;  %v3684_v59 = vld [vmem:[%s6830_s1 + $0x10] sm:$0x7f] }
 0x22d   : > { %v6476_v4 = vsel %vm2609_vm5, %v2622_v23, %v2623_v33  ;;  %v2646_v40 = vrot.slane %v3678_v43, 3  ;;  %v2647_v63 = vrot.slane %v3679_v11, 3  ;;  %v2649_v0 = vrot.slane %v3680_v28, 3  ;;  %v3685_v3 = vld [vmem:[%s6830_s1 + $0x18] sm:$0x7f] }
 0x22e   : > { %v6482_v49 = vsel %vm2609_vm5, %v2625_v60, %v2626_v24  ;;  %v6485_v2 = vsel %vm2609_vm5, %v2628_v13, %v2629_v8  ;;  %v6488_v48 = vsel %vm2609_vm5, %v2631_v14, %v2632_v26  ;;  %v2650_v22 = vrot.slane %v3681_v35, 3  ;;  %v7512_v13 = vld [vmem:[#allocation46_spill] sm:$0xff]  ;;  %v3686_v43 = vld [vmem:[%s6830_s1 + $0x20] sm:$0x7f] }
 0x22f   : > { %v6492_v23 = vsel %vm2609_vm5, %v2634_v45, %v2635_v5  ;;  %v6495_v15 = vsel %vm2609_vm5, %v2637_v36, %v2638_v6  ;;  %v6498_v38 = vsel %vm2609_vm5, %v2640_v39, %v2641_v58  ;;  %v6501_v60 = vsel %vm2609_vm5, %v2643_v61, %v2644_v47  ;;  %v3687_v11 = vld [vmem:[%s6830_s1 + $0x28] sm:$0x7f]  ;;  %v3688_v28 = vld [vmem:[%s6830_s1 + $0x30] sm:$0x7f] }
 0x230   : > { %7507 = vst [vmem:[#allocation72_spill] sm:$0xff] %v6492_v23  ;;  %7508 = vst [vmem:[#allocation67_spill] sm:$0xff] %v6495_v15  ;;  %v6504_v31 = vsel %vm2609_vm5, %v2646_v40, %v2647_v63  ;;  %v7513_v9 = vrot.slane %v7512_v13, 3  ;;  %v7514_v14 = vrot.slane %v7503_v25, 3  ;;  %v6513_v57 = vsel %vm2609_vm5, %v2617_v53, 0.0  ;;  %v7526_v35 = vld [vmem:[#allocation49_spill] sm:$0xff] }
 0x231   : > { %7509 = vst [vmem:[#allocation62_spill] sm:$0xff] %v6498_v38  ;;  %7510 = vst [vmem:[#allocation74_spill] sm:$0xff] %v6501_v60  ;;  %v6516_v45 = vsel %vm2609_vm5, %v2649_v0, %v2650_v22  ;;  %v6519_v19 = vsel %vm2609_vm5, %v2620_v29, 0.0  ;;  %v6522_v10 = vsel %vm2609_vm5, %v2623_v33, 0.0  ;;  %v6525_v36 = vsel %vm2609_vm5, %v2626_v24, 0.0 }
 0x232   : > { %7511 = vst [vmem:[#allocation68_spill] sm:$0xff] %v6504_v31  ;;  %v2680_v7 = vsel %vm2609_vm5, %v7513_v9, 0.0  ;;  %v2681_v52 = vsel %vm2609_vm5, %v7514_v14, 0.0  ;;  %7515 = vst [vmem:[#allocation65_spill] sm:$0xff] %v6516_v45  ;;  %v6528_v30 = vsel %vm2609_vm5, %v2629_v8, 0.0  ;;  %v6531_v25 = vsel %vm2609_vm5, %v2632_v26, 0.0 }
 0x233   : > { %v6534_v53 = vsel %vm2609_vm5, %v2635_v5, 0.0  ;;  %v2696_v39 = vsub.s32 6, %v7516_v18  ;;  %v6538_v29 = vsel %vm2609_vm5, %v2638_v6, 0.0  ;;  %v6541_v33 = vsel %vm2609_vm5, %v2641_v58, 0.0  ;;  %v3682_v5 = vld [vmem:[%s6830_s1] sm:$0x7f] }
 0x234   : > { %7517 = vst [vmem:[#allocation53_spill] sm:$0xff] %v6538_v29  ;;  %7518 = vst [vmem:[#allocation61_spill] sm:$0xff] %v6541_v33  ;;  %v6544_v24 = vsel %vm2609_vm5, %v2644_v47, 0.0  ;;  %v6547_v8 = vsel %vm2609_vm5, %v2647_v63, 0.0  ;;  %v6550_v26 = vsel %vm2609_vm5, %v2650_v22, 0.0 }
 0x235   : > { %7519 = vst [vmem:[#allocation59_spill] sm:$0xff] %v6544_v24  ;;  %7520 = vst [vmem:[#allocation69_spill] sm:$0xff] %v6547_v8  ;;  %v2697_v50 = vrot.slane %v3682_v5, %v2696_v39  ;;  %v3683_v6 = vld [vmem:[%s6830_s1 + $0x8] sm:$0x7f]  ;;  %v6561_v61 = vrot.slane %v3684_v59, %v2696_v39  ;;  %v6566_v47 = vrot.slane %v3685_v3, %v2696_v39 }
 0x236   : > { %7521 = vst [vmem:[#allocation57_spill] sm:$0xff] %v6550_v26  ;;  %v2733_v58 = vrot.slane %v3683_v6, %v2696_v39  ;;  %v6571_v40 = vrot.slane %v3686_v43, %v2696_v39  ;;  %v6576_v63 = vrot.slane %v3687_v11, %v2696_v39  ;;  %v6581_v0 = vrot.slane %v3688_v28, %v2696_v39 }
 0x237   : > { %7522 = vst [vmem:[#allocation26_spill] sm:$0xff] %v6566_v47  ;;  %v2698_v22 = vmul.f32 %v2697_v50, %v7526_v35  ;;  %v2699_v13 = vmul.f32 %v2697_v50, %v2680_v7  ;;  %v2700_v9 = vmul.f32 %v2697_v50, %v6449_v54  ;;  %v2701_v14 = vmul.f32 %v2697_v50, %v2681_v52 }
 0x238   : > { %7523 = vst [vmem:[#allocation28_spill] sm:$0xff] %v6571_v40  ;;  %7524 = vst [vmem:[#allocation31_spill] sm:$0xff] %v6576_v63  ;;  %v2702_v18 = vmul.f32 %v2697_v50, %v6456_v12  ;;  %v2703_v5 = vmul.f32 %v2697_v50, %v6513_v57  ;;  %v2704_v6 = vmul.f32 %v2697_v50, %v6470_v42 }
 0x239   : > { %7525 = vst [vmem:[#allocation34_spill] sm:$0xff] %v6581_v0  ;;  %v2705_v59 = vmul.f32 %v2697_v50, %v6519_v19  ;;  %v2706_v3 = vmul.f32 %v2697_v50, %v6476_v4  ;;  %v2707_v43 = vmul.f32 %v2697_v50, %v6522_v10  ;;  %v2708_v39 = vmul.f32 %v2697_v50, %v6482_v49 }
 0x23a   : > { %v2709_v11 = vmul.f32 %v2697_v50, %v6525_v36  ;;  %v2710_v7 = vmul.f32 %v2697_v50, %v6485_v2  ;;  %v2711_v28 = vmul.f32 %v2697_v50, %v6528_v30  ;;  %v2712_v35 = vmul.f32 %v2697_v50, %v6488_v48 }
 0x23b   : > { %v2713_v26 = vmul.f32 %v2697_v50, %v6531_v25  ;;  %v2714_v45 = vadd.f32 %v2698_v22, %v6407_v16  ;;  %v2715_v0 = vadd.f32 %v2699_v13, %v6409_v44  ;;  %v2716_v8 = vadd.f32 %v2700_v9, %v6411_v34 }
 0x23c   : > { %v2717_v31 = vadd.f32 %v2701_v14, %v6413_v37  ;;  %v2718_v63 = vadd.f32 %v2702_v18, %v6415_v17  ;;  %v2719_v24 = vadd.f32 %v2703_v5, %v6417_v1  ;;  %v2720_v60 = vadd.f32 %v2704_v6, %v6419_v21 }
 0x23d   : > { %v2721_v40 = vadd.f32 %v2705_v59, %v6421_v41  ;;  %v2722_v33 = vadd.f32 %v2706_v3, %v6423_v56  ;;  %v2723_v50 = vadd.f32 %v2707_v43, %v6425_v62  ;;  %v2724_v16 = vadd.f32 %v2708_v39, %v6427_v46 }
 0x23e   : > { %v2725_v44 = vadd.f32 %v2709_v11, %v6429_v51  ;;  %v2726_v34 = vadd.f32 %v2710_v7, %v6431_v32  ;;  %v2727_v37 = vadd.f32 %v2711_v28, %v6438_v20  ;;  %v2728_v17 = vadd.f32 %v2712_v35, %v6440_v55 }
 0x23f   : > { %v2729_v1 = vadd.f32 %v2713_v26, %v6442_v27  ;;  %v2734_v21 = vmul.f32 %v2733_v58, %v6449_v54  ;;  %v2735_v22 = vmul.f32 %v2733_v58, %v2681_v52  ;;  %v2736_v41 = vmul.f32 %v2733_v58, %v6456_v12 }
 0x240   : > { %v2737_v56 = vmul.f32 %v2733_v58, %v6513_v57  ;;  %v2738_v62 = vmul.f32 %v2733_v58, %v6470_v42  ;;  %v2739_v46 = vmul.f32 %v2733_v58, %v6519_v19  ;;  %v2740_v51 = vmul.f32 %v2733_v58, %v6476_v4 }
 0x241   : > { %v2741_v32 = vmul.f32 %v2733_v58, %v6522_v10  ;;  %v2742_v20 = vmul.f32 %v2733_v58, %v6482_v49  ;;  %v2743_v55 = vmul.f32 %v2733_v58, %v6525_v36  ;;  %v2744_v27 = vmul.f32 %v2733_v58, %v6485_v2 }
 0x242   : > { %v2745_v54 = vmul.f32 %v2733_v58, %v6528_v30  ;;  %v2746_v52 = vmul.f32 %v2733_v58, %v6488_v48  ;;  %v2747_v26 = vmul.f32 %v2733_v58, %v6531_v25  ;;  %v2748_v13 = vmul.f32 %v2733_v58, %v6492_v23 }
 0x243   : > { %v2749_v9 = vmul.f32 %v2733_v58, %v6534_v53  ;;  %v2750_v14 = vadd.f32 %v2734_v21, %v2714_v45  ;;  %v2751_v18 = vadd.f32 %v2735_v22, %v2715_v0  ;;  %v2752_v5 = vadd.f32 %v2736_v41, %v2716_v8  ;;  %v7527_v0 = vld [vmem:[#allocation72_spill] sm:$0xff] }
 0x244   : > { %v2753_v6 = vadd.f32 %v2737_v56, %v2717_v31  ;;  %v2754_v59 = vadd.f32 %v2738_v62, %v2718_v63  ;;  %v2755_v3 = vadd.f32 %v2739_v46, %v2719_v24  ;;  %v2756_v43 = vadd.f32 %v2740_v51, %v2720_v60 }
 0x245   : > { %v2757_v39 = vadd.f32 %v2741_v32, %v2721_v40  ;;  %v2758_v11 = vadd.f32 %v2742_v20, %v2722_v33  ;;  %v2759_v7 = vadd.f32 %v2743_v55, %v2723_v50  ;;  %v2760_v28 = vadd.f32 %v2744_v27, %v2724_v16 }
 0x246   : > { %v2761_v35 = vadd.f32 %v2745_v54, %v2725_v44  ;;  %v2762_v38 = vadd.f32 %v2746_v52, %v2726_v34  ;;  %v2763_v47 = vadd.f32 %v2747_v26, %v2727_v37  ;;  %v2764_v29 = vadd.f32 %v2748_v13, %v2728_v17  ;;  %v7528_v44 = vld [vmem:[#allocation67_spill] sm:$0xff]  ;;  %v7529_v37 = vld [vmem:[#allocation53_spill] sm:$0xff] }
 0x247   : > { %v2765_v15 = vadd.f32 %v2749_v9, %v2729_v1  ;;  %v2770_v23 = vmul.f32 %v6561_v61, %v6456_v12  ;;  %v2771_v45 = vmul.f32 %v6561_v61, %v6513_v57  ;;  %v2772_v31 = vmul.f32 %v6561_v61, %v6470_v42  ;;  %v7530_v9 = vld [vmem:[#allocation26_spill] sm:$0xff] }
 0x248   : > { %v2773_v60 = vmul.f32 %v6561_v61, %v6519_v19  ;;  %v2774_v33 = vmul.f32 %v6561_v61, %v6476_v4  ;;  %v2775_v24 = vmul.f32 %v6561_v61, %v6522_v10  ;;  %v2776_v8 = vmul.f32 %v6561_v61, %v6482_v49 }
 0x249   : > { %v2777_v12 = vmul.f32 %v6561_v61, %v6525_v36  ;;  %v2778_v57 = vmul.f32 %v6561_v61, %v6485_v2  ;;  %v2779_v58 = vmul.f32 %v6561_v61, %v6528_v30  ;;  %v2780_v40 = vmul.f32 %v6561_v61, %v6488_v48 }
 0x24a   : > { %v2781_v63 = vmul.f32 %v6561_v61, %v6531_v25  ;;  %v2782_v50 = vmul.f32 %v6561_v61, %v7527_v0  ;;  %v2783_v16 = vmul.f32 %v6561_v61, %v6534_v53  ;;  %v2784_v34 = vmul.f32 %v6561_v61, %v7528_v44 }
 0x24b   : > { %v2785_v17 = vmul.f32 %v6561_v61, %v7529_v37  ;;  %v2786_v1 = vadd.f32 %v2770_v23, %v2750_v14  ;;  %v2787_v21 = vadd.f32 %v2771_v45, %v2751_v18  ;;  %v2788_v22 = vadd.f32 %v2772_v31, %v2752_v5 }
 0x24c   : > { %v2789_v41 = vadd.f32 %v2773_v60, %v2753_v6  ;;  %v2790_v56 = vadd.f32 %v2774_v33, %v2754_v59  ;;  %v2791_v62 = vadd.f32 %v2775_v24, %v2755_v3  ;;  %v2792_v46 = vadd.f32 %v2776_v8, %v2756_v43  ;;  %v7531_v6 = vld [vmem:[#allocation67_spill] sm:$0xff]  ;;  %v7532_v43 = vld [vmem:[#allocation62_spill] sm:$0xff] }
 0x24d   : > { %v2793_v51 = vadd.f32 %v2777_v12, %v2757_v39  ;;  %v2794_v32 = vadd.f32 %v2778_v57, %v2758_v11  ;;  %v2795_v20 = vadd.f32 %v2779_v58, %v2759_v7  ;;  %v2796_v55 = vadd.f32 %v2780_v40, %v2760_v28  ;;  %v7533_v11 = vld [vmem:[#allocation61_spill] sm:$0xff] }
 0x24e   : > { %v2797_v27 = vadd.f32 %v2781_v63, %v2761_v35  ;;  %v2798_v54 = vadd.f32 %v2782_v50, %v2762_v38  ;;  %v2799_v52 = vadd.f32 %v2783_v16, %v2763_v47  ;;  %v2800_v26 = vadd.f32 %v2784_v34, %v2764_v29 }
 0x24f   : > { %v2801_v13 = vadd.f32 %v2785_v17, %v2765_v15  ;;  %v2806_v44 = vmul.f32 %v7530_v9, %v6470_v42  ;;  %v2807_v23 = vmul.f32 %v7530_v9, %v6519_v19  ;;  %v2808_v61 = vmul.f32 %v7530_v9, %v6476_v4  ;;  %v7534_v17 = vld [vmem:[#allocation28_spill] sm:$0xff] }
 0x250   : > { %v2809_v14 = vmul.f32 %v7530_v9, %v6522_v10  ;;  %v2810_v18 = vmul.f32 %v7530_v9, %v6482_v49  ;;  %v2811_v38 = vmul.f32 %v7530_v9, %v6525_v36  ;;  %v2812_v15 = vmul.f32 %v7530_v9, %v6485_v2 }
 0x251   : > { %v2813_v42 = vmul.f32 %v7530_v9, %v6528_v30  ;;  %v2814_v19 = vmul.f32 %v7530_v9, %v6488_v48  ;;  %v2815_v29 = vmul.f32 %v7530_v9, %v6531_v25  ;;  %v2816_v47 = vmul.f32 %v7530_v9, %v7527_v0 }
 0x252   : > { %v2817_v5 = vmul.f32 %v7530_v9, %v6534_v53  ;;  %v2818_v59 = vmul.f32 %v7530_v9, %v7531_v6  ;;  %v2819_v3 = vmul.f32 %v7530_v9, %v7529_v37  ;;  %v2820_v39 = vmul.f32 %v7530_v9, %v7532_v43 }
 0x253   : > { %v2821_v7 = vmul.f32 %v7530_v9, %v7533_v11  ;;  %v2822_v28 = vadd.f32 %v2806_v44, %v2786_v1  ;;  %v2823_v35 = vadd.f32 %v2807_v23, %v2787_v21  ;;  %v2824_v45 = vadd.f32 %v2808_v61, %v2788_v22 }
 0x254   : > { %v2825_v31 = vadd.f32 %v2809_v14, %v2789_v41  ;;  %v2826_v60 = vadd.f32 %v2810_v18, %v2790_v56  ;;  %v2827_v33 = vadd.f32 %v2811_v38, %v2791_v62  ;;  %v2828_v24 = vadd.f32 %v2812_v15, %v2792_v46 }
 0x255   : > { %v2829_v8 = vadd.f32 %v2813_v42, %v2793_v51  ;;  %v2830_v12 = vadd.f32 %v2814_v19, %v2794_v32  ;;  %v2831_v57 = vadd.f32 %v2815_v29, %v2795_v20  ;;  %v2832_v58 = vadd.f32 %v2816_v47, %v2796_v55  ;;  %v7535_v32 = vld [vmem:[#allocation62_spill] sm:$0xff] }
 0x256   : > { %v2833_v40 = vadd.f32 %v2817_v5, %v2797_v27  ;;  %v2834_v63 = vadd.f32 %v2818_v59, %v2798_v54  ;;  %v2835_v50 = vadd.f32 %v2819_v3, %v2799_v52  ;;  %v2836_v16 = vadd.f32 %v2820_v39, %v2800_v26  ;;  %v7536_v27 = vld [vmem:[#allocation74_spill] sm:$0xff]  ;;  %v7537_v52 = vld [vmem:[#allocation59_spill] sm:$0xff] }
 0x257   : > { %v2837_v34 = vadd.f32 %v2821_v7, %v2801_v13  ;;  %v2842_v43 = vmul.f32 %v7534_v17, %v6476_v4  ;;  %v2843_v44 = vmul.f32 %v7534_v17, %v6522_v10  ;;  %v2844_v1 = vmul.f32 %v7534_v17, %v6482_v49  ;;  %v7538_v7 = vld [vmem:[#allocation31_spill] sm:$0xff] }
 0x258   : > { %v2845_v21 = vmul.f32 %v7534_v17, %v6525_v36  ;;  %v2846_v22 = vmul.f32 %v7534_v17, %v6485_v2  ;;  %v2847_v41 = vmul.f32 %v7534_v17, %v6528_v30  ;;  %v2848_v56 = vmul.f32 %v7534_v17, %v6488_v48 }
 0x259   : > { %v2849_v4 = vmul.f32 %v7534_v17, %v6531_v25  ;;  %v2850_v10 = vmul.f32 %v7534_v17, %v7527_v0  ;;  %v2851_v62 = vmul.f32 %v7534_v17, %v6534_v53  ;;  %v2852_v46 = vmul.f32 %v7534_v17, %v7531_v6 }
 0x25a   : > { %v2853_v51 = vmul.f32 %v7534_v17, %v7529_v37  ;;  %v2854_v20 = vmul.f32 %v7534_v17, %v7535_v32  ;;  %v2855_v55 = vmul.f32 %v7534_v17, %v7533_v11  ;;  %v2856_v54 = vmul.f32 %v7534_v17, %v7536_v27 }
 0x25b   : > { %v2857_v26 = vmul.f32 %v7534_v17, %v7537_v52  ;;  %v2858_v13 = vadd.f32 %v2842_v43, %v2822_v28  ;;  %v2859_v9 = vadd.f32 %v2843_v44, %v2823_v35  ;;  %v2860_v23 = vadd.f32 %v2844_v1, %v2824_v45 }
 0x25c   : > { %v2861_v61 = vadd.f32 %v2845_v21, %v2825_v31  ;;  %v2862_v14 = vadd.f32 %v2846_v22, %v2826_v60  ;;  %v2863_v18 = vadd.f32 %v2847_v41, %v2827_v33  ;;  %v2864_v38 = vadd.f32 %v2848_v56, %v2828_v24 }
 0x25d   : > { %v2865_v15 = vadd.f32 %v2849_v4, %v2829_v8  ;;  %v2866_v42 = vadd.f32 %v2850_v10, %v2830_v12  ;;  %v2867_v19 = vadd.f32 %v2851_v62, %v2831_v57  ;;  %v2868_v29 = vadd.f32 %v2852_v46, %v2832_v58  ;;  %v7539_v12 = vld [vmem:[#allocation74_spill] sm:$0xff] }
 0x25e   : > { %v2869_v47 = vadd.f32 %v2853_v51, %v2833_v40  ;;  %v2870_v5 = vadd.f32 %v2854_v20, %v2834_v63  ;;  %v2871_v59 = vadd.f32 %v2855_v55, %v2835_v50  ;;  %v2872_v3 = vadd.f32 %v2856_v54, %v2836_v16  ;;  %v7540_v40 = vld [vmem:[#allocation68_spill] sm:$0xff]  ;;  %v7541_v50 = vld [vmem:[#allocation69_spill] sm:$0xff] }
 0x25f   : > { %v2873_v39 = vadd.f32 %v2857_v26, %v2837_v34  ;;  %v2878_v27 = vmul.f32 %v7538_v7, %v6482_v49  ;;  %v2879_v43 = vmul.f32 %v7538_v7, %v6525_v36  ;;  %v2880_v28 = vmul.f32 %v7538_v7, %v6485_v2  ;;  %v7542_v26 = vld [vmem:[#allocation34_spill] sm:$0xff] }
 0x260   : > { %v2881_v35 = vmul.f32 %v7538_v7, %v6528_v30  ;;  %v2882_v45 = vmul.f32 %v7538_v7, %v6488_v48  ;;  %v2883_v31 = vmul.f32 %v7538_v7, %v6531_v25  ;;  %v2884_v60 = vmul.f32 %v7538_v7, %v7527_v0 }
 0x261   : > { %v2885_v49 = vmul.f32 %v7538_v7, %v6534_v53  ;;  %v2886_v36 = vmul.f32 %v7538_v7, %v7531_v6  ;;  %v2887_v33 = vmul.f32 %v7538_v7, %v7529_v37  ;;  %v2888_v24 = vmul.f32 %v7538_v7, %v7535_v32 }
 0x262   : > { %v2889_v8 = vmul.f32 %v7538_v7, %v7533_v11  ;;  %v2890_v57 = vmul.f32 %v7538_v7, %v7539_v12  ;;  %v2891_v58 = vmul.f32 %v7538_v7, %v7537_v52  ;;  %v2892_v63 = vmul.f32 %v7538_v7, %v7540_v40 }
 0x263   : > { %v2893_v16 = vmul.f32 %v7538_v7, %v7541_v50  ;;  %v2894_v34 = vadd.f32 %v2878_v27, %v2858_v13  ;;  %v2895_v17 = vadd.f32 %v2879_v43, %v2859_v9  ;;  %v2896_v44 = vadd.f32 %v2880_v28, %v2860_v23 }
 0x264   : > { %v2897_v1 = vadd.f32 %v2881_v35, %v2861_v61  ;;  %v2898_v21 = vadd.f32 %v2882_v45, %v2862_v14  ;;  %v2899_v22 = vadd.f32 %v2883_v31, %v2863_v18  ;;  %v2900_v41 = vadd.f32 %v2884_v60, %v2864_v38  ;;  %v7543_v18 = vld [vmem:[#allocation68_spill] sm:$0xff]  ;;  %v7544_v38 = vld [vmem:[#allocation65_spill] sm:$0xff] }
 0x265   : > { %v2901_v56 = vadd.f32 %v2885_v49, %v2865_v15  ;;  %v2902_v4 = vadd.f32 %v2886_v36, %v2866_v42  ;;  %v2903_v10 = vadd.f32 %v2887_v33, %v2867_v19  ;;  %v2904_v62 = vadd.f32 %v2888_v24, %v2868_v29  ;;  %v7545_v15 = vld [vmem:[#allocation57_spill] sm:$0xff] }
 0x266   : > { %v2905_v46 = vadd.f32 %v2889_v8, %v2869_v47  ;;  %v2906_v51 = vadd.f32 %v2890_v57, %v2870_v5  ;;  %v2907_v20 = vadd.f32 %v2891_v58, %v2871_v59  ;;  %v2908_v55 = vadd.f32 %v2892_v63, %v2872_v3 }
 0x267   : > { %v2909_v54 = vadd.f32 %v2893_v16, %v2873_v39  ;;  %v2914_v40 = vmul.f32 %v7542_v26, %v6485_v2  ;;  %v2915_v27 = vmul.f32 %v7542_v26, %v6528_v30  ;;  %v2916_v13 = vmul.f32 %v7542_v26, %v6488_v48 }
 0x268   : > { %v2917_v9 = vmul.f32 %v7542_v26, %v6531_v25  ;;  %v2918_v23 = vmul.f32 %v7542_v26, %v7527_v0  ;;  %v2919_v61 = vmul.f32 %v7542_v26, %v6534_v53  ;;  %v2920_v14 = vmul.f32 %v7542_v26, %v7531_v6 }
 0x269   : > { %v2921_v2 = vmul.f32 %v7542_v26, %v7529_v37  ;;  %v2922_v30 = vmul.f32 %v7542_v26, %v7535_v32  ;;  %v2923_v48 = vmul.f32 %v7542_v26, %v7533_v11  ;;  %v2924_v25 = vmul.f32 %v7542_v26, %v7539_v12 }
 0x26a   : > { %v2925_v0 = vmul.f32 %v7542_v26, %v7537_v52  ;;  %v2926_v53 = vmul.f32 %v7542_v26, %v7543_v18  ;;  %v2927_v6 = vmul.f32 %v7542_v26, %v7541_v50  ;;  %v2928_v37 = vmul.f32 %v7542_v26, %v7544_v38 }
 0x26b   : > { %v2929_v32 = vmul.f32 %v7542_v26, %v7545_v15  ;;  %v2930_v42 = vadd.f32 %v2914_v40, %v2894_v34  ;;  %v2931_v11 = vadd.f32 %v2915_v27, %v2895_v17  ;;  %v2932_v19 = vadd.f32 %v2916_v13, %v2896_v44 }
 0x26c   : > { %v2933_v29 = vadd.f32 %v2917_v9, %v2897_v1  ;;  %v2934_v47 = vadd.f32 %v2918_v23, %v2898_v21  ;;  %v2935_v52 = vadd.f32 %v2919_v61, %v2899_v22  ;;  %v2936_v5 = vadd.f32 %v2920_v14, %v2900_v41 }
 0x26d   : > { %v2937_v59 = vadd.f32 %v2921_v2, %v2901_v56  ;;  %v2938_v3 = vadd.f32 %v2922_v30, %v2902_v4  ;;  %v2939_v39 = vadd.f32 %v2923_v48, %v2903_v10  ;;  %v2940_v7 = vadd.f32 %v2924_v25, %v2904_v62 }
 0x26e   : > { %v2941_v43 = vadd.f32 %v2925_v0, %v2905_v46  ;;  %v2942_v28 = vadd.f32 %v2926_v53, %v2906_v51  ;;  %v2943_v35 = vadd.f32 %v2927_v6, %v2907_v20  ;;  %v2944_v45 = vadd.f32 %v2928_v37, %v2908_v55 }
 0x26f   : > { %v2945_v31 = vadd.f32 %v2929_v32, %v2909_v54 }
 0x270   : > { %3720 = dma.done.wait (%p3543_p13), %s6789_s24, 2048 }
 0x271   : > { %3722 = vsyncadd (%p3543_p13), %s6789_s24, 4294965248  ;;  %s2971_s25 = smul.u32 264, %s3741_s13  ;;  %s3497_s26 = sshll.u32 %s3737_s12, 7 }
 0x273   : > { %s3266_s27 = sadd.s32 %s3497_s26, %s2971_s25 }
 0x274   : > { %s3267_s29 = scalar_lea.vmem %s6832_s3, %s3266_s27 }
 0x275   : > { %3498 = vst [vmem:[%s3267_s29 + $0x1] sm:$0xff] %v2930_v42  ;;  %3499 = vst [vmem:[%s3267_s29 + $0x9] sm:$0xff] %v2931_v11 }
 0x276   : > { %3500 = vst [vmem:[%s3267_s29 + $0x11] sm:$0xff] %v2932_v19  ;;  %3501 = vst [vmem:[%s3267_s29 + $0x19] sm:$0xff] %v2933_v29 }
 0x277   : > { %3502 = vst [vmem:[%s3267_s29 + $0x21] sm:$0xff] %v2934_v47  ;;  %3503 = vst [vmem:[%s3267_s29 + $0x29] sm:$0xff] %v2935_v52 }
 0x278   : > { %3504 = vst [vmem:[%s3267_s29 + $0x31] sm:$0xff] %v2936_v5  ;;  %3505 = vst [vmem:[%s3267_s29 + $0x39] sm:$0xff] %v2937_v59 }
 0x279   : > { %3506 = vst [vmem:[%s3267_s29 + $0x41] sm:$0xff] %v2938_v3  ;;  %3507 = vst [vmem:[%s3267_s29 + $0x49] sm:$0xff] %v2939_v39 }
 0x27a   : > { %3508 = vst [vmem:[%s3267_s29 + $0x51] sm:$0xff] %v2940_v7  ;;  %3509 = vst [vmem:[%s3267_s29 + $0x59] sm:$0xff] %v2941_v43 }
 0x27b   : > { %3510 = vst [vmem:[%s3267_s29 + $0x61] sm:$0xff] %v2942_v28  ;;  %3511 = vst [vmem:[%s3267_s29 + $0x69] sm:$0xff] %v2943_v35 }
 0x27c   : > { %3512 = vst [vmem:[%s3267_s29 + $0x71] sm:$0xff] %v2944_v45  ;;  %3513 = vst [vmem:[%s3267_s29 + $0x79] sm:$0xff] %v2945_v31 }
 0x27d   : > { %3046 = vsyncadd %s6789_s24, 2048  ;;  %3049 = sbr.rel (%p3368_p3) target bundleno = 650 (0x28a), region = 344 }
 0x284   : > { %3723 = dma.done.wait [#allocation7], 16 }
 0x285   : > { %3724 = vsyncadd [#allocation7], 4294967280  ;;  %s3053_s4 = scalar_lea.vmem %s6832_s3, %s2971_s25  ;;  %v3072_v60 = vld [vmem:[#allocation4] sm:$0x1] }
 0x286   : > { %3073 = vst [vmem:[%s3053_s4] sm:$0x1] %v3072_v60 }
 0x287   : > { %3098 = vsyncadd [#allocation7 + $0x1], 16 }
 0x288   : > { %3725 = dma.done.wait [#allocation7 + $0x1], 16 }
 0x289   : > { %3726 = vsyncadd [#allocation7 + $0x1], 4294967280 }
 0x28a PF: > { %p3544_p0 = scmp.eq.s32.totalorder %s3737_s12, 1  ;;  %s3108_s5 = ssub.s32 1, %s3811_s19 }
 0x28b   : > { %s3109_s6 = scalar_lea.sflag [#allocation6], %s3108_s5 }
 0x28c   : > { %p3537_p1 = pnand %p3544_p0, %p3430_p7 }
 0x28e   : > { %3728 = dma.done.wait (!%p3537_p1), %s3109_s6, 2048 }
 0x28f   : > { %3730 = vsyncadd (!%p3537_p1), %s3109_s6, 4294965248 }
 0x290   : > { %3732 = dma.done.wait (%p3544_p0), %s6789_s24, 2048 }
 0x291   : > { %3734 = vsyncadd (%p3544_p0), %s6789_s24, 4294965248 }
 0x292 PF: > { %s13_s16 = sadd.s32 1, %s3753_s16   ;;  %s7546_s12 = smov %s3745_s14 }
 0x293   : > { %p10_p2 = scmp.ge.s32.totalorder %s13_s16, 5   ;;  %s7547_s13 = smov %s3749_s15 }
 0x294   : > { %s7548_s14 = smov %s7551_s17  ;;  %s7549_s15 = smov %s7555_s18 }
 0x295   :  { %12 = sbr.rel (!%p10_p2) target bundleno = 3 (0x3), region = 508 }
 0x29c   :  { %3114 = vsyncmov [#allocation5] }
 0x29f   :  { %s3115_s19 = vpop.sfrf %3114 }
 0x2a0   :  { %p3518_p3 = scmp.ne.s32.totalorder %s3115_s19, 0 }
 0x2a2   :  { %3119 = shalt.err (%p3518_p3)  }
 0x2a3   :  { %3121 = vsyncmov [#allocation5 + $0x1] }
 0x2a6   :  { %s3122_s7 = vpop.sfrf %3121 }
 0x2a7   :  { %p3519_p4 = scmp.ne.s32.totalorder %s3122_s7, 0 }
 0x2a9   :  { %3126 = shalt.err (%p3519_p4)  }
 0x2aa   :  { %3128 = vsyncmov [#allocation5 + $0x2] }
 0x2ad   :  { %s3129_s8 = vpop.sfrf %3128 }
 0x2ae   :  { %p3520_p5 = scmp.ne.s32.totalorder %s3129_s8, 0 }
 0x2b0   :  { %3133 = shalt.err (%p3520_p5)  }
 0x2b1   :  { %3135 = vsyncmov [#allocation5 + $0x3] }
 0x2b4   :  { %s3136_s9 = vpop.sfrf %3135 }
 0x2b5   :  { %p3521_p6 = scmp.ne.s32.totalorder %s3136_s9, 0 }
 0x2b7   :  { %3140 = shalt.err (%p3521_p6)  }
 0x2b8   :  { %3142 = vsyncmov [#allocation5 + $0x4] }
 0x2bb   :  { %s3143_s17 = vpop.sfrf %3142 }
 0x2bc   :  { %p3522_p7 = scmp.ne.s32.totalorder %s3143_s17, 0 }
 0x2be   :  { %3147 = shalt.err (%p3522_p7)  }
 0x2bf   :  { %3149 = vsyncmov [#allocation5 + $0x5] }
 0x2c2   :  { %s3150_s0 = vpop.sfrf %3149 }
 0x2c3   :  { %p3523_p8 = scmp.ne.s32.totalorder %s3150_s0, 0 }
 0x2c5   :  { %3154 = shalt.err (%p3523_p8)  }
 0x2c6   :  { %3155 = vsyncmov [#allocation6] }
 0x2c9   :  { %s3156_s1 = vpop.sfrf %3155 }
 0x2ca   :  { %p3524_p9 = scmp.ne.s32.totalorder %s3156_s1, 0 }
 0x2cc   :  { %3160 = shalt.err (%p3524_p9)  }
 0x2cd   :  { %3162 = vsyncmov [#allocation6 + $0x1] }
 0x2d0   :  { %s3163_s2 = vpop.sfrf %3162 }
 0x2d1   :  { %p3525_p10 = scmp.ne.s32.totalorder %s3163_s2, 0 }
 0x2d3   :  { %3167 = shalt.err (%p3525_p10)  }
 0x2d4   :  { %3168 = vsyncmov [#allocation7] }
 0x2d7   :  { %s3169_s3 = vpop.sfrf %3168 }
 0x2d8   :  { %p3526_p11 = scmp.ne.s32.totalorder %s3169_s3, 0 }
 0x2da   :  { %3173 = shalt.err (%p3526_p11)  }
 0x2db   :  { %3175 = vsyncmov [#allocation7 + $0x1] }
 0x2de   :  { %s3176_s12 = vpop.sfrf %3175 }
 0x2df   :  { %p3527_p12 = scmp.ne.s32.totalorder %s3176_s12, 0 }
 0x2e1   :  { %3180 = shalt.err (%p3527_p12)  }

</bundles_post_ra>
